<compile_context>
chip_gen: v6e
topology: v6e:2x2x1
jax: 0.10.0
libtpu: 0.0.40
codegen_flags: <defaults>
</compile_context>

<pallas_src>
import math
from functools import partial

import jax
import jax.numpy as jnp
from jax import lax
from jax.experimental import pallas as pl
from jax.experimental.pallas import tpu as pltpu

BN_EPS = 1e-5
SUBLANE = 8          # conv output columns padded to a multiple of this


def _gelu_exact(x):
    # matches torch.nn.GELU() (erf formulation)
    return 0.5 * x * (1.0 + lax.erf(x * (1.0 / math.sqrt(2.0))))


def _round_up(v, m):
    return ((v + m - 1) // m) * m


def _cdiv(a, b):
    return -(-a // b)


# ----------------------------- Pallas kernels --------------------------------

def _conv_kernel(ev_ref, evh_ref, od_ref, odh_ref, w_ref, sc_ref, sh_ref, o_ref,
                 *, tile_r, wo_pad, apply_gelu):
    """One (batch, row-block) tile of: stride-2 3x3 conv + folded bias/BN (+GELU).

    ev_ref/od_ref : (1, 2*tile_r, wo_pad+1, cin) even-/odd-column parity views
                    of the zero-padded input, rows [2*tile_r*r, 2*tile_r*(r+1)).
    evh_ref/odh_ref: (1, 1, wo_pad+1, cin) halo row 2*tile_r*(r+1).
    w_ref         : (9, cin, cout) tap-major conv weights (t = kh*3 + kw).
    """
    cin = w_ref.shape[1]
    cout = w_ref.shape[2]
    m = tile_r * wo_pad

    ev = ev_ref[0]                                    # (2*tile_r, wo_pad+1, cin)
    od = od_ref[0]
    # stride-2 row selection: split the (major) row dim -> free reshape
    ev_p = ev.reshape(tile_r, 2, wo_pad + 1, cin)     # [:,0]=rows 2t, [:,1]=rows 2t+1
    od_p = od.reshape(tile_r, 2, wo_pad + 1, cin)
    if tile_r > 1:
        ev2 = jnp.concatenate(
            [ev[2:].reshape(tile_r - 1, 2, wo_pad + 1, cin)[:, 0], evh_ref[0]], axis=0)
        od2 = jnp.concatenate(
            [od[2:].reshape(tile_r - 1, 2, wo_pad + 1, cin)[:, 0], odh_ref[0]], axis=0)
    else:
        ev2 = evh_ref[0]
        od2 = odh_ref[0]

    # (row slab, column offset inside the parity view) for tap t = kh*3 + kw
    taps = (
        (ev_p[:, 0], 0), (od_p[:, 0], 0), (ev_p[:, 0], 1),   # kh = 0
        (ev_p[:, 1], 0), (od_p[:, 1], 0), (ev_p[:, 1], 1),   # kh = 1
        (ev2, 0),        (od2, 0),        (ev2, 1),          # kh = 2
    )
    acc = jnp.zeros((m, cout), jnp.float32)
    for t, (slab, off) in enumerate(taps):            # per-tap K accumulation
        patch = slab[:, off:off + wo_pad, :].reshape(m, cin)
        acc = acc + jnp.dot(patch, w_ref[t], preferred_element_type=jnp.float32)

    y = acc * sc_ref[...] + sh_ref[...]               # folded conv bias + BatchNorm
    if apply_gelu:
        y = _gelu_exact(y)
    o_ref[0] = y.reshape(tile_r, wo_pad, cout).astype(o_ref.dtype)


def _attn_kernel(x_ref, q_ref, kvw_ref, kvb_ref, pw_ref, pb_ref, dw_ref, db_ref,
                 o_ref, *, dim, scale):
    """Per-batch attention head: fused k/v projection -> softmax -> proj -> down."""
    x = x_ref[0]                                                        # (N, C) f32
    kv = jnp.dot(x, kvw_ref[...], preferred_element_type=jnp.float32) + kvb_ref[...]
    k = kv[:, :dim]
    v = kv[:, dim:]
    logits = lax.dot_general(q_ref[...], k, (((1,), (1,)), ((), ())),
                             preferred_element_type=jnp.float32) * scale  # (4, N)
    logits = logits - jnp.max(logits, axis=-1, keepdims=True)
    e = jnp.exp(logits)
    p = e / jnp.sum(e, axis=-1, keepdims=True)
    out = jnp.dot(p, v, preferred_element_type=jnp.float32)               # (4, C)
    out = jnp.dot(out, pw_ref[...], preferred_element_type=jnp.float32) + pb_ref[...]
    scores = jnp.sum(out * dw_ref[...], axis=-1, keepdims=True) + db_ref[...]
    o_ref[0] = scores.astype(o_ref.dtype)


# ----------------------------- helpers / wrappers ------------------------------

def _pack_conv_weights(w_oihw):
    """(Cout, Cin, 3, 3) -> (9, Cin, Cout) bf16, tap-major (t = kh*3 + kw)."""
    cout, cin = w_oihw.shape[0], w_oihw.shape[1]
    return jnp.transpose(w_oihw, (2, 3, 1, 0)).reshape(9, cin, cout).astype(jnp.bfloat16)


def _fold_bn(layer):
    cout = layer['w'].shape[0]
    s = layer['gamma'] / jnp.sqrt(layer['var'] + BN_EPS)
    scale = s.reshape(1, cout).astype(jnp.float32)
    shift = ((layer['b'] - layer['mean']) * s + layer['beta']
             ).reshape(1, cout).astype(jnp.float32)
    return scale, shift


def _conv_block_bytes(tile_r, wo_pad, cin, cout):
    """Lane/sublane-padded VMEM bytes of the double-buffered blocks of one step."""
    cin_l = _round_up(max(cin, 1), 128)
    cout_l = _round_up(max(cout, 1), 128)
    in_blk = (2 * tile_r + 1) * _round_up(wo_pad + 1, 16) * cin_l * 2    # bf16
    out_blk = tile_r * _round_up(wo_pad, 16) * cout_l * 2
    w_blk = 9 * _round_up(cin, 16) * cout_l * 2
    return 2 * (2 * in_blk + out_blk + w_blk)          # x2 views, x2 buffers


def _vmem_cap_bytes():
    try:
        cap = int(getattr(pltpu.get_tpu_info(), "vmem_capacity_bytes", 0))
        if cap > 0:
            return cap
    except Exception:
        pass
    return 64 << 20        # conservative: v7x per-TensorCore VMEM


def _choose_tiling(batch, ho, wo_pad, cin, cout, target_m):
    tile_r = max(1, min(ho, target_m // max(wo_pad, 1)))
    while tile_r > 1 and _conv_block_bytes(tile_r, wo_pad, cin, cout) > (12 << 20):
        tile_r -= 1
    # make sure the grid has >= 2 steps so both v7x TensorCores get work
    if batch * _cdiv(ho, tile_r) < 2 and ho > 1:
        tile_r = _cdiv(ho, 2)
    ho_pad = _round_up(ho, tile_r)
    return tile_r, ho_pad


def conv_stage(a, h, w, layer, *, apply_gelu, target_m=1024):
    """Stride-2 3x3 conv + folded bias/BatchNorm (+ exact GELU), gridded pallas_call.

    a : (B, Ha, Wa, cin) activation; only a[:, :h, :w, :] is valid data.
    Returns (out, ho, wo) with out (B, ho_pad, wo_pad, cout), valid out[:, :ho, :wo].
    """
    B, _, _, cin = a.shape
    cout = layer['w'].shape[0]
    ho = (h - 1) // 2 + 1
    wo = (w - 1) // 2 + 1
    wo_pad = _round_up(wo, SUBLANE)
    tile_r, ho_pad = _choose_tiling(B, ho, wo_pad, cin, cout, target_m)
    grid_r = ho_pad // tile_r

    # Two column-parity views of the zero-padded input (~1x the input bytes;
    # the valid-region slice and the pad are fused by XLA into the view build).
    hp = 2 * ho_pad + 1
    wp = 2 * wo_pad + 2
    av = a[:, :h, :w, :].astype(jnp.bfloat16)
    xp = jnp.pad(av, ((0, 0), (1, hp - 1 - h), (1, wp - 1 - w), (0, 0)))
    ev = xp[:, :, 0::2, :]                  # padded cols 2j   -> taps kw = 0, 2
    od = xp[:, :, 1::2, :]                  # padded cols 2j+1 -> tap  kw = 1

    w_mat = _pack_conv_weights(layer['w'])
    scale, shift = _fold_bn(layer)

    blk = _conv_block_bytes(tile_r, wo_pad, cin, cout)
    vmem_limit = int(max(32 << 20,
                         min(int(0.6 * _vmem_cap_bytes()), 100 << 20,
                             4 * blk + (16 << 20))))

    main_spec = pl.BlockSpec((1, 2 * tile_r, wo_pad + 1, cin),
                             lambda b, r: (b, r, 0, 0))
    halo_spec = pl.BlockSpec((1, 1, wo_pad + 1, cin),
                             lambda b, r: (b, 2 * tile_r * (r + 1), 0, 0))

    out = pl.pallas_call(
        partial(_conv_kernel, tile_r=tile_r, wo_pad=wo_pad, apply_gelu=apply_gelu),
        out_shape=jax.ShapeDtypeStruct((B, ho_pad, wo_pad, cout), jnp.bfloat16),
        grid=(B, grid_r),
        in_specs=[
            main_spec, halo_spec,                          # even-column view + halo
            main_spec, halo_spec,                          # odd-column view + halo
            pl.BlockSpec((9, cin, cout), lambda b, r: (0, 0, 0)),
            pl.BlockSpec((1, cout), lambda b, r: (0, 0)),
            pl.BlockSpec((1, cout), lambda b, r: (0, 0)),
        ],
        out_specs=pl.BlockSpec((1, tile_r, wo_pad, cout), lambda b, r: (b, r, 0, 0)),
        compiler_params=pltpu.CompilerParams(
            dimension_semantics=("parallel", "parallel"),
            vmem_limit_bytes=vmem_limit),
    )(ev, ev, od, od, w_mat, scale, shift)
    return out, ho, wo


def attention_head(tokens, params, *, scale):
    """4-query attention over the downsampled tokens -> (B, 4) scores."""
    B, N, C = tokens.shape
    kv_w = jnp.concatenate([params['k_w'], params['v_w']], axis=1).astype(jnp.float32)
    kv_b = jnp.concatenate([params['k_b'], params['v_b']]).reshape(1, 2 * C)

    out = pl.pallas_call(
        partial(_attn_kernel, dim=C, scale=scale),
        out_shape=jax.ShapeDtypeStruct((B, 4, 1), jnp.float32),
        grid=(B,),
        in_specs=[
            pl.BlockSpec((1, N, C), lambda b: (b, 0, 0)),
            pl.BlockSpec((4, C), lambda b: (0, 0)),
            pl.BlockSpec((C, 2 * C), lambda b: (0, 0)),
            pl.BlockSpec((1, 2 * C), lambda b: (0, 0)),
            pl.BlockSpec((C, C), lambda b: (0, 0)),
            pl.BlockSpec((1, C), lambda b: (0, 0)),
            pl.BlockSpec((1, C), lambda b: (0, 0)),
            pl.BlockSpec((1, 1), lambda b: (0, 0)),
        ],
        out_specs=pl.BlockSpec((1, 4, 1), lambda b: (b, 0, 0)),
        compiler_params=pltpu.CompilerParams(dimension_semantics=("parallel",)),
    )(tokens.astype(jnp.float32),
      params['q'].astype(jnp.float32),
      kv_w,
      kv_b.astype(jnp.float32),
      params['proj_w'].astype(jnp.float32),
      params['proj_b'].reshape(1, C).astype(jnp.float32),
      params['down_w'].reshape(1, C).astype(jnp.float32),
      params['down_b'].reshape(1, 1).astype(jnp.float32))
    return out.reshape(B, 4)


# ----------------------------- forward pass -----------------------------------

def kernel_predictor_forward(x_nchw, params, *, dim, num_heads=1, conv_tile_m=1024):
    assert num_heads == 1, "this Pallas port implements num_heads == 1 (module default)"
    head_dim = dim // num_heads
    attn_scale = head_dim ** (-0.5)

    a = jnp.transpose(x_nchw, (0, 2, 3, 1)).astype(jnp.float32)      # NCHW -> NHWC
    h, w = a.shape[1], a.shape[2]
    for i in range(4):                                               # kv_downsample
        a, h, w = conv_stage(a, h, w, params['convs'][i],
                             apply_gelu=(i < 3), target_m=conv_tile_m)
    B = a.shape[0]
    tokens = a[:, :h, :w, :].reshape(B, h * w, dim)                  # (B, N, C)
    scores = attention_head(tokens, params, scale=attn_scale)        # (B, 4)

    r1 = 0.1 * scores[:, 0] + params['r1_base']
    r2 = 0.1 * scores[:, 1] + params['r2_base']
    gain = scores[:, 2] + params['gain_base']
    sigma = jax.nn.sigmoid(scores[:, 3])
    return r1, r2, gain, sigma


# ----------------------------- parameters -------------------------------------

def init_params(key, dim):
    keys = iter(jax.random.split(key, 64))
    chans = [3, dim // 8, dim // 4, dim // 2, dim]
    convs = []
    for i in range(4):
        cin, cout = chans[i], chans[i + 1]
        convs.append(dict(
            w=jax.random.normal(next(keys), (cout, cin, 3, 3), jnp.float32)
              / math.sqrt(cin * 9),
            b=0.1 * jax.random.normal(next(keys), (cout,), jnp.float32),
            gamma=1.0 + 0.1 * jax.random.normal(next(keys), (cout,), jnp.float32),
            beta=0.1 * jax.random.normal(next(keys), (cout,), jnp.float32),
            mean=0.1 * jax.random.normal(next(keys), (cout,), jnp.float32),
            var=jax.random.uniform(next(keys), (cout,), jnp.float32, 0.5, 1.5),
        ))

    def linear(k, fin, fout):
        kw_, kb_ = jax.random.split(k)
        w = jax.random.normal(kw_, (fin, fout), jnp.float32) / math.sqrt(fin)
        b = 0.1 * jax.random.normal(kb_, (fout,), jnp.float32)
        return w, b  # stored input-major so forward is x @ w + b

    k_w, k_b = linear(next(keys), dim, dim)
    v_w, v_b = linear(next(keys), dim, dim)
    p_w, p_b = linear(next(keys), dim, dim)
    d_w, d_b = linear(next(keys), dim, 1)
    q = jax.random.uniform(next(keys), (4, dim), jnp.float32)  # like torch.rand((1,4,dim))
    return dict(convs=convs, q=q,
                k_w=k_w, k_b=k_b, v_w=v_w, v_b=v_b,
                proj_w=p_w, proj_b=p_b,
                down_w=d_w.reshape(1, dim), down_b=d_b.reshape(1, 1),
                r1_base=3.0, r2_base=2.0, gain_base=3.0)   # mode='low' -> gain_base=3


# ----------------------------- pure-JAX reference ------------------------------

def reference_forward(x_nchw, params, *, dim, num_heads=1):
    head_dim = dim // num_heads
    attn_scale = head_dim ** (-0.5)
    h = x_nchw.astype(jnp.float32)
    for i, layer in enumerate(params['convs']):
        h = lax.conv_general_dilated(h, layer['w'], (2, 2), ((1, 1), (1, 1)),
                                     dimension_numbers=('NCHW', 'OIHW', 'NCHW'))
        h = h + layer['b'][None, :, None, None]
        h = (layer['gamma'][None, :, None, None]
             * (h - layer['mean'][None, :, None, None])
             / jnp.sqrt(layer['var'][None, :, None, None] + BN_EPS)
             + layer['beta'][None, :, None, None])
        if i < 3:
            h = _gelu_exact(h)
    B, C, Ho, Wo = h.shape
    dx = jnp.transpose(h.reshape(B, C, Ho * Wo), (0, 2, 1))
    k = dx @ params['k_w'] + params['k_b']
    v = dx @ params['v_w'] + params['v_b']
    q = jnp.broadcast_to(params['q'][None], (B, 4, C))
    attn = jnp.einsum('bqc,bnc->bqn', q, k) * attn_scale
    attn = jax.nn.softmax(attn, axis=-1)
    out = jnp.einsum('bqn,bnc->bqc', attn, v)
    out = out @ params['proj_w'] + params['proj_b']
    scores = jnp.sum(out * params['down_w'][None], axis=-1) + params['down_b'][0, 0]
    r1 = 0.1 * scores[:, 0] + params['r1_base']
    r2 = 0.1 * scores[:, 1] + params['r2_base']
    gain = scores[:, 2] + params['gain_base']
    sigma = jax.nn.sigmoid(scores[:, 3])
    return r1, r2, gain, sigma


# ------------------------------------------------------------------------------

if __name__ == "__main__":
    dim = 32
    B, H, W = 2, 32, 32          # after 4 stride-2 convs: N = 2*2 = 4 tokens

    key = jax.random.PRNGKey(0)
    kx, kp = jax.random.split(key)
    x = jax.random.normal(kx, (B, 3, H, W), jnp.float32)
    params = init_params(kp, dim)

    # small conv row-tile so the toy shapes still exercise a multi-step grid
    # (including the cross-row-block halo path of the first stage).
    fwd = jax.jit(partial(kernel_predictor_forward, dim=dim, conv_tile_m=128))
    r1, r2, gain, sigma = jax.block_until_ready(fwd(x, params))

    # sanity check against a pure-JAX f32 reference (kernel runs bf16 conv
    # activations with f32 accumulation, hence the loosened tolerance)
    r1_r, r2_r, gain_r, sigma_r = reference_forward(x, params, dim=dim)
    got = jnp.stack([r1, r2, gain, sigma])
    ref = jnp.stack([r1_r, r2_r, gain_r, sigma_r])
    assert got.shape == (4, B)
    assert bool(jnp.all(jnp.isfinite(got)))
    assert jnp.allclose(got, ref, atol=4e-2, rtol=4e-2), (got, ref)

    print("KERNEL_OK")
</pallas_src>

<mosaic_0001>
module attributes {stable_mosaic.version = 11 : i64} {
  func.func @_conv_kernel(%arg0: i32, %arg1: i32, %arg2: memref<1x16x17x3xbf16, #tpu.memory_space<vmem>>, %arg3: memref<1x1x17x3xbf16, #tpu.memory_space<vmem>>, %arg4: memref<1x16x17x3xbf16, #tpu.memory_space<vmem>>, %arg5: memref<1x1x17x3xbf16, #tpu.memory_space<vmem>>, %arg6: memref<9x3x4xbf16, #tpu.memory_space<vmem>>, %arg7: memref<1x4xf32, #tpu.memory_space<vmem>>, %arg8: memref<1x4xf32, #tpu.memory_space<vmem>>, %arg9: memref<1x8x16x4xbf16, #tpu.memory_space<vmem>>) attributes {dimension_semantics = [#tpu.dimension_semantics<parallel>, #tpu.dimension_semantics<parallel>], iteration_bounds = array<i64: 2, 2>, scalar_prefetch = 0 : i64, scratch_operands = 0 : i64, tpu.core_type = #tpu.core_type<tc>, window_params = [{transform_indices = @transform_0, window_bounds = array<i64: 1, 16, 17, 3>}, {transform_indices = @transform_1, window_bounds = array<i64: 1, 1, 17, 3>}, {transform_indices = @transform_2, window_bounds = array<i64: 1, 16, 17, 3>}, {transform_indices = @transform_3, window_bounds = array<i64: 1, 1, 17, 3>}, {pipeline_mode = #tpu.pipeline_mode<synchronous>, transform_indices = @transform_4, window_bounds = array<i64: 9, 3, 4>}, {pipeline_mode = #tpu.pipeline_mode<synchronous>, transform_indices = @transform_5, window_bounds = array<i64: 1, 4>}, {pipeline_mode = #tpu.pipeline_mode<synchronous>, transform_indices = @transform_6, window_bounds = array<i64: 1, 4>}, {transform_indices = @transform_7, window_bounds = array<i64: 1, 8, 16, 4>}]} {
    %c0 = arith.constant 0 : index
    %c0_0 = arith.constant 0 : index
    %c0_1 = arith.constant 0 : index
    %c0_2 = arith.constant 0 : index
    %0 = vector.load %arg2[%c0, %c0_0, %c0_1, %c0_2] : memref<1x16x17x3xbf16, #tpu.memory_space<vmem>>, vector<1x16x17x3xbf16>
    %1 = vector.shape_cast %0 : vector<1x16x17x3xbf16> to vector<16x17x3xbf16>
    %c0_3 = arith.constant 0 : index
    %c0_4 = arith.constant 0 : index
    %c0_5 = arith.constant 0 : index
    %c0_6 = arith.constant 0 : index
    %2 = vector.load %arg4[%c0_3, %c0_4, %c0_5, %c0_6] : memref<1x16x17x3xbf16, #tpu.memory_space<vmem>>, vector<1x16x17x3xbf16>
    %3 = vector.shape_cast %2 : vector<1x16x17x3xbf16> to vector<16x17x3xbf16>
    %4 = vector.shape_cast %1 : vector<16x17x3xbf16> to vector<8x2x17x3xbf16>
    %5 = vector.shape_cast %3 : vector<16x17x3xbf16> to vector<8x2x17x3xbf16>
    %6 = vector.extract_strided_slice %1 {offsets = [2, 0, 0], sizes = [14, 17, 3], strides = [1, 1, 1]} : vector<16x17x3xbf16> to vector<14x17x3xbf16>
    %7 = vector.shape_cast %6 : vector<14x17x3xbf16> to vector<7x2x17x3xbf16>
    %8 = vector.extract_strided_slice %7 {offsets = [0, 0, 0, 0], sizes = [7, 1, 17, 3], strides = [1, 1, 1, 1]} : vector<7x2x17x3xbf16> to vector<7x1x17x3xbf16>
    %9 = vector.shape_cast %8 : vector<7x1x17x3xbf16> to vector<7x17x3xbf16>
    %c0_7 = arith.constant 0 : index
    %c0_8 = arith.constant 0 : index
    %c0_9 = arith.constant 0 : index
    %c0_10 = arith.constant 0 : index
    %10 = vector.load %arg3[%c0_7, %c0_8, %c0_9, %c0_10] : memref<1x1x17x3xbf16, #tpu.memory_space<vmem>>, vector<1x1x17x3xbf16>
    %11 = vector.shape_cast %10 : vector<1x1x17x3xbf16> to vector<1x17x3xbf16>
    %12 = tpu.concatenate %9, %11 in 0 : vector<7x17x3xbf16>, vector<1x17x3xbf16> -> vector<8x17x3xbf16>
    %13 = vector.extract_strided_slice %3 {offsets = [2, 0, 0], sizes = [14, 17, 3], strides = [1, 1, 1]} : vector<16x17x3xbf16> to vector<14x17x3xbf16>
    %14 = vector.shape_cast %13 : vector<14x17x3xbf16> to vector<7x2x17x3xbf16>
    %15 = vector.extract_strided_slice %14 {offsets = [0, 0, 0, 0], sizes = [7, 1, 17, 3], strides = [1, 1, 1, 1]} : vector<7x2x17x3xbf16> to vector<7x1x17x3xbf16>
    %16 = vector.shape_cast %15 : vector<7x1x17x3xbf16> to vector<7x17x3xbf16>
    %c0_11 = arith.constant 0 : index
    %c0_12 = arith.constant 0 : index
    %c0_13 = arith.constant 0 : index
    %c0_14 = arith.constant 0 : index
    %17 = vector.load %arg5[%c0_11, %c0_12, %c0_13, %c0_14] : memref<1x1x17x3xbf16, #tpu.memory_space<vmem>>, vector<1x1x17x3xbf16>
    %18 = vector.shape_cast %17 : vector<1x1x17x3xbf16> to vector<1x17x3xbf16>
    %19 = tpu.concatenate %16, %18 in 0 : vector<7x17x3xbf16>, vector<1x17x3xbf16> -> vector<8x17x3xbf16>
    %20 = vector.extract_strided_slice %4 {offsets = [0, 0, 0, 0], sizes = [8, 1, 17, 3], strides = [1, 1, 1, 1]} : vector<8x2x17x3xbf16> to vector<8x1x17x3xbf16>
    %21 = vector.shape_cast %20 : vector<8x1x17x3xbf16> to vector<8x17x3xbf16>
    %22 = vector.extract_strided_slice %5 {offsets = [0, 0, 0, 0], sizes = [8, 1, 17, 3], strides = [1, 1, 1, 1]} : vector<8x2x17x3xbf16> to vector<8x1x17x3xbf16>
    %23 = vector.shape_cast %22 : vector<8x1x17x3xbf16> to vector<8x17x3xbf16>
    %24 = vector.extract_strided_slice %4 {offsets = [0, 0, 0, 0], sizes = [8, 1, 17, 3], strides = [1, 1, 1, 1]} : vector<8x2x17x3xbf16> to vector<8x1x17x3xbf16>
    %25 = vector.shape_cast %24 : vector<8x1x17x3xbf16> to vector<8x17x3xbf16>
    %26 = vector.extract_strided_slice %4 {offsets = [0, 1, 0, 0], sizes = [8, 1, 17, 3], strides = [1, 1, 1, 1]} : vector<8x2x17x3xbf16> to vector<8x1x17x3xbf16>
    %27 = vector.shape_cast %26 : vector<8x1x17x3xbf16> to vector<8x17x3xbf16>
    %28 = vector.extract_strided_slice %5 {offsets = [0, 1, 0, 0], sizes = [8, 1, 17, 3], strides = [1, 1, 1, 1]} : vector<8x2x17x3xbf16> to vector<8x1x17x3xbf16>
    %29 = vector.shape_cast %28 : vector<8x1x17x3xbf16> to vector<8x17x3xbf16>
    %30 = vector.extract_strided_slice %4 {offsets = [0, 1, 0, 0], sizes = [8, 1, 17, 3], strides = [1, 1, 1, 1]} : vector<8x2x17x3xbf16> to vector<8x1x17x3xbf16>
    %31 = vector.shape_cast %30 : vector<8x1x17x3xbf16> to vector<8x17x3xbf16>
    %cst = arith.constant 0.000000e+00 : f32
    %32 = vector.broadcast %cst : f32 to vector<128x4xf32>
    %33 = vector.extract_strided_slice %21 {offsets = [0, 0, 0], sizes = [8, 16, 3], strides = [1, 1, 1]} : vector<8x17x3xbf16> to vector<8x16x3xbf16>
    %34 = vector.shape_cast %33 : vector<8x16x3xbf16> to vector<128x3xbf16>
    %c0_15 = arith.constant 0 : index
    %c0_16 = arith.constant 0 : index
    %c0_17 = arith.constant 0 : index
    %35 = vector.load %arg6[%c0_15, %c0_16, %c0_17] : memref<9x3x4xbf16, #tpu.memory_space<vmem>>, vector<1x3x4xbf16>
    %36 = vector.shape_cast %35 : vector<1x3x4xbf16> to vector<3x4xbf16>
    %cst_18 = arith.constant dense<0.000000e+00> : vector<128x4xf32>
    %37 = tpu.matmul %34, %36, %cst_18 {dimension_numbers = #tpu.dot_dimension_numbers<[1], [0], [0], [1], [0, 0, 1, 1], [], []>} : vector<128x3xbf16>, vector<3x4xbf16>, vector<128x4xf32> -> vector<128x4xf32>
    %38 = arith.addf %32, %37 : vector<128x4xf32>
    %39 = vector.extract_strided_slice %23 {offsets = [0, 0, 0], sizes = [8, 16, 3], strides = [1, 1, 1]} : vector<8x17x3xbf16> to vector<8x16x3xbf16>
    %40 = vector.shape_cast %39 : vector<8x16x3xbf16> to vector<128x3xbf16>
    %c1 = arith.constant 1 : index
    %c0_19 = arith.constant 0 : index
    %c0_20 = arith.constant 0 : index
    %41 = vector.load %arg6[%c1, %c0_19, %c0_20] : memref<9x3x4xbf16, #tpu.memory_space<vmem>>, vector<1x3x4xbf16>
    %42 = vector.shape_cast %41 : vector<1x3x4xbf16> to vector<3x4xbf16>
    %cst_21 = arith.constant dense<0.000000e+00> : vector<128x4xf32>
    %43 = tpu.matmul %40, %42, %cst_21 {dimension_numbers = #tpu.dot_dimension_numbers<[1], [0], [0], [1], [0, 0, 1, 1], [], []>} : vector<128x3xbf16>, vector<3x4xbf16>, vector<128x4xf32> -> vector<128x4xf32>
    %44 = arith.addf %38, %43 : vector<128x4xf32>
    %45 = vector.extract_strided_slice %25 {offsets = [0, 1, 0], sizes = [8, 16, 3], strides = [1, 1, 1]} : vector<8x17x3xbf16> to vector<8x16x3xbf16>
    %46 = vector.shape_cast %45 : vector<8x16x3xbf16> to vector<128x3xbf16>
    %c2 = arith.constant 2 : index
    %c0_22 = arith.constant 0 : index
    %c0_23 = arith.constant 0 : index
    %47 = vector.load %arg6[%c2, %c0_22, %c0_23] : memref<9x3x4xbf16, #tpu.memory_space<vmem>>, vector<1x3x4xbf16>
    %48 = vector.shape_cast %47 : vector<1x3x4xbf16> to vector<3x4xbf16>
    %cst_24 = arith.constant dense<0.000000e+00> : vector<128x4xf32>
    %49 = tpu.matmul %46, %48, %cst_24 {dimension_numbers = #tpu.dot_dimension_numbers<[1], [0], [0], [1], [0, 0, 1, 1], [], []>} : vector<128x3xbf16>, vector<3x4xbf16>, vector<128x4xf32> -> vector<128x4xf32>
    %50 = arith.addf %44, %49 : vector<128x4xf32>
    %51 = vector.extract_strided_slice %27 {offsets = [0, 0, 0], sizes = [8, 16, 3], strides = [1, 1, 1]} : vector<8x17x3xbf16> to vector<8x16x3xbf16>
    %52 = vector.shape_cast %51 : vector<8x16x3xbf16> to vector<128x3xbf16>
    %c3 = arith.constant 3 : index
    %c0_25 = arith.constant 0 : index
    %c0_26 = arith.constant 0 : index
    %53 = vector.load %arg6[%c3, %c0_25, %c0_26] : memref<9x3x4xbf16, #tpu.memory_space<vmem>>, vector<1x3x4xbf16>
    %54 = vector.shape_cast %53 : vector<1x3x4xbf16> to vector<3x4xbf16>
    %cst_27 = arith.constant dense<0.000000e+00> : vector<128x4xf32>
    %55 = tpu.matmul %52, %54, %cst_27 {dimension_numbers = #tpu.dot_dimension_numbers<[1], [0], [0], [1], [0, 0, 1, 1], [], []>} : vector<128x3xbf16>, vector<3x4xbf16>, vector<128x4xf32> -> vector<128x4xf32>
    %56 = arith.addf %50, %55 : vector<128x4xf32>
    %57 = vector.extract_strided_slice %29 {offsets = [0, 0, 0], sizes = [8, 16, 3], strides = [1, 1, 1]} : vector<8x17x3xbf16> to vector<8x16x3xbf16>
    %58 = vector.shape_cast %57 : vector<8x16x3xbf16> to vector<128x3xbf16>
    %c4 = arith.constant 4 : index
    %c0_28 = arith.constant 0 : index
    %c0_29 = arith.constant 0 : index
    %59 = vector.load %arg6[%c4, %c0_28, %c0_29] : memref<9x3x4xbf16, #tpu.memory_space<vmem>>, vector<1x3x4xbf16>
    %60 = vector.shape_cast %59 : vector<1x3x4xbf16> to vector<3x4xbf16>
    %cst_30 = arith.constant dense<0.000000e+00> : vector<128x4xf32>
    %61 = tpu.matmul %58, %60, %cst_30 {dimension_numbers = #tpu.dot_dimension_numbers<[1], [0], [0], [1], [0, 0, 1, 1], [], []>} : vector<128x3xbf16>, vector<3x4xbf16>, vector<128x4xf32> -> vector<128x4xf32>
    %62 = arith.addf %56, %61 : vector<128x4xf32>
    %63 = vector.extract_strided_slice %31 {offsets = [0, 1, 0], sizes = [8, 16, 3], strides = [1, 1, 1]} : vector<8x17x3xbf16> to vector<8x16x3xbf16>
    %64 = vector.shape_cast %63 : vector<8x16x3xbf16> to vector<128x3xbf16>
    %c5 = arith.constant 5 : index
    %c0_31 = arith.constant 0 : index
    %c0_32 = arith.constant 0 : index
    %65 = vector.load %arg6[%c5, %c0_31, %c0_32] : memref<9x3x4xbf16, #tpu.memory_space<vmem>>, vector<1x3x4xbf16>
    %66 = vector.shape_cast %65 : vector<1x3x4xbf16> to vector<3x4xbf16>
    %cst_33 = arith.constant dense<0.000000e+00> : vector<128x4xf32>
    %67 = tpu.matmul %64, %66, %cst_33 {dimension_numbers = #tpu.dot_dimension_numbers<[1], [0], [0], [1], [0, 0, 1, 1], [], []>} : vector<128x3xbf16>, vector<3x4xbf16>, vector<128x4xf32> -> vector<128x4xf32>
    %68 = arith.addf %62, %67 : vector<128x4xf32>
    %69 = vector.extract_strided_slice %12 {offsets = [0, 0, 0], sizes = [8, 16, 3], strides = [1, 1, 1]} : vector<8x17x3xbf16> to vector<8x16x3xbf16>
    %70 = vector.shape_cast %69 : vector<8x16x3xbf16> to vector<128x3xbf16>
    %c6 = arith.constant 6 : index
    %c0_34 = arith.constant 0 : index
    %c0_35 = arith.constant 0 : index
    %71 = vector.load %arg6[%c6, %c0_34, %c0_35] : memref<9x3x4xbf16, #tpu.memory_space<vmem>>, vector<1x3x4xbf16>
    %72 = vector.shape_cast %71 : vector<1x3x4xbf16> to vector<3x4xbf16>
    %cst_36 = arith.constant dense<0.000000e+00> : vector<128x4xf32>
    %73 = tpu.matmul %70, %72, %cst_36 {dimension_numbers = #tpu.dot_dimension_numbers<[1], [0], [0], [1], [0, 0, 1, 1], [], []>} : vector<128x3xbf16>, vector<3x4xbf16>, vector<128x4xf32> -> vector<128x4xf32>
    %74 = arith.addf %68, %73 : vector<128x4xf32>
    %75 = vector.extract_strided_slice %19 {offsets = [0, 0, 0], sizes = [8, 16, 3], strides = [1, 1, 1]} : vector<8x17x3xbf16> to vector<8x16x3xbf16>
    %76 = vector.shape_cast %75 : vector<8x16x3xbf16> to vector<128x3xbf16>
    %c7 = arith.constant 7 : index
    %c0_37 = arith.constant 0 : index
    %c0_38 = arith.constant 0 : index
    %77 = vector.load %arg6[%c7, %c0_37, %c0_38] : memref<9x3x4xbf16, #tpu.memory_space<vmem>>, vector<1x3x4xbf16>
    %78 = vector.shape_cast %77 : vector<1x3x4xbf16> to vector<3x4xbf16>
    %cst_39 = arith.constant dense<0.000000e+00> : vector<128x4xf32>
    %79 = tpu.matmul %76, %78, %cst_39 {dimension_numbers = #tpu.dot_dimension_numbers<[1], [0], [0], [1], [0, 0, 1, 1], [], []>} : vector<128x3xbf16>, vector<3x4xbf16>, vector<128x4xf32> -> vector<128x4xf32>
    %80 = arith.addf %74, %79 : vector<128x4xf32>
    %81 = vector.extract_strided_slice %12 {offsets = [0, 1, 0], sizes = [8, 16, 3], strides = [1, 1, 1]} : vector<8x17x3xbf16> to vector<8x16x3xbf16>
    %82 = vector.shape_cast %81 : vector<8x16x3xbf16> to vector<128x3xbf16>
    %c8 = arith.constant 8 : index
    %c0_40 = arith.constant 0 : index
    %c0_41 = arith.constant 0 : index
    %83 = vector.load %arg6[%c8, %c0_40, %c0_41] : memref<9x3x4xbf16, #tpu.memory_space<vmem>>, vector<1x3x4xbf16>
    %84 = vector.shape_cast %83 : vector<1x3x4xbf16> to vector<3x4xbf16>
    %cst_42 = arith.constant dense<0.000000e+00> : vector<128x4xf32>
    %85 = tpu.matmul %82, %84, %cst_42 {dimension_numbers = #tpu.dot_dimension_numbers<[1], [0], [0], [1], [0, 0, 1, 1], [], []>} : vector<128x3xbf16>, vector<3x4xbf16>, vector<128x4xf32> -> vector<128x4xf32>
    %86 = arith.addf %80, %85 : vector<128x4xf32>
    %c0_43 = arith.constant 0 : index
    %c0_44 = arith.constant 0 : index
    %87 = vector.load %arg7[%c0_43, %c0_44] : memref<1x4xf32, #tpu.memory_space<vmem>>, vector<1x4xf32>
    %88 = vector.broadcast %87 : vector<1x4xf32> to vector<128x4xf32>
    %89 = arith.mulf %86, %88 : vector<128x4xf32>
    %c0_45 = arith.constant 0 : index
    %c0_46 = arith.constant 0 : index
    %90 = vector.load %arg8[%c0_45, %c0_46] : memref<1x4xf32, #tpu.memory_space<vmem>>, vector<1x4xf32>
    %91 = vector.broadcast %90 : vector<1x4xf32> to vector<128x4xf32>
    %92 = arith.addf %89, %91 : vector<128x4xf32>
    %cst_47 = arith.constant 5.000000e-01 : f32
    %93 = vector.broadcast %cst_47 : f32 to vector<128x4xf32>
    %94 = arith.mulf %93, %92 : vector<128x4xf32>
    %cst_48 = arith.constant 0.707106769 : f32
    %95 = vector.broadcast %cst_48 : f32 to vector<128x4xf32>
    %96 = arith.mulf %92, %95 : vector<128x4xf32>
    %97 = math.erf %96 : vector<128x4xf32>
    %cst_49 = arith.constant 1.000000e+00 : f32
    %98 = vector.broadcast %cst_49 : f32 to vector<128x4xf32>
    %99 = arith.addf %98, %97 : vector<128x4xf32>
    %100 = arith.mulf %94, %99 : vector<128x4xf32>
    %101 = vector.shape_cast %100 : vector<128x4xf32> to vector<8x16x4xf32>
    %102 = arith.truncf %101 : vector<8x16x4xf32> to vector<8x16x4xbf16>
    %c0_50 = arith.constant 0 : index
    %c0_51 = arith.constant 0 : index
    %c0_52 = arith.constant 0 : index
    %c0_53 = arith.constant 0 : index
    %103 = vector.load %arg9[%c0_50, %c0_51, %c0_52, %c0_53] : memref<1x8x16x4xbf16, #tpu.memory_space<vmem>>, vector<1x8x16x4xbf16>
    %104 = vector.shape_cast %103 : vector<1x8x16x4xbf16> to vector<8x16x4xbf16>
    %105 = vector.shape_cast %102 : vector<8x16x4xbf16> to vector<1x8x16x4xbf16>
    tpu.vector_store %arg9[%c0_50, %c0_51, %c0_52, %c0_53], %105 {strides = array<i32>} : memref<1x8x16x4xbf16, #tpu.memory_space<vmem>>, vector<1x8x16x4xbf16>,
    return
  }
  func.func @transform_0(%arg0: i32, %arg1: i32) -> (i32, i32, i32, i32) {
    %c0_i32 = arith.constant 0 : i32
    %c0_i32_0 = arith.constant 0 : i32
    %c0_i32_1 = arith.constant 0 : i32
    return %arg0, %arg1, %c0_i32, %c0_i32_0 : i32, i32, i32, i32
  }
  func.func @transform_1(%arg0: i32, %arg1: i32) -> (i32, i32, i32, i32) {
    %c1_i32 = arith.constant 1 : i32
    %0 = arith.addi %arg1, %c1_i32 : i32
    %c16_i32 = arith.constant 16 : i32
    %1 = arith.muli %c16_i32, %0 : i32
    %c0_i32 = arith.constant 0 : i32
    %c0_i32_0 = arith.constant 0 : i32
    %c0_i32_1 = arith.constant 0 : i32
    return %arg0, %1, %c0_i32, %c0_i32_0 : i32, i32, i32, i32
  }
  func.func @transform_2(%arg0: i32, %arg1: i32) -> (i32, i32, i32, i32) {
    %c0_i32 = arith.constant 0 : i32
    %c0_i32_0 = arith.constant 0 : i32
    %c0_i32_1 = arith.constant 0 : i32
    return %arg0, %arg1, %c0_i32, %c0_i32_0 : i32, i32, i32, i32
  }
  func.func @transform_3(%arg0: i32, %arg1: i32) -> (i32, i32, i32, i32) {
    %c1_i32 = arith.constant 1 : i32
    %0 = arith.addi %arg1, %c1_i32 : i32
    %c16_i32 = arith.constant 16 : i32
    %1 = arith.muli %c16_i32, %0 : i32
    %c0_i32 = arith.constant 0 : i32
    %c0_i32_0 = arith.constant 0 : i32
    %c0_i32_1 = arith.constant 0 : i32
    return %arg0, %1, %c0_i32, %c0_i32_0 : i32, i32, i32, i32
  }
  func.func @transform_4(%arg0: i32, %arg1: i32) -> (i32, i32, i32) {
    %c0_i32 = arith.constant 0 : i32
    %c0_i32_0 = arith.constant 0 : i32
    %c0_i32_1 = arith.constant 0 : i32
    %c0_i32_2 = arith.constant 0 : i32
    return %c0_i32, %c0_i32_0, %c0_i32_1 : i32, i32, i32
  }
  func.func @transform_5(%arg0: i32, %arg1: i32) -> (i32, i32) {
    %c0_i32 = arith.constant 0 : i32
    %c0_i32_0 = arith.constant 0 : i32
    %c0_i32_1 = arith.constant 0 : i32
    return %c0_i32, %c0_i32_0 : i32, i32
  }
  func.func @transform_6(%arg0: i32, %arg1: i32) -> (i32, i32) {
    %c0_i32 = arith.constant 0 : i32
    %c0_i32_0 = arith.constant 0 : i32
    %c0_i32_1 = arith.constant 0 : i32
    return %c0_i32, %c0_i32_0 : i32, i32
  }
  func.func @transform_7(%arg0: i32, %arg1: i32) -> (i32, i32, i32, i32) {
    %c0_i32 = arith.constant 0 : i32
    %c0_i32_0 = arith.constant 0 : i32
    %c0_i32_1 = arith.constant 0 : i32
    return %arg0, %arg1, %c0_i32, %c0_i32_0 : i32, i32, i32, i32
  }
}

module attributes {stable_mosaic.version = 11 : i64} {
  func.func @_conv_kernel(%arg0: i32, %arg1: i32, %arg2: memref<1x16x9x4xbf16, #tpu.memory_space<vmem>>, %arg3: memref<1x1x9x4xbf16, #tpu.memory_space<vmem>>, %arg4: memref<1x16x9x4xbf16, #tpu.memory_space<vmem>>, %arg5: memref<1x1x9x4xbf16, #tpu.memory_space<vmem>>, %arg6: memref<9x4x8xbf16, #tpu.memory_space<vmem>>, %arg7: memref<1x8xf32, #tpu.memory_space<vmem>>, %arg8: memref<1x8xf32, #tpu.memory_space<vmem>>, %arg9: memref<1x8x8x8xbf16, #tpu.memory_space<vmem>>) attributes {dimension_semantics = [#tpu.dimension_semantics<parallel>, #tpu.dimension_semantics<parallel>], iteration_bounds = array<i64: 2, 1>, scalar_prefetch = 0 : i64, scratch_operands = 0 : i64, tpu.core_type = #tpu.core_type<tc>, window_params = [{transform_indices = @transform_0, window_bounds = array<i64: 1, 16, 9, 4>}, {transform_indices = @transform_1, window_bounds = array<i64: 1, 1, 9, 4>}, {transform_indices = @transform_2, window_bounds = array<i64: 1, 16, 9, 4>}, {transform_indices = @transform_3, window_bounds = array<i64: 1, 1, 9, 4>}, {pipeline_mode = #tpu.pipeline_mode<synchronous>, transform_indices = @transform_4, window_bounds = array<i64: 9, 4, 8>}, {pipeline_mode = #tpu.pipeline_mode<synchronous>, transform_indices = @transform_5, window_bounds = array<i64: 1, 8>}, {pipeline_mode = #tpu.pipeline_mode<synchronous>, transform_indices = @transform_6, window_bounds = array<i64: 1, 8>}, {transform_indices = @transform_7, window_bounds = array<i64: 1, 8, 8, 8>}]} {
    %c0 = arith.constant 0 : index
    %c0_0 = arith.constant 0 : index
    %c0_1 = arith.constant 0 : index
    %c0_2 = arith.constant 0 : index
    %0 = vector.load %arg2[%c0, %c0_0, %c0_1, %c0_2] : memref<1x16x9x4xbf16, #tpu.memory_space<vmem>>, vector<1x16x9x4xbf16>
    %1 = vector.shape_cast %0 : vector<1x16x9x4xbf16> to vector<16x9x4xbf16>
    %c0_3 = arith.constant 0 : index
    %c0_4 = arith.constant 0 : index
    %c0_5 = arith.constant 0 : index
    %c0_6 = arith.constant 0 : index
    %2 = vector.load %arg4[%c0_3, %c0_4, %c0_5, %c0_6] : memref<1x16x9x4xbf16, #tpu.memory_space<vmem>>, vector<1x16x9x4xbf16>
    %3 = vector.shape_cast %2 : vector<1x16x9x4xbf16> to vector<16x9x4xbf16>
    %4 = vector.shape_cast %1 : vector<16x9x4xbf16> to vector<8x2x9x4xbf16>
    %5 = vector.shape_cast %3 : vector<16x9x4xbf16> to vector<8x2x9x4xbf16>
    %6 = vector.extract_strided_slice %1 {offsets = [2, 0, 0], sizes = [14, 9, 4], strides = [1, 1, 1]} : vector<16x9x4xbf16> to vector<14x9x4xbf16>
    %7 = vector.shape_cast %6 : vector<14x9x4xbf16> to vector<7x2x9x4xbf16>
    %8 = vector.extract_strided_slice %7 {offsets = [0, 0, 0, 0], sizes = [7, 1, 9, 4], strides = [1, 1, 1, 1]} : vector<7x2x9x4xbf16> to vector<7x1x9x4xbf16>
    %9 = vector.shape_cast %8 : vector<7x1x9x4xbf16> to vector<7x9x4xbf16>
    %c0_7 = arith.constant 0 : index
    %c0_8 = arith.constant 0 : index
    %c0_9 = arith.constant 0 : index
    %c0_10 = arith.constant 0 : index
    %10 = vector.load %arg3[%c0_7, %c0_8, %c0_9, %c0_10] : memref<1x1x9x4xbf16, #tpu.memory_space<vmem>>, vector<1x1x9x4xbf16>
    %11 = vector.shape_cast %10 : vector<1x1x9x4xbf16> to vector<1x9x4xbf16>
    %12 = tpu.concatenate %9, %11 in 0 : vector<7x9x4xbf16>, vector<1x9x4xbf16> -> vector<8x9x4xbf16>
    %13 = vector.extract_strided_slice %3 {offsets = [2, 0, 0], sizes = [14, 9, 4], strides = [1, 1, 1]} : vector<16x9x4xbf16> to vector<14x9x4xbf16>
    %14 = vector.shape_cast %13 : vector<14x9x4xbf16> to vector<7x2x9x4xbf16>
    %15 = vector.extract_strided_slice %14 {offsets = [0, 0, 0, 0], sizes = [7, 1, 9, 4], strides = [1, 1, 1, 1]} : vector<7x2x9x4xbf16> to vector<7x1x9x4xbf16>
    %16 = vector.shape_cast %15 : vector<7x1x9x4xbf16> to vector<7x9x4xbf16>
    %c0_11 = arith.constant 0 : index
    %c0_12 = arith.constant 0 : index
    %c0_13 = arith.constant 0 : index
    %c0_14 = arith.constant 0 : index
    %17 = vector.load %arg5[%c0_11, %c0_12, %c0_13, %c0_14] : memref<1x1x9x4xbf16, #tpu.memory_space<vmem>>, vector<1x1x9x4xbf16>
    %18 = vector.shape_cast %17 : vector<1x1x9x4xbf16> to vector<1x9x4xbf16>
    %19 = tpu.concatenate %16, %18 in 0 : vector<7x9x4xbf16>, vector<1x9x4xbf16> -> vector<8x9x4xbf16>
    %20 = vector.extract_strided_slice %4 {offsets = [0, 0, 0, 0], sizes = [8, 1, 9, 4], strides = [1, 1, 1, 1]} : vector<8x2x9x4xbf16> to vector<8x1x9x4xbf16>
    %21 = vector.shape_cast %20 : vector<8x1x9x4xbf16> to vector<8x9x4xbf16>
    %22 = vector.extract_strided_slice %5 {offsets = [0, 0, 0, 0], sizes = [8, 1, 9, 4], strides = [1, 1, 1, 1]} : vector<8x2x9x4xbf16> to vector<8x1x9x4xbf16>
    %23 = vector.shape_cast %22 : vector<8x1x9x4xbf16> to vector<8x9x4xbf16>
    %24 = vector.extract_strided_slice %4 {offsets = [0, 0, 0, 0], sizes = [8, 1, 9, 4], strides = [1, 1, 1, 1]} : vector<8x2x9x4xbf16> to vector<8x1x9x4xbf16>
    %25 = vector.shape_cast %24 : vector<8x1x9x4xbf16> to vector<8x9x4xbf16>
    %26 = vector.extract_strided_slice %4 {offsets = [0, 1, 0, 0], sizes = [8, 1, 9, 4], strides = [1, 1, 1, 1]} : vector<8x2x9x4xbf16> to vector<8x1x9x4xbf16>
    %27 = vector.shape_cast %26 : vector<8x1x9x4xbf16> to vector<8x9x4xbf16>
    %28 = vector.extract_strided_slice %5 {offsets = [0, 1, 0, 0], sizes = [8, 1, 9, 4], strides = [1, 1, 1, 1]} : vector<8x2x9x4xbf16> to vector<8x1x9x4xbf16>
    %29 = vector.shape_cast %28 : vector<8x1x9x4xbf16> to vector<8x9x4xbf16>
    %30 = vector.extract_strided_slice %4 {offsets = [0, 1, 0, 0], sizes = [8, 1, 9, 4], strides = [1, 1, 1, 1]} : vector<8x2x9x4xbf16> to vector<8x1x9x4xbf16>
    %31 = vector.shape_cast %30 : vector<8x1x9x4xbf16> to vector<8x9x4xbf16>
    %cst = arith.constant 0.000000e+00 : f32
    %32 = vector.broadcast %cst : f32 to vector<64x8xf32>
    %33 = vector.extract_strided_slice %21 {offsets = [0, 0, 0], sizes = [8, 8, 4], strides = [1, 1, 1]} : vector<8x9x4xbf16> to vector<8x8x4xbf16>
    %34 = vector.shape_cast %33 : vector<8x8x4xbf16> to vector<64x4xbf16>
    %c0_15 = arith.constant 0 : index
    %c0_16 = arith.constant 0 : index
    %c0_17 = arith.constant 0 : index
    %35 = vector.load %arg6[%c0_15, %c0_16, %c0_17] : memref<9x4x8xbf16, #tpu.memory_space<vmem>>, vector<1x4x8xbf16>
    %36 = vector.shape_cast %35 : vector<1x4x8xbf16> to vector<4x8xbf16>
    %cst_18 = arith.constant dense<0.000000e+00> : vector<64x8xf32>
    %37 = tpu.matmul %34, %36, %cst_18 {dimension_numbers = #tpu.dot_dimension_numbers<[1], [0], [0], [1], [0, 0, 1, 1], [], []>} : vector<64x4xbf16>, vector<4x8xbf16>, vector<64x8xf32> -> vector<64x8xf32>
    %38 = arith.addf %32, %37 : vector<64x8xf32>
    %39 = vector.extract_strided_slice %23 {offsets = [0, 0, 0], sizes = [8, 8, 4], strides = [1, 1, 1]} : vector<8x9x4xbf16> to vector<8x8x4xbf16>
    %40 = vector.shape_cast %39 : vector<8x8x4xbf16> to vector<64x4xbf16>
    %c1 = arith.constant 1 : index
    %c0_19 = arith.constant 0 : index
    %c0_20 = arith.constant 0 : index
    %41 = vector.load %arg6[%c1, %c0_19, %c0_20] : memref<9x4x8xbf16, #tpu.memory_space<vmem>>, vector<1x4x8xbf16>
    %42 = vector.shape_cast %41 : vector<1x4x8xbf16> to vector<4x8xbf16>
    %cst_21 = arith.constant dense<0.000000e+00> : vector<64x8xf32>
    %43 = tpu.matmul %40, %42, %cst_21 {dimension_numbers = #tpu.dot_dimension_numbers<[1], [0], [0], [1], [0, 0, 1, 1], [], []>} : vector<64x4xbf16>, vector<4x8xbf16>, vector<64x8xf32> -> vector<64x8xf32>
    %44 = arith.addf %38, %43 : vector<64x8xf32>
    %45 = vector.extract_strided_slice %25 {offsets = [0, 1, 0], sizes = [8, 8, 4], strides = [1, 1, 1]} : vector<8x9x4xbf16> to vector<8x8x4xbf16>
    %46 = vector.shape_cast %45 : vector<8x8x4xbf16> to vector<64x4xbf16>
    %c2 = arith.constant 2 : index
    %c0_22 = arith.constant 0 : index
    %c0_23 = arith.constant 0 : index
    %47 = vector.load %arg6[%c2, %c0_22, %c0_23] : memref<9x4x8xbf16, #tpu.memory_space<vmem>>, vector<1x4x8xbf16>
    %48 = vector.shape_cast %47 : vector<1x4x8xbf16> to vector<4x8xbf16>
    %cst_24 = arith.constant dense<0.000000e+00> : vector<64x8xf32>
    %49 = tpu.matmul %46, %48, %cst_24 {dimension_numbers = #tpu.dot_dimension_numbers<[1], [0], [0], [1], [0, 0, 1, 1], [], []>} : vector<64x4xbf16>, vector<4x8xbf16>, vector<64x8xf32> -> vector<64x8xf32>
    %50 = arith.addf %44, %49 : vector<64x8xf32>
    %51 = vector.extract_strided_slice %27 {offsets = [0, 0, 0], sizes = [8, 8, 4], strides = [1, 1, 1]} : vector<8x9x4xbf16> to vector<8x8x4xbf16>
    %52 = vector.shape_cast %51 : vector<8x8x4xbf16> to vector<64x4xbf16>
    %c3 = arith.constant 3 : index
    %c0_25 = arith.constant 0 : index
    %c0_26 = arith.constant 0 : index
    %53 = vector.load %arg6[%c3, %c0_25, %c0_26] : memref<9x4x8xbf16, #tpu.memory_space<vmem>>, vector<1x4x8xbf16>
    %54 = vector.shape_cast %53 : vector<1x4x8xbf16> to vector<4x8xbf16>
    %cst_27 = arith.constant dense<0.000000e+00> : vector<64x8xf32>
    %55 = tpu.matmul %52, %54, %cst_27 {dimension_numbers = #tpu.dot_dimension_numbers<[1], [0], [0], [1], [0, 0, 1, 1], [], []>} : vector<64x4xbf16>, vector<4x8xbf16>, vector<64x8xf32> -> vector<64x8xf32>
    %56 = arith.addf %50, %55 : vector<64x8xf32>
    %57 = vector.extract_strided_slice %29 {offsets = [0, 0, 0], sizes = [8, 8, 4], strides = [1, 1, 1]} : vector<8x9x4xbf16> to vector<8x8x4xbf16>
    %58 = vector.shape_cast %57 : vector<8x8x4xbf16> to vector<64x4xbf16>
    %c4 = arith.constant 4 : index
    %c0_28 = arith.constant 0 : index
    %c0_29 = arith.constant 0 : index
    %59 = vector.load %arg6[%c4, %c0_28, %c0_29] : memref<9x4x8xbf16, #tpu.memory_space<vmem>>, vector<1x4x8xbf16>
    %60 = vector.shape_cast %59 : vector<1x4x8xbf16> to vector<4x8xbf16>
    %cst_30 = arith.constant dense<0.000000e+00> : vector<64x8xf32>
    %61 = tpu.matmul %58, %60, %cst_30 {dimension_numbers = #tpu.dot_dimension_numbers<[1], [0], [0], [1], [0, 0, 1, 1], [], []>} : vector<64x4xbf16>, vector<4x8xbf16>, vector<64x8xf32> -> vector<64x8xf32>
    %62 = arith.addf %56, %61 : vector<64x8xf32>
    %63 = vector.extract_strided_slice %31 {offsets = [0, 1, 0], sizes = [8, 8, 4], strides = [1, 1, 1]} : vector<8x9x4xbf16> to vector<8x8x4xbf16>
    %64 = vector.shape_cast %63 : vector<8x8x4xbf16> to vector<64x4xbf16>
    %c5 = arith.constant 5 : index
    %c0_31 = arith.constant 0 : index
    %c0_32 = arith.constant 0 : index
    %65 = vector.load %arg6[%c5, %c0_31, %c0_32] : memref<9x4x8xbf16, #tpu.memory_space<vmem>>, vector<1x4x8xbf16>
    %66 = vector.shape_cast %65 : vector<1x4x8xbf16> to vector<4x8xbf16>
    %cst_33 = arith.constant dense<0.000000e+00> : vector<64x8xf32>
    %67 = tpu.matmul %64, %66, %cst_33 {dimension_numbers = #tpu.dot_dimension_numbers<[1], [0], [0], [1], [0, 0, 1, 1], [], []>} : vector<64x4xbf16>, vector<4x8xbf16>, vector<64x8xf32> -> vector<64x8xf32>
    %68 = arith.addf %62, %67 : vector<64x8xf32>
    %69 = vector.extract_strided_slice %12 {offsets = [0, 0, 0], sizes = [8, 8, 4], strides = [1, 1, 1]} : vector<8x9x4xbf16> to vector<8x8x4xbf16>
    %70 = vector.shape_cast %69 : vector<8x8x4xbf16> to vector<64x4xbf16>
    %c6 = arith.constant 6 : index
    %c0_34 = arith.constant 0 : index
    %c0_35 = arith.constant 0 : index
    %71 = vector.load %arg6[%c6, %c0_34, %c0_35] : memref<9x4x8xbf16, #tpu.memory_space<vmem>>, vector<1x4x8xbf16>
    %72 = vector.shape_cast %71 : vector<1x4x8xbf16> to vector<4x8xbf16>
    %cst_36 = arith.constant dense<0.000000e+00> : vector<64x8xf32>
    %73 = tpu.matmul %70, %72, %cst_36 {dimension_numbers = #tpu.dot_dimension_numbers<[1], [0], [0], [1], [0, 0, 1, 1], [], []>} : vector<64x4xbf16>, vector<4x8xbf16>, vector<64x8xf32> -> vector<64x8xf32>
    %74 = arith.addf %68, %73 : vector<64x8xf32>
    %75 = vector.extract_strided_slice %19 {offsets = [0, 0, 0], sizes = [8, 8, 4], strides = [1, 1, 1]} : vector<8x9x4xbf16> to vector<8x8x4xbf16>
    %76 = vector.shape_cast %75 : vector<8x8x4xbf16> to vector<64x4xbf16>
    %c7 = arith.constant 7 : index
    %c0_37 = arith.constant 0 : index
    %c0_38 = arith.constant 0 : index
    %77 = vector.load %arg6[%c7, %c0_37, %c0_38] : memref<9x4x8xbf16, #tpu.memory_space<vmem>>, vector<1x4x8xbf16>
    %78 = vector.shape_cast %77 : vector<1x4x8xbf16> to vector<4x8xbf16>
    %cst_39 = arith.constant dense<0.000000e+00> : vector<64x8xf32>
    %79 = tpu.matmul %76, %78, %cst_39 {dimension_numbers = #tpu.dot_dimension_numbers<[1], [0], [0], [1], [0, 0, 1, 1], [], []>} : vector<64x4xbf16>, vector<4x8xbf16>, vector<64x8xf32> -> vector<64x8xf32>
    %80 = arith.addf %74, %79 : vector<64x8xf32>
    %81 = vector.extract_strided_slice %12 {offsets = [0, 1, 0], sizes = [8, 8, 4], strides = [1, 1, 1]} : vector<8x9x4xbf16> to vector<8x8x4xbf16>
    %82 = vector.shape_cast %81 : vector<8x8x4xbf16> to vector<64x4xbf16>
    %c8 = arith.constant 8 : index
    %c0_40 = arith.constant 0 : index
    %c0_41 = arith.constant 0 : index
    %83 = vector.load %arg6[%c8, %c0_40, %c0_41] : memref<9x4x8xbf16, #tpu.memory_space<vmem>>, vector<1x4x8xbf16>
    %84 = vector.shape_cast %83 : vector<1x4x8xbf16> to vector<4x8xbf16>
    %cst_42 = arith.constant dense<0.000000e+00> : vector<64x8xf32>
    %85 = tpu.matmul %82, %84, %cst_42 {dimension_numbers = #tpu.dot_dimension_numbers<[1], [0], [0], [1], [0, 0, 1, 1], [], []>} : vector<64x4xbf16>, vector<4x8xbf16>, vector<64x8xf32> -> vector<64x8xf32>
    %86 = arith.addf %80, %85 : vector<64x8xf32>
    %c0_43 = arith.constant 0 : index
    %c0_44 = arith.constant 0 : index
    %87 = vector.load %arg7[%c0_43, %c0_44] : memref<1x8xf32, #tpu.memory_space<vmem>>, vector<1x8xf32>
    %88 = vector.broadcast %87 : vector<1x8xf32> to vector<64x8xf32>
    %89 = arith.mulf %86, %88 : vector<64x8xf32>
    %c0_45 = arith.constant 0 : index
    %c0_46 = arith.constant 0 : index
    %90 = vector.load %arg8[%c0_45, %c0_46] : memref<1x8xf32, #tpu.memory_space<vmem>>, vector<1x8xf32>
    %91 = vector.broadcast %90 : vector<1x8xf32> to vector<64x8xf32>
    %92 = arith.addf %89, %91 : vector<64x8xf32>
    %cst_47 = arith.constant 5.000000e-01 : f32
    %93 = vector.broadcast %cst_47 : f32 to vector<64x8xf32>
    %94 = arith.mulf %93, %92 : vector<64x8xf32>
    %cst_48 = arith.constant 0.707106769 : f32
    %95 = vector.broadcast %cst_48 : f32 to vector<64x8xf32>
    %96 = arith.mulf %92, %95 : vector<64x8xf32>
    %97 = math.erf %96 : vector<64x8xf32>
    %cst_49 = arith.constant 1.000000e+00 : f32
    %98 = vector.broadcast %cst_49 : f32 to vector<64x8xf32>
    %99 = arith.addf %98, %97 : vector<64x8xf32>
    %100 = arith.mulf %94, %99 : vector<64x8xf32>
    %101 = vector.shape_cast %100 : vector<64x8xf32> to vector<8x8x8xf32>
    %102 = arith.truncf %101 : vector<8x8x8xf32> to vector<8x8x8xbf16>
    %c0_50 = arith.constant 0 : index
    %c0_51 = arith.constant 0 : index
    %c0_52 = arith.constant 0 : index
    %c0_53 = arith.constant 0 : index
    %103 = vector.load %arg9[%c0_50, %c0_51, %c0_52, %c0_53] : memref<1x8x8x8xbf16, #tpu.memory_space<vmem>>, vector<1x8x8x8xbf16>
    %104 = vector.shape_cast %103 : vector<1x8x8x8xbf16> to vector<8x8x8xbf16>
    %105 = vector.shape_cast %102 : vector<8x8x8xbf16> to vector<1x8x8x8xbf16>
    tpu.vector_store %arg9[%c0_50, %c0_51, %c0_52, %c0_53], %105 {strides = array<i32>} : memref<1x8x8x8xbf16, #tpu.memory_space<vmem>>, vector<1x8x8x8xbf16>,
    return
  }
  func.func @transform_0(%arg0: i32, %arg1: i32) -> (i32, i32, i32, i32) {
    %c0_i32 = arith.constant 0 : i32
    %c0_i32_0 = arith.constant 0 : i32
    %c0_i32_1 = arith.constant 0 : i32
    return %arg0, %arg1, %c0_i32, %c0_i32_0 : i32, i32, i32, i32
  }
  func.func @transform_1(%arg0: i32, %arg1: i32) -> (i32, i32, i32, i32) {
    %c1_i32 = arith.constant 1 : i32
    %0 = arith.addi %arg1, %c1_i32 : i32
    %c16_i32 = arith.constant 16 : i32
    %1 = arith.muli %c16_i32, %0 : i32
    %c0_i32 = arith.constant 0 : i32
    %c0_i32_0 = arith.constant 0 : i32
    %c0_i32_1 = arith.constant 0 : i32
    return %arg0, %1, %c0_i32, %c0_i32_0 : i32, i32, i32, i32
  }
  func.func @transform_2(%arg0: i32, %arg1: i32) -> (i32, i32, i32, i32) {
    %c0_i32 = arith.constant 0 : i32
    %c0_i32_0 = arith.constant 0 : i32
    %c0_i32_1 = arith.constant 0 : i32
    return %arg0, %arg1, %c0_i32, %c0_i32_0 : i32, i32, i32, i32
  }
  func.func @transform_3(%arg0: i32, %arg1: i32) -> (i32, i32, i32, i32) {
    %c1_i32 = arith.constant 1 : i32
    %0 = arith.addi %arg1, %c1_i32 : i32
    %c16_i32 = arith.constant 16 : i32
    %1 = arith.muli %c16_i32, %0 : i32
    %c0_i32 = arith.constant 0 : i32
    %c0_i32_0 = arith.constant 0 : i32
    %c0_i32_1 = arith.constant 0 : i32
    return %arg0, %1, %c0_i32, %c0_i32_0 : i32, i32, i32, i32
  }
  func.func @transform_4(%arg0: i32, %arg1: i32) -> (i32, i32, i32) {
    %c0_i32 = arith.constant 0 : i32
    %c0_i32_0 = arith.constant 0 : i32
    %c0_i32_1 = arith.constant 0 : i32
    %c0_i32_2 = arith.constant 0 : i32
    return %c0_i32, %c0_i32_0, %c0_i32_1 : i32, i32, i32
  }
  func.func @transform_5(%arg0: i32, %arg1: i32) -> (i32, i32) {
    %c0_i32 = arith.constant 0 : i32
    %c0_i32_0 = arith.constant 0 : i32
    %c0_i32_1 = arith.constant 0 : i32
    return %c0_i32, %c0_i32_0 : i32, i32
  }
  func.func @transform_6(%arg0: i32, %arg1: i32) -> (i32, i32) {
    %c0_i32 = arith.constant 0 : i32
    %c0_i32_0 = arith.constant 0 : i32
    %c0_i32_1 = arith.constant 0 : i32
    return %c0_i32, %c0_i32_0 : i32, i32
  }
  func.func @transform_7(%arg0: i32, %arg1: i32) -> (i32, i32, i32, i32) {
    %c0_i32 = arith.constant 0 : i32
    %c0_i32_0 = arith.constant 0 : i32
    %c0_i32_1 = arith.constant 0 : i32
    return %arg0, %arg1, %c0_i32, %c0_i32_0 : i32, i32, i32, i32
  }
}

module attributes {stable_mosaic.version = 11 : i64} {
  func.func @_conv_kernel(%arg0: i32, %arg1: i32, %arg2: memref<1x8x9x8xbf16, #tpu.memory_space<vmem>>, %arg3: memref<1x1x9x8xbf16, #tpu.memory_space<vmem>>, %arg4: memref<1x8x9x8xbf16, #tpu.memory_space<vmem>>, %arg5: memref<1x1x9x8xbf16, #tpu.memory_space<vmem>>, %arg6: memref<9x8x16xbf16, #tpu.memory_space<vmem>>, %arg7: memref<1x16xf32, #tpu.memory_space<vmem>>, %arg8: memref<1x16xf32, #tpu.memory_space<vmem>>, %arg9: memref<1x4x8x16xbf16, #tpu.memory_space<vmem>>) attributes {dimension_semantics = [#tpu.dimension_semantics<parallel>, #tpu.dimension_semantics<parallel>], iteration_bounds = array<i64: 2, 1>, scalar_prefetch = 0 : i64, scratch_operands = 0 : i64, tpu.core_type = #tpu.core_type<tc>, window_params = [{transform_indices = @transform_0, window_bounds = array<i64: 1, 8, 9, 8>}, {transform_indices = @transform_1, window_bounds = array<i64: 1, 1, 9, 8>}, {transform_indices = @transform_2, window_bounds = array<i64: 1, 8, 9, 8>}, {transform_indices = @transform_3, window_bounds = array<i64: 1, 1, 9, 8>}, {pipeline_mode = #tpu.pipeline_mode<synchronous>, transform_indices = @transform_4, window_bounds = array<i64: 9, 8, 16>}, {pipeline_mode = #tpu.pipeline_mode<synchronous>, transform_indices = @transform_5, window_bounds = array<i64: 1, 16>}, {pipeline_mode = #tpu.pipeline_mode<synchronous>, transform_indices = @transform_6, window_bounds = array<i64: 1, 16>}, {transform_indices = @transform_7, window_bounds = array<i64: 1, 4, 8, 16>}]} {
    %c0 = arith.constant 0 : index
    %c0_0 = arith.constant 0 : index
    %c0_1 = arith.constant 0 : index
    %c0_2 = arith.constant 0 : index
    %0 = vector.load %arg2[%c0, %c0_0, %c0_1, %c0_2] : memref<1x8x9x8xbf16, #tpu.memory_space<vmem>>, vector<1x8x9x8xbf16>
    %1 = vector.shape_cast %0 : vector<1x8x9x8xbf16> to vector<8x9x8xbf16>
    %c0_3 = arith.constant 0 : index
    %c0_4 = arith.constant 0 : index
    %c0_5 = arith.constant 0 : index
    %c0_6 = arith.constant 0 : index
    %2 = vector.load %arg4[%c0_3, %c0_4, %c0_5, %c0_6] : memref<1x8x9x8xbf16, #tpu.memory_space<vmem>>, vector<1x8x9x8xbf16>
    %3 = vector.shape_cast %2 : vector<1x8x9x8xbf16> to vector<8x9x8xbf16>
    %4 = vector.shape_cast %1 : vector<8x9x8xbf16> to vector<4x2x9x8xbf16>
    %5 = vector.shape_cast %3 : vector<8x9x8xbf16> to vector<4x2x9x8xbf16>
    %6 = vector.extract_strided_slice %1 {offsets = [2, 0, 0], sizes = [6, 9, 8], strides = [1, 1, 1]} : vector<8x9x8xbf16> to vector<6x9x8xbf16>
    %7 = vector.shape_cast %6 : vector<6x9x8xbf16> to vector<3x2x9x8xbf16>
    %8 = vector.extract_strided_slice %7 {offsets = [0, 0, 0, 0], sizes = [3, 1, 9, 8], strides = [1, 1, 1, 1]} : vector<3x2x9x8xbf16> to vector<3x1x9x8xbf16>
    %9 = vector.shape_cast %8 : vector<3x1x9x8xbf16> to vector<3x9x8xbf16>
    %c0_7 = arith.constant 0 : index
    %c0_8 = arith.constant 0 : index
    %c0_9 = arith.constant 0 : index
    %c0_10 = arith.constant 0 : index
    %10 = vector.load %arg3[%c0_7, %c0_8, %c0_9, %c0_10] : memref<1x1x9x8xbf16, #tpu.memory_space<vmem>>, vector<1x1x9x8xbf16>
    %11 = vector.shape_cast %10 : vector<1x1x9x8xbf16> to vector<1x9x8xbf16>
    %12 = tpu.concatenate %9, %11 in 0 : vector<3x9x8xbf16>, vector<1x9x8xbf16> -> vector<4x9x8xbf16>
    %13 = vector.extract_strided_slice %3 {offsets = [2, 0, 0], sizes = [6, 9, 8], strides = [1, 1, 1]} : vector<8x9x8xbf16> to vector<6x9x8xbf16>
    %14 = vector.shape_cast %13 : vector<6x9x8xbf16> to vector<3x2x9x8xbf16>
    %15 = vector.extract_strided_slice %14 {offsets = [0, 0, 0, 0], sizes = [3, 1, 9, 8], strides = [1, 1, 1, 1]} : vector<3x2x9x8xbf16> to vector<3x1x9x8xbf16>
    %16 = vector.shape_cast %15 : vector<3x1x9x8xbf16> to vector<3x9x8xbf16>
    %c0_11 = arith.constant 0 : index
    %c0_12 = arith.constant 0 : index
    %c0_13 = arith.constant 0 : index
    %c0_14 = arith.constant 0 : index
    %17 = vector.load %arg5[%c0_11, %c0_12, %c0_13, %c0_14] : memref<1x1x9x8xbf16, #tpu.memory_space<vmem>>, vector<1x1x9x8xbf16>
    %18 = vector.shape_cast %17 : vector<1x1x9x8xbf16> to vector<1x9x8xbf16>
    %19 = tpu.concatenate %16, %18 in 0 : vector<3x9x8xbf16>, vector<1x9x8xbf16> -> vector<4x9x8xbf16>
    %20 = vector.extract_strided_slice %4 {offsets = [0, 0, 0, 0], sizes = [4, 1, 9, 8], strides = [1, 1, 1, 1]} : vector<4x2x9x8xbf16> to vector<4x1x9x8xbf16>
    %21 = vector.shape_cast %20 : vector<4x1x9x8xbf16> to vector<4x9x8xbf16>
    %22 = vector.extract_strided_slice %5 {offsets = [0, 0, 0, 0], sizes = [4, 1, 9, 8], strides = [1, 1, 1, 1]} : vector<4x2x9x8xbf16> to vector<4x1x9x8xbf16>
    %23 = vector.shape_cast %22 : vector<4x1x9x8xbf16> to vector<4x9x8xbf16>
    %24 = vector.extract_strided_slice %4 {offsets = [0, 0, 0, 0], sizes = [4, 1, 9, 8], strides = [1, 1, 1, 1]} : vector<4x2x9x8xbf16> to vector<4x1x9x8xbf16>
    %25 = vector.shape_cast %24 : vector<4x1x9x8xbf16> to vector<4x9x8xbf16>
    %26 = vector.extract_strided_slice %4 {offsets = [0, 1, 0, 0], sizes = [4, 1, 9, 8], strides = [1, 1, 1, 1]} : vector<4x2x9x8xbf16> to vector<4x1x9x8xbf16>
    %27 = vector.shape_cast %26 : vector<4x1x9x8xbf16> to vector<4x9x8xbf16>
    %28 = vector.extract_strided_slice %5 {offsets = [0, 1, 0, 0], sizes = [4, 1, 9, 8], strides = [1, 1, 1, 1]} : vector<4x2x9x8xbf16> to vector<4x1x9x8xbf16>
    %29 = vector.shape_cast %28 : vector<4x1x9x8xbf16> to vector<4x9x8xbf16>
    %30 = vector.extract_strided_slice %4 {offsets = [0, 1, 0, 0], sizes = [4, 1, 9, 8], strides = [1, 1, 1, 1]} : vector<4x2x9x8xbf16> to vector<4x1x9x8xbf16>
    %31 = vector.shape_cast %30 : vector<4x1x9x8xbf16> to vector<4x9x8xbf16>
    %cst = arith.constant 0.000000e+00 : f32
    %32 = vector.broadcast %cst : f32 to vector<32x16xf32>
    %33 = vector.extract_strided_slice %21 {offsets = [0, 0, 0], sizes = [4, 8, 8], strides = [1, 1, 1]} : vector<4x9x8xbf16> to vector<4x8x8xbf16>
    %34 = vector.shape_cast %33 : vector<4x8x8xbf16> to vector<32x8xbf16>
    %c0_15 = arith.constant 0 : index
    %c0_16 = arith.constant 0 : index
    %c0_17 = arith.constant 0 : index
    %35 = vector.load %arg6[%c0_15, %c0_16, %c0_17] : memref<9x8x16xbf16, #tpu.memory_space<vmem>>, vector<1x8x16xbf16>
    %36 = vector.shape_cast %35 : vector<1x8x16xbf16> to vector<8x16xbf16>
    %cst_18 = arith.constant dense<0.000000e+00> : vector<32x16xf32>
    %37 = tpu.matmul %34, %36, %cst_18 {dimension_numbers = #tpu.dot_dimension_numbers<[1], [0], [0], [1], [0, 0, 1, 1], [], []>} : vector<32x8xbf16>, vector<8x16xbf16>, vector<32x16xf32> -> vector<32x16xf32>
    %38 = arith.addf %32, %37 : vector<32x16xf32>
    %39 = vector.extract_strided_slice %23 {offsets = [0, 0, 0], sizes = [4, 8, 8], strides = [1, 1, 1]} : vector<4x9x8xbf16> to vector<4x8x8xbf16>
    %40 = vector.shape_cast %39 : vector<4x8x8xbf16> to vector<32x8xbf16>
    %c1 = arith.constant 1 : index
    %c0_19 = arith.constant 0 : index
    %c0_20 = arith.constant 0 : index
    %41 = vector.load %arg6[%c1, %c0_19, %c0_20] : memref<9x8x16xbf16, #tpu.memory_space<vmem>>, vector<1x8x16xbf16>
    %42 = vector.shape_cast %41 : vector<1x8x16xbf16> to vector<8x16xbf16>
    %cst_21 = arith.constant dense<0.000000e+00> : vector<32x16xf32>
    %43 = tpu.matmul %40, %42, %cst_21 {dimension_numbers = #tpu.dot_dimension_numbers<[1], [0], [0], [1], [0, 0, 1, 1], [], []>} : vector<32x8xbf16>, vector<8x16xbf16>, vector<32x16xf32> -> vector<32x16xf32>
    %44 = arith.addf %38, %43 : vector<32x16xf32>
    %45 = vector.extract_strided_slice %25 {offsets = [0, 1, 0], sizes = [4, 8, 8], strides = [1, 1, 1]} : vector<4x9x8xbf16> to vector<4x8x8xbf16>
    %46 = vector.shape_cast %45 : vector<4x8x8xbf16> to vector<32x8xbf16>
    %c2 = arith.constant 2 : index
    %c0_22 = arith.constant 0 : index
    %c0_23 = arith.constant 0 : index
    %47 = vector.load %arg6[%c2, %c0_22, %c0_23] : memref<9x8x16xbf16, #tpu.memory_space<vmem>>, vector<1x8x16xbf16>
    %48 = vector.shape_cast %47 : vector<1x8x16xbf16> to vector<8x16xbf16>
    %cst_24 = arith.constant dense<0.000000e+00> : vector<32x16xf32>
    %49 = tpu.matmul %46, %48, %cst_24 {dimension_numbers = #tpu.dot_dimension_numbers<[1], [0], [0], [1], [0, 0, 1, 1], [], []>} : vector<32x8xbf16>, vector<8x16xbf16>, vector<32x16xf32> -> vector<32x16xf32>
    %50 = arith.addf %44, %49 : vector<32x16xf32>
    %51 = vector.extract_strided_slice %27 {offsets = [0, 0, 0], sizes = [4, 8, 8], strides = [1, 1, 1]} : vector<4x9x8xbf16> to vector<4x8x8xbf16>
    %52 = vector.shape_cast %51 : vector<4x8x8xbf16> to vector<32x8xbf16>
    %c3 = arith.constant 3 : index
    %c0_25 = arith.constant 0 : index
    %c0_26 = arith.constant 0 : index
    %53 = vector.load %arg6[%c3, %c0_25, %c0_26] : memref<9x8x16xbf16, #tpu.memory_space<vmem>>, vector<1x8x16xbf16>
    %54 = vector.shape_cast %53 : vector<1x8x16xbf16> to vector<8x16xbf16>
    %cst_27 = arith.constant dense<0.000000e+00> : vector<32x16xf32>
    %55 = tpu.matmul %52, %54, %cst_27 {dimension_numbers = #tpu.dot_dimension_numbers<[1], [0], [0], [1], [0, 0, 1, 1], [], []>} : vector<32x8xbf16>, vector<8x16xbf16>, vector<32x16xf32> -> vector<32x16xf32>
    %56 = arith.addf %50, %55 : vector<32x16xf32>
    %57 = vector.extract_strided_slice %29 {offsets = [0, 0, 0], sizes = [4, 8, 8], strides = [1, 1, 1]} : vector<4x9x8xbf16> to vector<4x8x8xbf16>
    %58 = vector.shape_cast %57 : vector<4x8x8xbf16> to vector<32x8xbf16>
    %c4 = arith.constant 4 : index
    %c0_28 = arith.constant 0 : index
    %c0_29 = arith.constant 0 : index
    %59 = vector.load %arg6[%c4, %c0_28, %c0_29] : memref<9x8x16xbf16, #tpu.memory_space<vmem>>, vector<1x8x16xbf16>
    %60 = vector.shape_cast %59 : vector<1x8x16xbf16> to vector<8x16xbf16>
    %cst_30 = arith.constant dense<0.000000e+00> : vector<32x16xf32>
    %61 = tpu.matmul %58, %60, %cst_30 {dimension_numbers = #tpu.dot_dimension_numbers<[1], [0], [0], [1], [0, 0, 1, 1], [], []>} : vector<32x8xbf16>, vector<8x16xbf16>, vector<32x16xf32> -> vector<32x16xf32>
    %62 = arith.addf %56, %61 : vector<32x16xf32>
    %63 = vector.extract_strided_slice %31 {offsets = [0, 1, 0], sizes = [4, 8, 8], strides = [1, 1, 1]} : vector<4x9x8xbf16> to vector<4x8x8xbf16>
    %64 = vector.shape_cast %63 : vector<4x8x8xbf16> to vector<32x8xbf16>
    %c5 = arith.constant 5 : index
    %c0_31 = arith.constant 0 : index
    %c0_32 = arith.constant 0 : index
    %65 = vector.load %arg6[%c5, %c0_31, %c0_32] : memref<9x8x16xbf16, #tpu.memory_space<vmem>>, vector<1x8x16xbf16>
    %66 = vector.shape_cast %65 : vector<1x8x16xbf16> to vector<8x16xbf16>
    %cst_33 = arith.constant dense<0.000000e+00> : vector<32x16xf32>
    %67 = tpu.matmul %64, %66, %cst_33 {dimension_numbers = #tpu.dot_dimension_numbers<[1], [0], [0], [1], [0, 0, 1, 1], [], []>} : vector<32x8xbf16>, vector<8x16xbf16>, vector<32x16xf32> -> vector<32x16xf32>
    %68 = arith.addf %62, %67 : vector<32x16xf32>
    %69 = vector.extract_strided_slice %12 {offsets = [0, 0, 0], sizes = [4, 8, 8], strides = [1, 1, 1]} : vector<4x9x8xbf16> to vector<4x8x8xbf16>
    %70 = vector.shape_cast %69 : vector<4x8x8xbf16> to vector<32x8xbf16>
    %c6 = arith.constant 6 : index
    %c0_34 = arith.constant 0 : index
    %c0_35 = arith.constant 0 : index
    %71 = vector.load %arg6[%c6, %c0_34, %c0_35] : memref<9x8x16xbf16, #tpu.memory_space<vmem>>, vector<1x8x16xbf16>
    %72 = vector.shape_cast %71 : vector<1x8x16xbf16> to vector<8x16xbf16>
    %cst_36 = arith.constant dense<0.000000e+00> : vector<32x16xf32>
    %73 = tpu.matmul %70, %72, %cst_36 {dimension_numbers = #tpu.dot_dimension_numbers<[1], [0], [0], [1], [0, 0, 1, 1], [], []>} : vector<32x8xbf16>, vector<8x16xbf16>, vector<32x16xf32> -> vector<32x16xf32>
    %74 = arith.addf %68, %73 : vector<32x16xf32>
    %75 = vector.extract_strided_slice %19 {offsets = [0, 0, 0], sizes = [4, 8, 8], strides = [1, 1, 1]} : vector<4x9x8xbf16> to vector<4x8x8xbf16>
    %76 = vector.shape_cast %75 : vector<4x8x8xbf16> to vector<32x8xbf16>
    %c7 = arith.constant 7 : index
    %c0_37 = arith.constant 0 : index
    %c0_38 = arith.constant 0 : index
    %77 = vector.load %arg6[%c7, %c0_37, %c0_38] : memref<9x8x16xbf16, #tpu.memory_space<vmem>>, vector<1x8x16xbf16>
    %78 = vector.shape_cast %77 : vector<1x8x16xbf16> to vector<8x16xbf16>
    %cst_39 = arith.constant dense<0.000000e+00> : vector<32x16xf32>
    %79 = tpu.matmul %76, %78, %cst_39 {dimension_numbers = #tpu.dot_dimension_numbers<[1], [0], [0], [1], [0, 0, 1, 1], [], []>} : vector<32x8xbf16>, vector<8x16xbf16>, vector<32x16xf32> -> vector<32x16xf32>
    %80 = arith.addf %74, %79 : vector<32x16xf32>
    %81 = vector.extract_strided_slice %12 {offsets = [0, 1, 0], sizes = [4, 8, 8], strides = [1, 1, 1]} : vector<4x9x8xbf16> to vector<4x8x8xbf16>
    %82 = vector.shape_cast %81 : vector<4x8x8xbf16> to vector<32x8xbf16>
    %c8 = arith.constant 8 : index
    %c0_40 = arith.constant 0 : index
    %c0_41 = arith.constant 0 : index
    %83 = vector.load %arg6[%c8, %c0_40, %c0_41] : memref<9x8x16xbf16, #tpu.memory_space<vmem>>, vector<1x8x16xbf16>
    %84 = vector.shape_cast %83 : vector<1x8x16xbf16> to vector<8x16xbf16>
    %cst_42 = arith.constant dense<0.000000e+00> : vector<32x16xf32>
    %85 = tpu.matmul %82, %84, %cst_42 {dimension_numbers = #tpu.dot_dimension_numbers<[1], [0], [0], [1], [0, 0, 1, 1], [], []>} : vector<32x8xbf16>, vector<8x16xbf16>, vector<32x16xf32> -> vector<32x16xf32>
    %86 = arith.addf %80, %85 : vector<32x16xf32>
    %c0_43 = arith.constant 0 : index
    %c0_44 = arith.constant 0 : index
    %87 = vector.load %arg7[%c0_43, %c0_44] : memref<1x16xf32, #tpu.memory_space<vmem>>, vector<1x16xf32>
    %88 = vector.broadcast %87 : vector<1x16xf32> to vector<32x16xf32>
    %89 = arith.mulf %86, %88 : vector<32x16xf32>
    %c0_45 = arith.constant 0 : index
    %c0_46 = arith.constant 0 : index
    %90 = vector.load %arg8[%c0_45, %c0_46] : memref<1x16xf32, #tpu.memory_space<vmem>>, vector<1x16xf32>
    %91 = vector.broadcast %90 : vector<1x16xf32> to vector<32x16xf32>
    %92 = arith.addf %89, %91 : vector<32x16xf32>
    %cst_47 = arith.constant 5.000000e-01 : f32
    %93 = vector.broadcast %cst_47 : f32 to vector<32x16xf32>
    %94 = arith.mulf %93, %92 : vector<32x16xf32>
    %cst_48 = arith.constant 0.707106769 : f32
    %95 = vector.broadcast %cst_48 : f32 to vector<32x16xf32>
    %96 = arith.mulf %92, %95 : vector<32x16xf32>
    %97 = math.erf %96 : vector<32x16xf32>
    %cst_49 = arith.constant 1.000000e+00 : f32
    %98 = vector.broadcast %cst_49 : f32 to vector<32x16xf32>
    %99 = arith.addf %98, %97 : vector<32x16xf32>
    %100 = arith.mulf %94, %99 : vector<32x16xf32>
    %101 = vector.shape_cast %100 : vector<32x16xf32> to vector<4x8x16xf32>
    %102 = arith.truncf %101 : vector<4x8x16xf32> to vector<4x8x16xbf16>
    %c0_50 = arith.constant 0 : index
    %c0_51 = arith.constant 0 : index
    %c0_52 = arith.constant 0 : index
    %c0_53 = arith.constant 0 : index
    %103 = vector.load %arg9[%c0_50, %c0_51, %c0_52, %c0_53] : memref<1x4x8x16xbf16, #tpu.memory_space<vmem>>, vector<1x4x8x16xbf16>
    %104 = vector.shape_cast %103 : vector<1x4x8x16xbf16> to vector<4x8x16xbf16>
    %105 = vector.shape_cast %102 : vector<4x8x16xbf16> to vector<1x4x8x16xbf16>
    tpu.vector_store %arg9[%c0_50, %c0_51, %c0_52, %c0_53], %105 {strides = array<i32>} : memref<1x4x8x16xbf16, #tpu.memory_space<vmem>>, vector<1x4x8x16xbf16>,
    return
  }
  func.func @transform_0(%arg0: i32, %arg1: i32) -> (i32, i32, i32, i32) {
    %c0_i32 = arith.constant 0 : i32
    %c0_i32_0 = arith.constant 0 : i32
    %c0_i32_1 = arith.constant 0 : i32
    return %arg0, %arg1, %c0_i32, %c0_i32_0 : i32, i32, i32, i32
  }
  func.func @transform_1(%arg0: i32, %arg1: i32) -> (i32, i32, i32, i32) {
    %c1_i32 = arith.constant 1 : i32
    %0 = arith.addi %arg1, %c1_i32 : i32
    %c8_i32 = arith.constant 8 : i32
    %1 = arith.muli %c8_i32, %0 : i32
    %c0_i32 = arith.constant 0 : i32
    %c0_i32_0 = arith.constant 0 : i32
    %c0_i32_1 = arith.constant 0 : i32
    return %arg0, %1, %c0_i32, %c0_i32_0 : i32, i32, i32, i32
  }
  func.func @transform_2(%arg0: i32, %arg1: i32) -> (i32, i32, i32, i32) {
    %c0_i32 = arith.constant 0 : i32
    %c0_i32_0 = arith.constant 0 : i32
    %c0_i32_1 = arith.constant 0 : i32
    return %arg0, %arg1, %c0_i32, %c0_i32_0 : i32, i32, i32, i32
  }
  func.func @transform_3(%arg0: i32, %arg1: i32) -> (i32, i32, i32, i32) {
    %c1_i32 = arith.constant 1 : i32
    %0 = arith.addi %arg1, %c1_i32 : i32
    %c8_i32 = arith.constant 8 : i32
    %1 = arith.muli %c8_i32, %0 : i32
    %c0_i32 = arith.constant 0 : i32
    %c0_i32_0 = arith.constant 0 : i32
    %c0_i32_1 = arith.constant 0 : i32
    return %arg0, %1, %c0_i32, %c0_i32_0 : i32, i32, i32, i32
  }
  func.func @transform_4(%arg0: i32, %arg1: i32) -> (i32, i32, i32) {
    %c0_i32 = arith.constant 0 : i32
    %c0_i32_0 = arith.constant 0 : i32
    %c0_i32_1 = arith.constant 0 : i32
    %c0_i32_2 = arith.constant 0 : i32
    return %c0_i32, %c0_i32_0, %c0_i32_1 : i32, i32, i32
  }
  func.func @transform_5(%arg0: i32, %arg1: i32) -> (i32, i32) {
    %c0_i32 = arith.constant 0 : i32
    %c0_i32_0 = arith.constant 0 : i32
    %c0_i32_1 = arith.constant 0 : i32
    return %c0_i32, %c0_i32_0 : i32, i32
  }
  func.func @transform_6(%arg0: i32, %arg1: i32) -> (i32, i32) {
    %c0_i32 = arith.constant 0 : i32
    %c0_i32_0 = arith.constant 0 : i32
    %c0_i32_1 = arith.constant 0 : i32
    return %c0_i32, %c0_i32_0 : i32, i32
  }
  func.func @transform_7(%arg0: i32, %arg1: i32) -> (i32, i32, i32, i32) {
    %c0_i32 = arith.constant 0 : i32
    %c0_i32_0 = arith.constant 0 : i32
    %c0_i32_1 = arith.constant 0 : i32
    return %arg0, %arg1, %c0_i32, %c0_i32_0 : i32, i32, i32, i32
  }
}

module attributes {stable_mosaic.version = 11 : i64} {
  func.func @_conv_kernel(%arg0: i32, %arg1: i32, %arg2: memref<1x4x9x16xbf16, #tpu.memory_space<vmem>>, %arg3: memref<1x1x9x16xbf16, #tpu.memory_space<vmem>>, %arg4: memref<1x4x9x16xbf16, #tpu.memory_space<vmem>>, %arg5: memref<1x1x9x16xbf16, #tpu.memory_space<vmem>>, %arg6: memref<9x16x32xbf16, #tpu.memory_space<vmem>>, %arg7: memref<1x32xf32, #tpu.memory_space<vmem>>, %arg8: memref<1x32xf32, #tpu.memory_space<vmem>>, %arg9: memref<1x2x8x32xbf16, #tpu.memory_space<vmem>>) attributes {dimension_semantics = [#tpu.dimension_semantics<parallel>, #tpu.dimension_semantics<parallel>], iteration_bounds = array<i64: 2, 1>, scalar_prefetch = 0 : i64, scratch_operands = 0 : i64, tpu.core_type = #tpu.core_type<tc>, window_params = [{transform_indices = @transform_0, window_bounds = array<i64: 1, 4, 9, 16>}, {transform_indices = @transform_1, window_bounds = array<i64: 1, 1, 9, 16>}, {transform_indices = @transform_2, window_bounds = array<i64: 1, 4, 9, 16>}, {transform_indices = @transform_3, window_bounds = array<i64: 1, 1, 9, 16>}, {pipeline_mode = #tpu.pipeline_mode<synchronous>, transform_indices = @transform_4, window_bounds = array<i64: 9, 16, 32>}, {pipeline_mode = #tpu.pipeline_mode<synchronous>, transform_indices = @transform_5, window_bounds = array<i64: 1, 32>}, {pipeline_mode = #tpu.pipeline_mode<synchronous>, transform_indices = @transform_6, window_bounds = array<i64: 1, 32>}, {transform_indices = @transform_7, window_bounds = array<i64: 1, 2, 8, 32>}]} {
    %c0 = arith.constant 0 : index
    %c0_0 = arith.constant 0 : index
    %c0_1 = arith.constant 0 : index
    %c0_2 = arith.constant 0 : index
    %0 = vector.load %arg2[%c0, %c0_0, %c0_1, %c0_2] : memref<1x4x9x16xbf16, #tpu.memory_space<vmem>>, vector<1x4x9x16xbf16>
    %1 = vector.shape_cast %0 : vector<1x4x9x16xbf16> to vector<4x9x16xbf16>
    %c0_3 = arith.constant 0 : index
    %c0_4 = arith.constant 0 : index
    %c0_5 = arith.constant 0 : index
    %c0_6 = arith.constant 0 : index
    %2 = vector.load %arg4[%c0_3, %c0_4, %c0_5, %c0_6] : memref<1x4x9x16xbf16, #tpu.memory_space<vmem>>, vector<1x4x9x16xbf16>
    %3 = vector.shape_cast %2 : vector<1x4x9x16xbf16> to vector<4x9x16xbf16>
    %4 = vector.shape_cast %1 : vector<4x9x16xbf16> to vector<2x2x9x16xbf16>
    %5 = vector.shape_cast %3 : vector<4x9x16xbf16> to vector<2x2x9x16xbf16>
    %6 = vector.extract_strided_slice %1 {offsets = [2, 0, 0], sizes = [2, 9, 16], strides = [1, 1, 1]} : vector<4x9x16xbf16> to vector<2x9x16xbf16>
    %7 = vector.shape_cast %6 : vector<2x9x16xbf16> to vector<1x2x9x16xbf16>
    %8 = vector.extract_strided_slice %7 {offsets = [0, 0, 0, 0], sizes = [1, 1, 9, 16], strides = [1, 1, 1, 1]} : vector<1x2x9x16xbf16> to vector<1x1x9x16xbf16>
    %9 = vector.shape_cast %8 : vector<1x1x9x16xbf16> to vector<1x9x16xbf16>
    %c0_7 = arith.constant 0 : index
    %c0_8 = arith.constant 0 : index
    %c0_9 = arith.constant 0 : index
    %c0_10 = arith.constant 0 : index
    %10 = vector.load %arg3[%c0_7, %c0_8, %c0_9, %c0_10] : memref<1x1x9x16xbf16, #tpu.memory_space<vmem>>, vector<1x1x9x16xbf16>
    %11 = vector.shape_cast %10 : vector<1x1x9x16xbf16> to vector<1x9x16xbf16>
    %12 = tpu.concatenate %9, %11 in 0 : vector<1x9x16xbf16>, vector<1x9x16xbf16> -> vector<2x9x16xbf16>
    %13 = vector.extract_strided_slice %3 {offsets = [2, 0, 0], sizes = [2, 9, 16], strides = [1, 1, 1]} : vector<4x9x16xbf16> to vector<2x9x16xbf16>
    %14 = vector.shape_cast %13 : vector<2x9x16xbf16> to vector<1x2x9x16xbf16>
    %15 = vector.extract_strided_slice %14 {offsets = [0, 0, 0, 0], sizes = [1, 1, 9, 16], strides = [1, 1, 1, 1]} : vector<1x2x9x16xbf16> to vector<1x1x9x16xbf16>
    %16 = vector.shape_cast %15 : vector<1x1x9x16xbf16> to vector<1x9x16xbf16>
    %c0_11 = arith.constant 0 : index
    %c0_12 = arith.constant 0 : index
    %c0_13 = arith.constant 0 : index
    %c0_14 = arith.constant 0 : index
    %17 = vector.load %arg5[%c0_11, %c0_12, %c0_13, %c0_14] : memref<1x1x9x16xbf16, #tpu.memory_space<vmem>>, vector<1x1x9x16xbf16>
    %18 = vector.shape_cast %17 : vector<1x1x9x16xbf16> to vector<1x9x16xbf16>
    %19 = tpu.concatenate %16, %18 in 0 : vector<1x9x16xbf16>, vector<1x9x16xbf16> -> vector<2x9x16xbf16>
    %20 = vector.extract_strided_slice %4 {offsets = [0, 0, 0, 0], sizes = [2, 1, 9, 16], strides = [1, 1, 1, 1]} : vector<2x2x9x16xbf16> to vector<2x1x9x16xbf16>
    %21 = vector.shape_cast %20 : vector<2x1x9x16xbf16> to vector<2x9x16xbf16>
    %22 = vector.extract_strided_slice %5 {offsets = [0, 0, 0, 0], sizes = [2, 1, 9, 16], strides = [1, 1, 1, 1]} : vector<2x2x9x16xbf16> to vector<2x1x9x16xbf16>
    %23 = vector.shape_cast %22 : vector<2x1x9x16xbf16> to vector<2x9x16xbf16>
    %24 = vector.extract_strided_slice %4 {offsets = [0, 0, 0, 0], sizes = [2, 1, 9, 16], strides = [1, 1, 1, 1]} : vector<2x2x9x16xbf16> to vector<2x1x9x16xbf16>
    %25 = vector.shape_cast %24 : vector<2x1x9x16xbf16> to vector<2x9x16xbf16>
    %26 = vector.extract_strided_slice %4 {offsets = [0, 1, 0, 0], sizes = [2, 1, 9, 16], strides = [1, 1, 1, 1]} : vector<2x2x9x16xbf16> to vector<2x1x9x16xbf16>
    %27 = vector.shape_cast %26 : vector<2x1x9x16xbf16> to vector<2x9x16xbf16>
    %28 = vector.extract_strided_slice %5 {offsets = [0, 1, 0, 0], sizes = [2, 1, 9, 16], strides = [1, 1, 1, 1]} : vector<2x2x9x16xbf16> to vector<2x1x9x16xbf16>
    %29 = vector.shape_cast %28 : vector<2x1x9x16xbf16> to vector<2x9x16xbf16>
    %30 = vector.extract_strided_slice %4 {offsets = [0, 1, 0, 0], sizes = [2, 1, 9, 16], strides = [1, 1, 1, 1]} : vector<2x2x9x16xbf16> to vector<2x1x9x16xbf16>
    %31 = vector.shape_cast %30 : vector<2x1x9x16xbf16> to vector<2x9x16xbf16>
    %cst = arith.constant 0.000000e+00 : f32
    %32 = vector.broadcast %cst : f32 to vector<16x32xf32>
    %33 = vector.extract_strided_slice %21 {offsets = [0, 0, 0], sizes = [2, 8, 16], strides = [1, 1, 1]} : vector<2x9x16xbf16> to vector<2x8x16xbf16>
    %34 = vector.shape_cast %33 : vector<2x8x16xbf16> to vector<16x16xbf16>
    %c0_15 = arith.constant 0 : index
    %c0_16 = arith.constant 0 : index
    %c0_17 = arith.constant 0 : index
    %35 = vector.load %arg6[%c0_15, %c0_16, %c0_17] : memref<9x16x32xbf16, #tpu.memory_space<vmem>>, vector<1x16x32xbf16>
    %36 = vector.shape_cast %35 : vector<1x16x32xbf16> to vector<16x32xbf16>
    %cst_18 = arith.constant dense<0.000000e+00> : vector<16x32xf32>
    %37 = tpu.matmul %34, %36, %cst_18 {dimension_numbers = #tpu.dot_dimension_numbers<[1], [0], [0], [1], [0, 0, 1, 1], [], []>} : vector<16x16xbf16>, vector<16x32xbf16>, vector<16x32xf32> -> vector<16x32xf32>
    %38 = arith.addf %32, %37 : vector<16x32xf32>
    %39 = vector.extract_strided_slice %23 {offsets = [0, 0, 0], sizes = [2, 8, 16], strides = [1, 1, 1]} : vector<2x9x16xbf16> to vector<2x8x16xbf16>
    %40 = vector.shape_cast %39 : vector<2x8x16xbf16> to vector<16x16xbf16>
    %c1 = arith.constant 1 : index
    %c0_19 = arith.constant 0 : index
    %c0_20 = arith.constant 0 : index
    %41 = vector.load %arg6[%c1, %c0_19, %c0_20] : memref<9x16x32xbf16, #tpu.memory_space<vmem>>, vector<1x16x32xbf16>
    %42 = vector.shape_cast %41 : vector<1x16x32xbf16> to vector<16x32xbf16>
    %cst_21 = arith.constant dense<0.000000e+00> : vector<16x32xf32>
    %43 = tpu.matmul %40, %42, %cst_21 {dimension_numbers = #tpu.dot_dimension_numbers<[1], [0], [0], [1], [0, 0, 1, 1], [], []>} : vector<16x16xbf16>, vector<16x32xbf16>, vector<16x32xf32> -> vector<16x32xf32>
    %44 = arith.addf %38, %43 : vector<16x32xf32>
    %45 = vector.extract_strided_slice %25 {offsets = [0, 1, 0], sizes = [2, 8, 16], strides = [1, 1, 1]} : vector<2x9x16xbf16> to vector<2x8x16xbf16>
    %46 = vector.shape_cast %45 : vector<2x8x16xbf16> to vector<16x16xbf16>
    %c2 = arith.constant 2 : index
    %c0_22 = arith.constant 0 : index
    %c0_23 = arith.constant 0 : index
    %47 = vector.load %arg6[%c2, %c0_22, %c0_23] : memref<9x16x32xbf16, #tpu.memory_space<vmem>>, vector<1x16x32xbf16>
    %48 = vector.shape_cast %47 : vector<1x16x32xbf16> to vector<16x32xbf16>
    %cst_24 = arith.constant dense<0.000000e+00> : vector<16x32xf32>
    %49 = tpu.matmul %46, %48, %cst_24 {dimension_numbers = #tpu.dot_dimension_numbers<[1], [0], [0], [1], [0, 0, 1, 1], [], []>} : vector<16x16xbf16>, vector<16x32xbf16>, vector<16x32xf32> -> vector<16x32xf32>
    %50 = arith.addf %44, %49 : vector<16x32xf32>
    %51 = vector.extract_strided_slice %27 {offsets = [0, 0, 0], sizes = [2, 8, 16], strides = [1, 1, 1]} : vector<2x9x16xbf16> to vector<2x8x16xbf16>
    %52 = vector.shape_cast %51 : vector<2x8x16xbf16> to vector<16x16xbf16>
    %c3 = arith.constant 3 : index
    %c0_25 = arith.constant 0 : index
    %c0_26 = arith.constant 0 : index
    %53 = vector.load %arg6[%c3, %c0_25, %c0_26] : memref<9x16x32xbf16, #tpu.memory_space<vmem>>, vector<1x16x32xbf16>
    %54 = vector.shape_cast %53 : vector<1x16x32xbf16> to vector<16x32xbf16>
    %cst_27 = arith.constant dense<0.000000e+00> : vector<16x32xf32>
    %55 = tpu.matmul %52, %54, %cst_27 {dimension_numbers = #tpu.dot_dimension_numbers<[1], [0], [0], [1], [0, 0, 1, 1], [], []>} : vector<16x16xbf16>, vector<16x32xbf16>, vector<16x32xf32> -> vector<16x32xf32>
    %56 = arith.addf %50, %55 : vector<16x32xf32>
    %57 = vector.extract_strided_slice %29 {offsets = [0, 0, 0], sizes = [2, 8, 16], strides = [1, 1, 1]} : vector<2x9x16xbf16> to vector<2x8x16xbf16>
    %58 = vector.shape_cast %57 : vector<2x8x16xbf16> to vector<16x16xbf16>
    %c4 = arith.constant 4 : index
    %c0_28 = arith.constant 0 : index
    %c0_29 = arith.constant 0 : index
    %59 = vector.load %arg6[%c4, %c0_28, %c0_29] : memref<9x16x32xbf16, #tpu.memory_space<vmem>>, vector<1x16x32xbf16>
    %60 = vector.shape_cast %59 : vector<1x16x32xbf16> to vector<16x32xbf16>
    %cst_30 = arith.constant dense<0.000000e+00> : vector<16x32xf32>
    %61 = tpu.matmul %58, %60, %cst_30 {dimension_numbers = #tpu.dot_dimension_numbers<[1], [0], [0], [1], [0, 0, 1, 1], [], []>} : vector<16x16xbf16>, vector<16x32xbf16>, vector<16x32xf32> -> vector<16x32xf32>
    %62 = arith.addf %56, %61 : vector<16x32xf32>
    %63 = vector.extract_strided_slice %31 {offsets = [0, 1, 0], sizes = [2, 8, 16], strides = [1, 1, 1]} : vector<2x9x16xbf16> to vector<2x8x16xbf16>
    %64 = vector.shape_cast %63 : vector<2x8x16xbf16> to vector<16x16xbf16>
    %c5 = arith.constant 5 : index
    %c0_31 = arith.constant 0 : index
    %c0_32 = arith.constant 0 : index
    %65 = vector.load %arg6[%c5, %c0_31, %c0_32] : memref<9x16x32xbf16, #tpu.memory_space<vmem>>, vector<1x16x32xbf16>
    %66 = vector.shape_cast %65 : vector<1x16x32xbf16> to vector<16x32xbf16>
    %cst_33 = arith.constant dense<0.000000e+00> : vector<16x32xf32>
    %67 = tpu.matmul %64, %66, %cst_33 {dimension_numbers = #tpu.dot_dimension_numbers<[1], [0], [0], [1], [0, 0, 1, 1], [], []>} : vector<16x16xbf16>, vector<16x32xbf16>, vector<16x32xf32> -> vector<16x32xf32>
    %68 = arith.addf %62, %67 : vector<16x32xf32>
    %69 = vector.extract_strided_slice %12 {offsets = [0, 0, 0], sizes = [2, 8, 16], strides = [1, 1, 1]} : vector<2x9x16xbf16> to vector<2x8x16xbf16>
    %70 = vector.shape_cast %69 : vector<2x8x16xbf16> to vector<16x16xbf16>
    %c6 = arith.constant 6 : index
    %c0_34 = arith.constant 0 : index
    %c0_35 = arith.constant 0 : index
    %71 = vector.load %arg6[%c6, %c0_34, %c0_35] : memref<9x16x32xbf16, #tpu.memory_space<vmem>>, vector<1x16x32xbf16>
    %72 = vector.shape_cast %71 : vector<1x16x32xbf16> to vector<16x32xbf16>
    %cst_36 = arith.constant dense<0.000000e+00> : vector<16x32xf32>
    %73 = tpu.matmul %70, %72, %cst_36 {dimension_numbers = #tpu.dot_dimension_numbers<[1], [0], [0], [1], [0, 0, 1, 1], [], []>} : vector<16x16xbf16>, vector<16x32xbf16>, vector<16x32xf32> -> vector<16x32xf32>
    %74 = arith.addf %68, %73 : vector<16x32xf32>
    %75 = vector.extract_strided_slice %19 {offsets = [0, 0, 0], sizes = [2, 8, 16], strides = [1, 1, 1]} : vector<2x9x16xbf16> to vector<2x8x16xbf16>
    %76 = vector.shape_cast %75 : vector<2x8x16xbf16> to vector<16x16xbf16>
    %c7 = arith.constant 7 : index
    %c0_37 = arith.constant 0 : index
    %c0_38 = arith.constant 0 : index
    %77 = vector.load %arg6[%c7, %c0_37, %c0_38] : memref<9x16x32xbf16, #tpu.memory_space<vmem>>, vector<1x16x32xbf16>
    %78 = vector.shape_cast %77 : vector<1x16x32xbf16> to vector<16x32xbf16>
    %cst_39 = arith.constant dense<0.000000e+00> : vector<16x32xf32>
    %79 = tpu.matmul %76, %78, %cst_39 {dimension_numbers = #tpu.dot_dimension_numbers<[1], [0], [0], [1], [0, 0, 1, 1], [], []>} : vector<16x16xbf16>, vector<16x32xbf16>, vector<16x32xf32> -> vector<16x32xf32>
    %80 = arith.addf %74, %79 : vector<16x32xf32>
    %81 = vector.extract_strided_slice %12 {offsets = [0, 1, 0], sizes = [2, 8, 16], strides = [1, 1, 1]} : vector<2x9x16xbf16> to vector<2x8x16xbf16>
    %82 = vector.shape_cast %81 : vector<2x8x16xbf16> to vector<16x16xbf16>
    %c8 = arith.constant 8 : index
    %c0_40 = arith.constant 0 : index
    %c0_41 = arith.constant 0 : index
    %83 = vector.load %arg6[%c8, %c0_40, %c0_41] : memref<9x16x32xbf16, #tpu.memory_space<vmem>>, vector<1x16x32xbf16>
    %84 = vector.shape_cast %83 : vector<1x16x32xbf16> to vector<16x32xbf16>
    %cst_42 = arith.constant dense<0.000000e+00> : vector<16x32xf32>
    %85 = tpu.matmul %82, %84, %cst_42 {dimension_numbers = #tpu.dot_dimension_numbers<[1], [0], [0], [1], [0, 0, 1, 1], [], []>} : vector<16x16xbf16>, vector<16x32xbf16>, vector<16x32xf32> -> vector<16x32xf32>
    %86 = arith.addf %80, %85 : vector<16x32xf32>
    %c0_43 = arith.constant 0 : index
    %c0_44 = arith.constant 0 : index
    %87 = vector.load %arg7[%c0_43, %c0_44] : memref<1x32xf32, #tpu.memory_space<vmem>>, vector<1x32xf32>
    %88 = vector.broadcast %87 : vector<1x32xf32> to vector<16x32xf32>
    %89 = arith.mulf %86, %88 : vector<16x32xf32>
    %c0_45 = arith.constant 0 : index
    %c0_46 = arith.constant 0 : index
    %90 = vector.load %arg8[%c0_45, %c0_46] : memref<1x32xf32, #tpu.memory_space<vmem>>, vector<1x32xf32>
    %91 = vector.broadcast %90 : vector<1x32xf32> to vector<16x32xf32>
    %92 = arith.addf %89, %91 : vector<16x32xf32>
    %93 = vector.shape_cast %92 : vector<16x32xf32> to vector<2x8x32xf32>
    %94 = arith.truncf %93 : vector<2x8x32xf32> to vector<2x8x32xbf16>
    %c0_47 = arith.constant 0 : index
    %c0_48 = arith.constant 0 : index
    %c0_49 = arith.constant 0 : index
    %c0_50 = arith.constant 0 : index
    %95 = vector.load %arg9[%c0_47, %c0_48, %c0_49, %c0_50] : memref<1x2x8x32xbf16, #tpu.memory_space<vmem>>, vector<1x2x8x32xbf16>
    %96 = vector.shape_cast %95 : vector<1x2x8x32xbf16> to vector<2x8x32xbf16>
    %97 = vector.shape_cast %94 : vector<2x8x32xbf16> to vector<1x2x8x32xbf16>
    tpu.vector_store %arg9[%c0_47, %c0_48, %c0_49, %c0_50], %97 {strides = array<i32>} : memref<1x2x8x32xbf16, #tpu.memory_space<vmem>>, vector<1x2x8x32xbf16>,
    return
  }
  func.func @transform_0(%arg0: i32, %arg1: i32) -> (i32, i32, i32, i32) {
    %c0_i32 = arith.constant 0 : i32
    %c0_i32_0 = arith.constant 0 : i32
    %c0_i32_1 = arith.constant 0 : i32
    return %arg0, %arg1, %c0_i32, %c0_i32_0 : i32, i32, i32, i32
  }
  func.func @transform_1(%arg0: i32, %arg1: i32) -> (i32, i32, i32, i32) {
    %c1_i32 = arith.constant 1 : i32
    %0 = arith.addi %arg1, %c1_i32 : i32
    %c4_i32 = arith.constant 4 : i32
    %1 = arith.muli %c4_i32, %0 : i32
    %c0_i32 = arith.constant 0 : i32
    %c0_i32_0 = arith.constant 0 : i32
    %c0_i32_1 = arith.constant 0 : i32
    return %arg0, %1, %c0_i32, %c0_i32_0 : i32, i32, i32, i32
  }
  func.func @transform_2(%arg0: i32, %arg1: i32) -> (i32, i32, i32, i32) {
    %c0_i32 = arith.constant 0 : i32
    %c0_i32_0 = arith.constant 0 : i32
    %c0_i32_1 = arith.constant 0 : i32
    return %arg0, %arg1, %c0_i32, %c0_i32_0 : i32, i32, i32, i32
  }
  func.func @transform_3(%arg0: i32, %arg1: i32) -> (i32, i32, i32, i32) {
    %c1_i32 = arith.constant 1 : i32
    %0 = arith.addi %arg1, %c1_i32 : i32
    %c4_i32 = arith.constant 4 : i32
    %1 = arith.muli %c4_i32, %0 : i32
    %c0_i32 = arith.constant 0 : i32
    %c0_i32_0 = arith.constant 0 : i32
    %c0_i32_1 = arith.constant 0 : i32
    return %arg0, %1, %c0_i32, %c0_i32_0 : i32, i32, i32, i32
  }
  func.func @transform_4(%arg0: i32, %arg1: i32) -> (i32, i32, i32) {
    %c0_i32 = arith.constant 0 : i32
    %c0_i32_0 = arith.constant 0 : i32
    %c0_i32_1 = arith.constant 0 : i32
    %c0_i32_2 = arith.constant 0 : i32
    return %c0_i32, %c0_i32_0, %c0_i32_1 : i32, i32, i32
  }
  func.func @transform_5(%arg0: i32, %arg1: i32) -> (i32, i32) {
    %c0_i32 = arith.constant 0 : i32
    %c0_i32_0 = arith.constant 0 : i32
    %c0_i32_1 = arith.constant 0 : i32
    return %c0_i32, %c0_i32_0 : i32, i32
  }
  func.func @transform_6(%arg0: i32, %arg1: i32) -> (i32, i32) {
    %c0_i32 = arith.constant 0 : i32
    %c0_i32_0 = arith.constant 0 : i32
    %c0_i32_1 = arith.constant 0 : i32
    return %c0_i32, %c0_i32_0 : i32, i32
  }
  func.func @transform_7(%arg0: i32, %arg1: i32) -> (i32, i32, i32, i32) {
    %c0_i32 = arith.constant 0 : i32
    %c0_i32_0 = arith.constant 0 : i32
    %c0_i32_1 = arith.constant 0 : i32
    return %arg0, %arg1, %c0_i32, %c0_i32_0 : i32, i32, i32, i32
  }
}

module attributes {stable_mosaic.version = 11 : i64} {
  func.func @_attn_kernel(%arg0: i32, %arg1: memref<1x4x32xf32, #tpu.memory_space<vmem>>, %arg2: memref<4x32xf32, #tpu.memory_space<vmem>>, %arg3: memref<32x64xf32, #tpu.memory_space<vmem>>, %arg4: memref<1x64xf32, #tpu.memory_space<vmem>>, %arg5: memref<32x32xf32, #tpu.memory_space<vmem>>, %arg6: memref<1x32xf32, #tpu.memory_space<vmem>>, %arg7: memref<1x32xf32, #tpu.memory_space<vmem>>, %arg8: memref<1x1xf32, #tpu.memory_space<vmem>>, %arg9: memref<1x4x1xf32, #tpu.memory_space<vmem>>) attributes {dimension_semantics = [#tpu.dimension_semantics<parallel>], iteration_bounds = array<i64: 2>, scalar_prefetch = 0 : i64, scratch_operands = 0 : i64, tpu.core_type = #tpu.core_type<tc>, window_params = [{transform_indices = @transform_0, window_bounds = array<i64: 1, 4, 32>}, {pipeline_mode = #tpu.pipeline_mode<synchronous>, transform_indices = @transform_1, window_bounds = array<i64: 4, 32>}, {pipeline_mode = #tpu.pipeline_mode<synchronous>, transform_indices = @transform_2, window_bounds = array<i64: 32, 64>}, {pipeline_mode = #tpu.pipeline_mode<synchronous>, transform_indices = @transform_3, window_bounds = array<i64: 1, 64>}, {pipeline_mode = #tpu.pipeline_mode<synchronous>, transform_indices = @transform_4, window_bounds = array<i64: 32, 32>}, {pipeline_mode = #tpu.pipeline_mode<synchronous>, transform_indices = @transform_5, window_bounds = array<i64: 1, 32>}, {pipeline_mode = #tpu.pipeline_mode<synchronous>, transform_indices = @transform_6, window_bounds = array<i64: 1, 32>}, {pipeline_mode = #tpu.pipeline_mode<synchronous>, transform_indices = @transform_7, window_bounds = array<i64: 1, 1>}, {transform_indices = @transform_8, window_bounds = array<i64: 1, 4, 1>}]} {
    %c0 = arith.constant 0 : index
    %c0_0 = arith.constant 0 : index
    %c0_1 = arith.constant 0 : index
    %0 = vector.load %arg1[%c0, %c0_0, %c0_1] : memref<1x4x32xf32, #tpu.memory_space<vmem>>, vector<1x4x32xf32>
    %1 = vector.shape_cast %0 : vector<1x4x32xf32> to vector<4x32xf32>
    %c0_2 = arith.constant 0 : index
    %c0_3 = arith.constant 0 : index
    %2 = vector.load %arg3[%c0_2, %c0_3] : memref<32x64xf32, #tpu.memory_space<vmem>>, vector<32x64xf32>
    %cst = arith.constant dense<0.000000e+00> : vector<4x64xf32>
    %3 = tpu.matmul %1, %2, %cst {dimension_numbers = #tpu.dot_dimension_numbers<[1], [0], [0], [1], [0, 0, 1, 1], [], []>} : vector<4x32xf32>, vector<32x64xf32>, vector<4x64xf32> -> vector<4x64xf32>
    %c0_4 = arith.constant 0 : index
    %c0_5 = arith.constant 0 : index
    %4 = vector.load %arg4[%c0_4, %c0_5] : memref<1x64xf32, #tpu.memory_space<vmem>>, vector<1x64xf32>
    %5 = vector.broadcast %4 : vector<1x64xf32> to vector<4x64xf32>
    %6 = arith.addf %3, %5 : vector<4x64xf32>
    %7 = vector.extract_strided_slice %6 {offsets = [0, 0], sizes = [4, 32], strides = [1, 1]} : vector<4x64xf32> to vector<4x32xf32>
    %8 = vector.extract_strided_slice %6 {offsets = [0, 32], sizes = [4, 32], strides = [1, 1]} : vector<4x64xf32> to vector<4x32xf32>
    %c0_6 = arith.constant 0 : index
    %c0_7 = arith.constant 0 : index
    %9 = vector.load %arg2[%c0_6, %c0_7] : memref<4x32xf32, #tpu.memory_space<vmem>>, vector<4x32xf32>
    %cst_8 = arith.constant dense<0.000000e+00> : vector<4x4xf32>
    %10 = tpu.matmul %9, %7, %cst_8 {dimension_numbers = #tpu.dot_dimension_numbers<[1], [1], [0], [0], [0, 0, 1, 0], [], []>} : vector<4x32xf32>, vector<4x32xf32>, vector<4x4xf32> -> vector<4x4xf32>
    %cst_9 = arith.constant 0.176776692 : f32
    %11 = vector.broadcast %cst_9 : f32 to vector<4x4xf32>
    %12 = arith.mulf %10, %11 : vector<4x4xf32>
    %cst_10 = arith.constant dense<0xFF800000> : vector<4xf32>
    %13 = vector.multi_reduction <maximumf>, %12, %cst_10 [1] : vector<4x4xf32> to vector<4xf32>
    %14 = vector.shape_cast %13 : vector<4xf32> to vector<4x1xf32>
    %15 = vector.broadcast %14 : vector<4x1xf32> to vector<4x4xf32>
    %16 = arith.subf %12, %15 : vector<4x4xf32>
    %17 = math.exp %16 : vector<4x4xf32>
    %cst_11 = arith.constant dense<0.000000e+00> : vector<4xf32>
    %18 = vector.multi_reduction <add>, %17, %cst_11 [1] : vector<4x4xf32> to vector<4xf32>
    %19 = vector.shape_cast %18 : vector<4xf32> to vector<4x1xf32>
    %20 = vector.broadcast %19 : vector<4x1xf32> to vector<4x4xf32>
    %21 = arith.divf %17, %20 : vector<4x4xf32>
    %cst_12 = arith.constant dense<0.000000e+00> : vector<4x32xf32>
    %22 = tpu.matmul %21, %8, %cst_12 {dimension_numbers = #tpu.dot_dimension_numbers<[1], [0], [0], [1], [0, 0, 1, 1], [], []>} : vector<4x4xf32>, vector<4x32xf32>, vector<4x32xf32> -> vector<4x32xf32>
    %c0_13 = arith.constant 0 : index
    %c0_14 = arith.constant 0 : index
    %23 = vector.load %arg5[%c0_13, %c0_14] : memref<32x32xf32, #tpu.memory_space<vmem>>, vector<32x32xf32>
    %cst_15 = arith.constant dense<0.000000e+00> : vector<4x32xf32>
    %24 = tpu.matmul %22, %23, %cst_15 {dimension_numbers = #tpu.dot_dimension_numbers<[1], [0], [0], [1], [0, 0, 1, 1], [], []>} : vector<4x32xf32>, vector<32x32xf32>, vector<4x32xf32> -> vector<4x32xf32>
    %c0_16 = arith.constant 0 : index
    %c0_17 = arith.constant 0 : index
    %25 = vector.load %arg6[%c0_16, %c0_17] : memref<1x32xf32, #tpu.memory_space<vmem>>, vector<1x32xf32>
    %26 = vector.broadcast %25 : vector<1x32xf32> to vector<4x32xf32>
    %27 = arith.addf %24, %26 : vector<4x32xf32>
    %c0_18 = arith.constant 0 : index
    %c0_19 = arith.constant 0 : index
    %28 = vector.load %arg7[%c0_18, %c0_19] : memref<1x32xf32, #tpu.memory_space<vmem>>, vector<1x32xf32>
    %29 = vector.broadcast %28 : vector<1x32xf32> to vector<4x32xf32>
    %30 = arith.mulf %27, %29 : vector<4x32xf32>
    %cst_20 = arith.constant dense<0.000000e+00> : vector<4xf32>
    %31 = vector.multi_reduction <add>, %30, %cst_20 [1] : vector<4x32xf32> to vector<4xf32>
    %32 = vector.shape_cast %31 : vector<4xf32> to vector<4x1xf32>
    %c0_21 = arith.constant 0 : index
    %c0_22 = arith.constant 0 : index
    %33 = vector.load %arg8[%c0_21, %c0_22] : memref<1x1xf32, #tpu.memory_space<vmem>>, vector<1x1xf32>
    %34 = vector.broadcast %33 : vector<1x1xf32> to vector<4x1xf32>
    %35 = arith.addf %32, %34 : vector<4x1xf32>
    %c0_23 = arith.constant 0 : index
    %c0_24 = arith.constant 0 : index
    %c0_25 = arith.constant 0 : index
    %36 = vector.load %arg9[%c0_23, %c0_24, %c0_25] : memref<1x4x1xf32, #tpu.memory_space<vmem>>, vector<1x4x1xf32>
    %37 = vector.shape_cast %36 : vector<1x4x1xf32> to vector<4x1xf32>
    %38 = vector.shape_cast %35 : vector<4x1xf32> to vector<1x4x1xf32>
    tpu.vector_store %arg9[%c0_23, %c0_24, %c0_25], %38 {strides = array<i32>} : memref<1x4x1xf32, #tpu.memory_space<vmem>>, vector<1x4x1xf32>,
    return
  }
  func.func @transform_0(%arg0: i32) -> (i32, i32, i32) {
    %c0_i32 = arith.constant 0 : i32
    %c0_i32_0 = arith.constant 0 : i32
    %c0_i32_1 = arith.constant 0 : i32
    return %arg0, %c0_i32, %c0_i32_0 : i32, i32, i32
  }
  func.func @transform_1(%arg0: i32) -> (i32, i32) {
    %c0_i32 = arith.constant 0 : i32
    %c0_i32_0 = arith.constant 0 : i32
    %c0_i32_1 = arith.constant 0 : i32
    return %c0_i32, %c0_i32_0 : i32, i32
  }
  func.func @transform_2(%arg0: i32) -> (i32, i32) {
    %c0_i32 = arith.constant 0 : i32
    %c0_i32_0 = arith.constant 0 : i32
    %c0_i32_1 = arith.constant 0 : i32
    return %c0_i32, %c0_i32_0 : i32, i32
  }
  func.func @transform_3(%arg0: i32) -> (i32, i32) {
    %c0_i32 = arith.constant 0 : i32
    %c0_i32_0 = arith.constant 0 : i32
    %c0_i32_1 = arith.constant 0 : i32
    return %c0_i32, %c0_i32_0 : i32, i32
  }
  func.func @transform_4(%arg0: i32) -> (i32, i32) {
    %c0_i32 = arith.constant 0 : i32
    %c0_i32_0 = arith.constant 0 : i32
    %c0_i32_1 = arith.constant 0 : i32
    return %c0_i32, %c0_i32_0 : i32, i32
  }
  func.func @transform_5(%arg0: i32) -> (i32, i32) {
    %c0_i32 = arith.constant 0 : i32
    %c0_i32_0 = arith.constant 0 : i32
    %c0_i32_1 = arith.constant 0 : i32
    return %c0_i32, %c0_i32_0 : i32, i32
  }
  func.func @transform_6(%arg0: i32) -> (i32, i32) {
    %c0_i32 = arith.constant 0 : i32
    %c0_i32_0 = arith.constant 0 : i32
    %c0_i32_1 = arith.constant 0 : i32
    return %c0_i32, %c0_i32_0 : i32, i32
  }
  func.func @transform_7(%arg0: i32) -> (i32, i32) {
    %c0_i32 = arith.constant 0 : i32
    %c0_i32_0 = arith.constant 0 : i32
    %c0_i32_1 = arith.constant 0 : i32
    return %c0_i32, %c0_i32_0 : i32, i32
  }
  func.func @transform_8(%arg0: i32) -> (i32, i32, i32) {
    %c0_i32 = arith.constant 0 : i32
    %c0_i32_0 = arith.constant 0 : i32
    %c0_i32_1 = arith.constant 0 : i32
    return %arg0, %c0_i32, %c0_i32_0 : i32, i32, i32
  }
}

</mosaic_0001>

<bundles_post_ra>
// kernel: kernel_predictor_forward.6
= control target key start
LH: loop header
LB: loop body
LE: loop exit
PB: predicated region body
PF: predicated region fallthrough
CT: control target
= control target key end

     0   :  { %s2331_s24 = smov 0   ;;  %s2333_s25 = smov 0   ;;  %s2696_s0 = inlined_call_operand.vmem [shape: bf16[2,17,9,4], index: 0, kind: input, shape index: {}, may-alias: {0,1}]   ;;  %s2697_s1 = inlined_call_operand.vmem [shape: bf16[2,17,9,4], index: 1, kind: input, shape index: {}, may-alias: {0,1}]   ;;  %s2698_s2 = inlined_call_operand.vmem [shape: bf16[2,17,9,4], index: 2, kind: input, shape index: {}, may-alias: {2,3}]   ;;  %s2699_s3 = inlined_call_operand.vmem [shape: bf16[2,17,9,4], index: 3, kind: input, shape index: {}, may-alias: {2,3}]   ;;  %s2700_s4 = inlined_call_operand.vmem [shape: bf16[9,4,8], index: 4, kind: input, shape index: {}]   ;;  %s2701_s5 = inlined_call_operand.vmem [shape: f32[1,8], index: 5, kind: input, shape index: {}]   ;;  %s2702_s6 = inlined_call_operand.vmem [shape: f32[1,8], index: 6, kind: input, shape index: {}]   ;;  %s2703_s7 = inlined_call_operand.vmem [shape: bf16[2,8,8,8], index: 7, kind: output, shape index: {}]  }
   0x1   :  { %s2335_s26 = smov 0  }
   0x2 LB: > { %s29_s27 = sadd.s32 1, %s2285_s25  ;;  %p1959_p0 = scmp.ge.s32.totalorder %s2289_s26, 1  ;;  %s2289_s26 = sphi %s2335_s26, %s17_s26   ;;  %s2285_s25 = sphi %s2333_s25, %s2707_s25   ;;  %s2281_s24 = sphi %s2331_s24, %s2706_s24  }
   0x3   : > { %p31_p1 = scmp.ge.s32.totalorder %s29_s27, 2  ;;  %p345_p2 = scmp.lt.s32.totalorder %s2289_s26, 3 }
   0x5   : > { %s2709_s27 = smov (%p31_p1, %s29_s27), 0  ;;  %p346_p3 = pnand %p1959_p0, %p345_p2 }
   0x6   : > { %p434_p4 = scmp.lt.s32.totalorder (!%p346_p3), %s2281_s24, 1 }
   0x7   : > { %349 = sbr.rel (%p346_p3) target bundleno = 321 (0x141), region = 48 }
   0xc   : > { %v1966_v0 = vld [vmem:[%s2700_s4 + $0x2] sm:$0x3]  ;;  %vm594_vm0 = vcmask 1041408   ;;  %v558_v2 = vld [vmem:[%s2700_s4] sm:$0x3]  ;;  %s2711_s24 = smov (!%p434_p4, %s2281_s24), 1 }
   0xd   : > { %2193 = vmatprep.subr.msk.bf16.mxu1 %vm594_vm0, %v1966_v0  ;;  %2192 = vmatprep.subr.msk.bf16.mxu0 %vm594_vm0, %v1966_v0  ;;  %v596_v1 = vsel %vm594_vm0, %v1966_v0, 0  ;;  %v1983_v3 = vld [vmem:[%s2700_s4 + $0x4] sm:$0x3]  ;;  %v1992_v4 = vld [vmem:[%s2700_s4 + $0x6] sm:$0x3]  ;;  %s2369_s13 = smul.u32 136, %s2711_s24 }
   0xe   : > { %2191 = vmatpush3.bf16.msra.mxu1 %v596_v1  ;;  %2101 = vmatpush3.bf16.msra.mxu0 %v596_v1  ;;  %vm581_vm1 = vcmask 31744   ;;  %v696_v5 = vsel %vm594_vm0, %v558_v2, 0  ;;  %v905_v6 = vsel %vm594_vm0, %v1983_v3, 0  ;;  %vm763_vm2 = vsmask.f32 3328  ;;  %s2054_s22 = sshll.u32 %s2711_s24, 5 }
   0xf   : > { %2194 = vmatprep.subr.msk.bf16.mxu1 %vm594_vm0, %v558_v2  ;;  %2195 = vmatprep.subr.msk.bf16.mxu0 %vm594_vm0, %v1983_v3  ;;  %s2376_s16 = scalar_lea.vmem %s2696_s0, %s2369_s13  ;;  %s2382_s19 = scalar_lea.vmem %s2698_s2, %s2369_s13  ;;  %vm764_vm3 = vsmask.f32 7440  ;;  %v2386_v7 = vsel %vm594_vm0, %v1992_v4, 0  ;;  %v2001_v11 = vld [vmem:[%s2700_s4 + $0x8] sm:$0x3]  ;;  %vm1793_vm5 = vcmask 60416  }
  0x10   : > { %v539_v8 = vld [vmem:[%s2382_s19] sm:$0xf]  ;;  %v2390_v9 = vld [vmem:[%s2382_s19 + $0x10] sm:$0xf]  ;;  %v508_v34 = vld [vmem:[%s2376_s16 + $0x4] sm:$0x1]  ;;  %s2669_s29 = scalar_lea.vmem %s2703_s7, %s2054_s22 }
  0x11   : > { %v2393_v10 = vld [vmem:[%s2382_s19 + $0x20] sm:$0xf]  ;;  %v1967_v12 = vcombine.low %v539_v8, %v2390_v9  ;;  %v2400_v13 = vld [vmem:[%s2382_s19 + $0x30] sm:$0xf]  ;;  %v2441_v35 = vsel %vm594_vm0, %v2001_v11, 0  ;;  %v776_v39 = vshll.u32 %v508_v34, 16  ;;  %vm2455_vm4 = vmor %vm763_vm2, %vm764_vm3 }
  0x12   : > { %v2403_v14 = vld [vmem:[%s2382_s19 + $0x40] sm:$0xf]  ;;  %v2406_v15 = vld [vmem:[%s2382_s19 + $0x50] sm:$0xf]  ;;  %v1968_v18 = vcombine.low %v2393_v10, %v2400_v13  ;;  %v512_v38 = vld [vmem:[%s2376_s16 + $0x14] sm:$0x1] }
  0x13   : > { %v2409_v16 = vld [vmem:[%s2382_s19 + $0x60] sm:$0xf]  ;;  %v2412_v17 = vld [vmem:[%s2382_s19 + $0x70] sm:$0xf]  ;;  %v1969_v19 = vcombine.low %v2403_v14, %v2406_v15  ;;  %2102 = vmatprep.mubr.msk.bf16.mxu0 %vm581_vm1, %v1967_v12  ;;  %v790_v44 = vshll.u32 %v512_v38, 16  ;;  %v778_v48 = vrot.slane %v776_v39, 5 }
  0x14   : > { %v507_v20 = vld [vmem:[%s2376_s16] sm:$0xf]  ;;  %v1970_v21 = vcombine.low %v2409_v16, %v2412_v17  ;;  %v2423_v22 = vld [vmem:[%s2376_s16 + $0x10] sm:$0xf]  ;;  %2103 = vmatmul.mubr.msk.bf16.vlgmr.msra.gmra.mxu0 %vm581_vm1, %v1968_v18  ;;  %v516_v45 = vld [vmem:[%s2376_s16 + $0x24] sm:$0x1] }
  0x15   : > { %v767_v23 = vshrl.u32 %v507_v20, 16  ;;  %v770_v24 = vshll.u32 %v507_v20, 16  ;;  %v2426_v25 = vld [vmem:[%s2376_s16 + $0x20] sm:$0xf]  ;;  %2106 = vmatprep.mubr.msk.bf16.mxu1 %vm581_vm1, %v1969_v19  ;;  %v1975_v26 = vcombine.low %v507_v20, %v2423_v22  ;;  %v781_v27 = vshrl.u32 %v2423_v22, 16  ;;  %2121 = vmatpush3.bf16.msra.mxu0 %v905_v6  ;;  %s2051_s11 = sadd.s32 128, %s2369_s13 }
  0x16   : > { %v784_v28 = vshll.u32 %v2423_v22, 16  ;;  %v2434_v29 = vld [vmem:[%s2376_s16 + $0x30] sm:$0xf]  ;;  %v795_v30 = vshrl.u32 %v2426_v25, 16  ;;  %2107 = vmatmul.mubr.msk.bf16.vlgmr.msra.gmra.mxu1 %vm581_vm1, %v1970_v21  ;;  %v798_v33 = vshll.u32 %v2426_v25, 16  ;;  %2197 = vmatprep.subr.msk.bf16.mxu0 %vm594_vm0, %v2001_v11  ;;  %v804_v51 = vshll.u32 %v516_v45, 16  ;;  %s459_s15 = scalar_lea.vmem %s2697_s1, %s2051_s11  ;;  %s493_s17 = scalar_lea.vmem %s2699_s3, %s2051_s11 }
  0x17   : > { %v769_v31 = vrot.slane %v767_v23, 4  ;;  %v772_v32 = vrot.slane %v770_v24, 5  ;;  %2111 = vmatpush3.bf16.msra.mxu1 %v696_v5  ;;  %2112 = vmatprep.mubr.msk.bf16.mxu1 %vm581_vm1, %v1975_v26  ;;  %v809_v36 = vshrl.u32 %v2434_v29, 16  ;;  %v812_v37 = vshll.u32 %v2434_v29, 16  ;;  %v520_v46 = vld [vmem:[%s2376_s16 + $0x34] sm:$0x1] }
  0x18   : > { %v783_v40 = vrot.slane %v781_v27, 4  ;;  %2196 = vmatprep.subr.msk.bf16.mxu1 %vm594_vm0, %v1992_v4  ;;  %v1976_v41 = vcombine.low %v2426_v25, %v2434_v29  ;;  %v786_v43 = vrot.slane %v784_v28, 5  ;;  %v797_v49 = vrot.slane %v795_v30, 4  ;;  %v2460_v52 = vld [vmem:[%s2376_s16 + $0x40] sm:$0xf] }
  0x19   : > { %v773_v42 = vor.u32 %v772_v32, %v769_v31  ;;  %v800_v50 = vrot.slane %v798_v33, 5  ;;  %v792_v55 = vrot.slane %v790_v44, 5  ;;  %v811_v56 = vrot.slane %v809_v36, 4  ;;  %v2010_v57 = vld [vmem:[%s2700_s4 + $0xa] sm:$0x3] }
  0x1a   : > { %v787_v54 = vor.u32 %v786_v43, %v783_v40  ;;  %v806_v59 = vrot.slane %v804_v51, 5  ;;  %v814_v60 = vrot.slane %v812_v37, 5  ;;  %v818_v61 = vshll.u32 %v520_v46, 16  ;;  %v2466_v62 = vld [vmem:[%s2376_s16 + $0x50] sm:$0xf] }
  0x1b   : > { %v774_v53 = vrot.slane %v773_v42, 4  ;;  %v801_v58 = vor.u32 %v800_v50, %v797_v49  ;;  %v1977_v1 = vcombine.low %v2460_v52, %v2466_v62  ;;  %v823_v2 = vshrl.u32 %v2460_v52, 16  ;;  %v2474_v3 = vld [vmem:[%s2376_s16 + $0x60] sm:$0xf]  ;;  %v2478_v11 = vld [vmem:[%s2376_s16 + $0x70] sm:$0xf] }
  0x1c   : > { %v788_v0 = vrot.slane %v787_v54, 4  ;;  %v815_v5 = vor.u32 %v814_v60, %v811_v56  ;;  %v820_v6 = vrot.slane %v818_v61, 5  ;;  %v826_v8 = vshll.u32 %v2460_v52, 16  ;;  %v524_v20 = vld [vmem:[%s2376_s16 + $0x44] sm:$0x1] }
  0x1d   : > { %v779_v63 = vsel %vm2455_vm4, %v774_v53, %v778_v48  ;;  %v802_v4 = vrot.slane %v801_v58, 4  ;;  %v837_v18 = vshrl.u32 %v2466_v62, 16  ;;  %v840_v19 = vshll.u32 %v2466_v62, 16  ;;  %v528_v28 = vld [vmem:[%s2376_s16 + $0x54] sm:$0x1] }
  0x1e   : > { %2113 = vmatmul.mubr.msk.bf16.vlgmr.msra.gmra.mxu1 %vm581_vm1, %v1976_v41  ;;  %v2483_v12 = vsel %vm2455_vm4, %v788_v0, %v792_v55  ;;  %v2489_v21 = vsel %vm594_vm0, %v2010_v57, 0  ;;  %v816_v26 = vrot.slane %v815_v5, 4  ;;  %v1978_v27 = vcombine.low %v2474_v3, %v2478_v11  ;;  %v532_v30 = vld [vmem:[%s2376_s16 + $0x64] sm:$0x1]  ;;  %v536_v34 = vld [vmem:[%s2376_s16 + $0x74] sm:$0x1] }
  0x1f   : > { %v1984_v23 = vcombine.low %v779_v63, %v2483_v12  ;;  %2131 = vmatpush3.bf16.msra.mxu1 %v2386_v7  ;;  %v2495_v24 = vsel %vm2455_vm4, %v802_v4, %v806_v59  ;;  %2116 = vmatprep.mubr.msk.bf16.mxu1 %vm581_vm1, %v1977_v1  ;;  %v851_v31 = vshrl.u32 %v2474_v3, 16  ;;  %v854_v32 = vshll.u32 %v2474_v3, 16  ;;  %v509_v40 = vld [vmem:[%s2376_s16 + $0x8] sm:$0xf]  ;;  %v513_v41 = vld [vmem:[%s2376_s16 + $0x18] sm:$0xf] }
  0x20   : > { %v865_v7 = vshrl.u32 %v2478_v11, 16  ;;  %v868_v33 = vshll.u32 %v2478_v11, 16  ;;  %2198 = vmatprep.subr.msk.bf16.mxu1 %vm594_vm0, %v2010_v57  ;;  %v2511_v36 = vsel %vm2455_vm4, %v816_v26, %v820_v6  ;;  %v825_v37 = vrot.slane %v823_v2, 4  ;;  %v2019_v42 = vld [vmem:[%s2700_s4 + $0xc] sm:$0x3] }
  0x21   : > { %2122 = vmatprep.mubr.msk.bf16.mxu0 %vm581_vm1, %v1984_v23  ;;  %v828_v38 = vrot.slane %v826_v8, 5  ;;  %v832_v39 = vshll.u32 %v524_v20, 16  ;;  %v1985_v43 = vcombine.low %v2495_v24, %v2511_v36  ;;  %v839_v44 = vrot.slane %v837_v18, 4  ;;  %v517_v6 = vld [vmem:[%s2376_s16 + $0x28] sm:$0xf] }
  0x22   : > { %v842_v45 = vrot.slane %v840_v19, 5  ;;  %v846_v46 = vshll.u32 %v528_v28, 16  ;;  %v853_v50 = vrot.slane %v851_v31, 4  ;;  %v856_v51 = vrot.slane %v854_v32, 5  ;;  %v521_v8 = vld [vmem:[%s2376_s16 + $0x38] sm:$0xf] }
  0x23   : > { %v829_v48 = vor.u32 %v828_v38, %v825_v37  ;;  %v834_v49 = vrot.slane %v832_v39, 5  ;;  %2123 = vmatmul.mubr.msk.bf16.vlgmr.msra.gmra.mxu0 %vm581_vm1, %v1985_v43  ;;  %v860_v55 = vshll.u32 %v532_v30, 16  ;;  %v867_v56 = vrot.slane %v865_v7, 4  ;;  %v2243_v31 = vld [vmem:[%s2382_s19 + $0x8] ss:$16 sps:$4 sm:$0xff]  }
  0x24   : > { %v843_v53 = vor.u32 %v842_v45, %v839_v44  ;;  %v848_v54 = vrot.slane %v846_v46, 5  ;;  %2141 = vmatpush3.bf16.msra.mxu0 %v2441_v35  ;;  %v857_v58 = vor.u32 %v856_v51, %v853_v50  ;;  %v870_v59 = vrot.slane %v868_v33, 5  ;;  %v525_v32 = vld [vmem:[%s2376_s16 + $0x48] sm:$0xf]  ;;  %v529_v37 = vld [vmem:[%s2376_s16 + $0x58] sm:$0xf] }
  0x25   : > { %v830_v57 = vrot.slane %v829_v48, 4  ;;  %v874_v60 = vshll.u32 %v536_v34, 16  ;;  %v862_v63 = vrot.slane %v860_v55, 5  ;;  %v1993_v0 = vcombine.low %v509_v40, %v513_v41  ;;  %2199 = vmatprep.subr.msk.bf16.mxu0 %vm594_vm0, %v2019_v42  ;;  %v533_v43 = vld [vmem:[%s2376_s16 + $0x68] sm:$0xf] }
  0x26   : > { %2117 = vmatmul.mubr.msk.bf16.gmra.mxu1 %vm581_vm1, %v1978_v27  ;;  %v844_v61 = vrot.slane %v843_v53, 4  ;;  %v1201_v1 = vshrl.u32 %v509_v40, 16  ;;  %v858_v35 = vrot.slane %v857_v58, 4  ;;  %v871_v4 = vor.u32 %v870_v59, %v867_v56  ;;  %v537_v44 = vld [vmem:[%s2376_s16 + $0x78] sm:$0xf] }
  0x27   : > { %v2526_v2 = vsel %vm2455_vm4, %v830_v57, %v834_v49  ;;  %v876_v5 = vrot.slane %v874_v60, 5  ;;  %2132 = vmatprep.mubr.msk.bf16.mxu1 %vm581_vm1, %v1993_v0  ;;  %v1204_v20 = vshll.u32 %v509_v40, 16  ;;  %v2536_v23 = vsel %vm594_vm0, %v2019_v42, 0  ;;  %v2557_v45 = vld [vmem:[%s2700_s4 + $0xe] sm:$0x3] }
  0x28   : > { %v2532_v18 = vsel %vm2455_vm4, %v844_v61, %v848_v54  ;;  %v1203_v19 = vrot.slane %v1201_v1, 4  ;;  %v2542_v27 = vsel %vm2455_vm4, %v858_v35, %v862_v63  ;;  %v872_v28 = vrot.slane %v871_v4, 4  ;;  %v510_v0 = vld [vmem:[%s2376_s16 + $0xc] sm:$0x1]  ;;  %v2244_v1 = vld [vmem:[%s2382_s19 + $0x28] ss:$16 sps:$4 sm:$0xff]  }
  0x29   : > { %v1986_v26 = vcombine.low %v2526_v2, %v2532_v18  ;;  %v1215_v30 = vshrl.u32 %v513_v41, 16  ;;  %v1218_v7 = vshll.u32 %v513_v41, 16  ;;  %v1994_v33 = vcombine.low %v517_v6, %v521_v8 }
  0x2a   : > { %v1229_v34 = vshrl.u32 %v517_v6, 16  ;;  %v2550_v38 = vsel %vm2455_vm4, %v872_v28, %v876_v5  ;;  %v1206_v39 = vrot.slane %v1204_v20, 5  ;;  %v1232_v40 = vshll.u32 %v517_v6, 16 }
  0x2b   : > { %2126 = vmatprep.mubr.msk.bf16.mxu0 %vm581_vm1, %v1986_v26  ;;  %v1243_v42 = vshrl.u32 %v521_v8, 16  ;;  %v1987_v41 = vcombine.low %v2542_v27, %v2550_v38  ;;  %v1217_v46 = vrot.slane %v1215_v30, 4  ;;  %v1220_v48 = vrot.slane %v1218_v7, 5  ;;  %v518_v30 = vld [vmem:[%s2376_s16 + $0x2c] sm:$0x1] }
  0x2c   : > { %v1246_v49 = vshll.u32 %v521_v8, 16  ;;  %v1231_v50 = vrot.slane %v1229_v34, 4  ;;  %v1234_v51 = vrot.slane %v1232_v40, 5  ;;  %v1995_v53 = vcombine.low %v525_v32, %v529_v37  ;;  %v514_v8 = vld [vmem:[%s2376_s16 + $0x1c] sm:$0x1] }
  0x2d   : > { %v1257_v54 = vshrl.u32 %v525_v32, 16  ;;  %2127 = vmatmul.mubr.msk.bf16.gmra.mxu0 %vm581_vm1, %v1987_v41  ;;  %v1245_v55 = vrot.slane %v1243_v42, 4  ;;  %v1260_v56 = vshll.u32 %v525_v32, 16  ;;  %v1271_v57 = vshrl.u32 %v529_v37, 16  ;;  %v522_v34 = vld [vmem:[%s2376_s16 + $0x3c] sm:$0x1] }
  0x2e   : > { %2133 = vmatmul.mubr.msk.bf16.vlgmr.msra.gmra.mxu1 %vm581_vm1, %v1994_v33  ;;  %v1274_v58 = vshll.u32 %v529_v37, 16  ;;  %v1248_v59 = vrot.slane %v1246_v49, 5  ;;  %2142 = vmatprep.mubr.msk.bf16.mxu0 %vm581_vm1, %v2243_v31  ;;  %v1285_v61 = vshrl.u32 %v533_v43, 16  ;;  %v1288_v63 = vshll.u32 %v533_v43, 16  ;;  %v2247_v40 = vld [vmem:[%s2382_s19 + $0x48] ss:$16 sps:$4 sm:$0xff]  }
  0x2f   : > { %2151 = vmatpush3.bf16.msra.mxu1 %v2489_v21  ;;  %v1259_v60 = vrot.slane %v1257_v54, 4  ;;  %2136 = vmatprep.mubr.msk.bf16.mxu1 %vm581_vm1, %v1995_v53  ;;  %v1262_v35 = vrot.slane %v1260_v56, 5  ;;  %v1273_v4 = vrot.slane %v1271_v57, 4  ;;  %v1996_v5 = vcombine.low %v533_v43, %v537_v44  ;;  %v2037_v49 = vld [vmem:[%s2700_s4 + $0x10] sm:$0x3] }
  0x30   : > { %v1299_v6 = vshrl.u32 %v537_v44, 16  ;;  %2200 = vmatprep.subr.msk.bf16.mxu1 %vm594_vm0, %v2557_v45  ;;  %v1276_v20 = vrot.slane %v1274_v58, 5  ;;  %v1287_v21 = vrot.slane %v1285_v61, 4  ;;  %v1302_v26 = vshll.u32 %v537_v44, 16  ;;  %v526_v54 = vld [vmem:[%s2376_s16 + $0x4c] sm:$0x1] }
  0x31   : > { %v1207_v28 = vor.u32 %v1206_v39, %v1203_v19  ;;  %v1290_v31 = vrot.slane %v1288_v63, 5  ;;  %v1210_v32 = vshll.u32 %v510_v0, 16  ;;  %v1221_v7 = vor.u32 %v1220_v48, %v1217_v46  ;;  %v530_v58 = vld [vmem:[%s2376_s16 + $0x5c] sm:$0x1] }
  0x32   : > { %v1224_v33 = vshll.u32 %v514_v8, 16  ;;  %v1301_v37 = vrot.slane %v1299_v6, 4  ;;  %v1235_v43 = vor.u32 %v1234_v51, %v1231_v50  ;;  %v1238_v41 = vshll.u32 %v518_v30, 16 }
  0x33   : > { %v1208_v42 = vrot.slane %v1207_v28, 4  ;;  %v1212_v53 = vrot.slane %v1210_v32, 5  ;;  %v1222_v19 = vrot.slane %v1221_v7, 4  ;;  %v1249_v44 = vor.u32 %v1248_v59, %v1245_v55  ;;  %v534_v59 = vld [vmem:[%s2376_s16 + $0x6c] sm:$0x1] }
  0x34   : > { %v1226_v39 = vrot.slane %v1224_v33, 5  ;;  %v1304_v56 = vrot.slane %v1302_v26, 5  ;;  %v1236_v46 = vrot.slane %v1235_v43, 4  ;;  %v1240_v48 = vrot.slane %v1238_v41, 5  ;;  %v538_v28 = vld [vmem:[%s2376_s16 + $0x7c] sm:$0x1] }
  0x35   : > { %v1252_v57 = vshll.u32 %v522_v34, 16  ;;  %2143 = vmatmul.mubr.msk.bf16.vlgmr.msra.gmra.mxu0 %vm581_vm1, %v2244_v1  ;;  %v1213_v50 = vsel %vm2455_vm4, %v1208_v42, %v1212_v53  ;;  %v1250_v61 = vrot.slane %v1249_v44, 4  ;;  %v2020_v55 = vcombine.low %v2423_v22, %v2426_v25  ;;  %v2248_v7 = vld [vmem:[%s2382_s19 + $0x68] ss:$16 sps:$4 sm:$0xff]  }
  0x36   : > { %2137 = vmatmul.mubr.msk.bf16.gmra.mxu1 %vm581_vm1, %v1996_v5  ;;  %v1227_v51 = vsel %vm2455_vm4, %v1222_v19, %v1226_v39  ;;  %2161 = vmatpush3.bf16.msra.mxu0 %v2536_v23  ;;  %v1241_v0 = vsel %vm2455_vm4, %v1236_v46, %v1240_v48  ;;  %v1263_v5 = vor.u32 %v1262_v35, %v1259_v60  ;;  %v1266_v6 = vshll.u32 %v526_v54, 16  ;;  %v555_v46 = vld [vmem:[%s459_s15] sm:$0xf] }
  0x37   : > { %2146 = vmatprep.mubr.msk.bf16.mxu0 %vm581_vm1, %v2247_v40  ;;  %v2011_v63 = vcombine.low %v1213_v50, %v1227_v51  ;;  %v1254_v1 = vrot.slane %v1252_v57, 5  ;;  %2201 = vmatprep.subr.msk.bf16.mxu0 %vm594_vm0, %v2037_v49  ;;  %v1277_v8 = vor.u32 %v1276_v20, %v1273_v4  ;;  %v1280_v26 = vshll.u32 %v530_v58, 16  ;;  %v556_v57 = vld [vmem:[%s459_s15 + $0x4] sm:$0x1] }
  0x38   : > { %v1291_v30 = vor.u32 %v1290_v31, %v1287_v21  ;;  %v1264_v25 = vrot.slane %v1263_v5, 4  ;;  %v1294_v23 = vshll.u32 %v534_v59, 16  ;;  %v1305_v32 = vor.u32 %v1304_v56, %v1301_v37 }
  0x39   : > { %2152 = vmatprep.mubr.msk.bf16.mxu1 %vm581_vm1, %v2011_v63  ;;  %v1255_v22 = vsel %vm2455_vm4, %v1250_v61, %v1254_v1  ;;  %v1268_v34 = vrot.slane %v1266_v6, 5  ;;  %v1278_v40 = vrot.slane %v1277_v8, 4  ;;  %v1282_v60 = vrot.slane %v1280_v26, 5 }
  0x3a   : > { %v2012_v33 = vcombine.low %v1241_v0, %v1255_v22  ;;  %v1292_v35 = vrot.slane %v1291_v30, 4  ;;  %v1296_v42 = vrot.slane %v1294_v23, 5  ;;  %v1306_v4 = vrot.slane %v1305_v32, 4 }
  0x3b   : > { %v1308_v20 = vshll.u32 %v538_v28, 16  ;;  %v1531_v21 = vsel %vm594_vm0, %v2557_v45, 0  ;;  %v1269_v31 = vsel %vm2455_vm4, %v1264_v25, %v1268_v34  ;;  %v1283_v43 = vsel %vm2455_vm4, %v1278_v40, %v1282_v60 }
  0x3c   : > { %v2013_v37 = vcombine.low %v1269_v31, %v1283_v43  ;;  %v1297_v53 = vsel %vm2455_vm4, %v1292_v35, %v1296_v42  ;;  %v2021_v19 = vcombine.low %v2434_v29, %v2460_v52  ;;  %v2022_v44 = vcombine.low %v2466_v62, %v2474_v3 }
  0x3d   : > { %v1310_v41 = vrot.slane %v1308_v20, 5  ;;  %2147 = vmatmul.mubr.msk.bf16.gmra.mxu0 %vm581_vm1, %v2248_v7  ;;  %v2029_v54 = vcombine.low %v2390_v9, %v2393_v10  ;;  %v1640_v56 = vsel %vm594_vm0, %v2037_v49, 0  ;;  %v1607_v29 = vshrl.u32 %v555_v46, 16 }
  0x3e   : > { %2153 = vmatmul.mubr.msk.bf16.vlgmr.msra.gmra.mxu1 %vm581_vm1, %v2012_v33  ;;  %2162 = vmatprep.mubr.msk.bf16.mxu0 %vm581_vm1, %v2020_v55  ;;  %v1610_v52 = vshll.u32 %v555_v46, 16  ;;  %v2030_v62 = vcombine.low %v2400_v13, %v2403_v14  ;;  %v2023_v3 = vcombine.low %v2478_v11, %v555_v46  ;;  %v2031_v9 = vcombine.low %v2406_v15, %v2409_v16  ;;  %v557_v14 = vld [vmem:[%s493_s17] sm:$0xf] }
  0x3f   : > { %2171 = vmatpush3.bf16.msra.mxu1 %v1531_v21  ;;  %v1311_v45 = vsel %vm2455_vm4, %v1306_v4, %v1310_v41  ;;  %2156 = vmatprep.mubr.msk.bf16.mxu1 %vm581_vm1, %v2013_v37  ;;  %v1609_v10 = vrot.slane %v1607_v29, 4  ;;  %v2038_v48 = vcombine.low %v2483_v12, %v2495_v24  ;;  %v1616_v13 = vshll.u32 %v556_v57, 16 }
  0x40   : > { %v2014_v39 = vcombine.low %v1297_v53, %v1311_v45  ;;  %v1612_v49 = vrot.slane %v1610_v52, 5  ;;  %v2039_v16 = vcombine.low %v2511_v36, %v2526_v2  ;;  %v2032_v11 = vcombine.low %v2412_v17, %v557_v14 }
  0x41   : > { %v1618_v12 = vrot.slane %v1616_v13, 5  ;;  %v2040_v24 = vcombine.low %v2532_v18, %v2542_v27 }
  0x42   : > { %v1613_v15 = vor.u32 %v1612_v49, %v1609_v10 }
  0x44   : > { %v1614_v58 = vrot.slane %v1613_v15, 4 }
  0x45   : > { %2163 = vmatmul.mubr.msk.bf16.vlgmr.msra.gmra.mxu0 %vm581_vm1, %v2021_v19 }
  0x46   : > { %2157 = vmatmul.mubr.msk.bf16.gmra.mxu1 %vm581_vm1, %v2014_v39  ;;  %2181 = vmatpush3.bf16.msra.mxu0 %v1640_v56  ;;  %v1619_v50 = vsel %vm2455_vm4, %v1614_v58, %v1618_v12 }
  0x47   : > { %2166 = vmatprep.mubr.msk.bf16.mxu0 %vm581_vm1, %v2022_v44  ;;  %2172 = vmatprep.mubr.msk.bf16.mxu1 %vm581_vm1, %v2029_v54  ;;  %v2041_v51 = vcombine.low %v2550_v38, %v1619_v50 }
  0x4d   : > { %2167 = vmatmul.mubr.msk.bf16.gmra.mxu0 %vm581_vm1, %v2023_v3 }
  0x4e   : > { %2173 = vmatmul.mubr.msk.bf16.vlgmr.msra.gmra.mxu1 %vm581_vm1, %v2030_v62  ;;  %2182 = vmatprep.mubr.msk.bf16.mxu0 %vm581_vm1, %v2038_v48 }
  0x4f   : > { %2176 = vmatprep.mubr.msk.bf16.mxu1 %vm581_vm1, %v2031_v9 }
  0x55   : > { %2183 = vmatmul.mubr.msk.bf16.vlgmr.msra.gmra.mxu0 %vm581_vm1, %v2039_v16 }
  0x56   : > { %2177 = vmatmul.mubr.msk.bf16.gmra.mxu1 %vm581_vm1, %v2032_v11  ;;  %2186 = vmatprep.mubr.msk.bf16.mxu0 %vm581_vm1, %v2040_v24 }
  0x5d   : > { %2187 = vmatmul.mubr.msk.bf16.gmra.mxu0 %vm581_vm1, %v2041_v51 }
  0xd4   : > { %v2104_v36 = vpop.f32.mrf.mxu0 }
  0xd6   : > { %v2108_v17 = vpop.f32.mrf.mxu1  ;;  %v632_v2 = vpop.f32.mrf.mxu0 }
  0xd8   : > { %v648_v61 = vpop.f32.mrf.mxu1  ;;  %v2105_v18 = vpop.f32.mrf.mxu0 }
  0xda   : > { %v2109_v55 = vpop.f32.mrf.mxu1  ;;  %v635_v63 = vpop.f32.mrf.mxu0 }
  0xdc   : > { %v2653_v27 = vpop.f32.mrf.mxu1 }
  0xde   : > { %v2114_v59 = vpop.f32.mrf.mxu1 }
  0xdf   : > { %v741_v39 = vadd.f32 %v2114_v59, %v2104_v36 }
  0xe0   : > { %v732_v0 = vpop.f32.mrf.mxu1 }
  0xe1   : > { %v733_v56 = vadd.f32 %v732_v0, %v632_v2 }
  0xe2   : > { %v2115_v1 = vpop.f32.mrf.mxu1 }
  0xe3   : > { %v2124_v5 = vpop.f32.mrf.mxu0  ;;  %v744_v62 = vadd.f32 %v2115_v1, %v2105_v18 }
  0xe4   : > { %v735_v6 = vpop.f32.mrf.mxu1  ;;  %v974_v52 = vadd.f32 %v2124_v5, %v741_v39 }
  0xe5   : > { %v941_v47 = vpop.f32.mrf.mxu0  ;;  %v736_v48 = vadd.f32 %v735_v6, %v635_v63 }
  0xe6   : > { %v2118_v8 = vpop.f32.mrf.mxu1  ;;  %v972_v10 = vadd.f32 %v941_v47, %v733_v56 }
  0xe7   : > { %v2125_v26 = vpop.f32.mrf.mxu0  ;;  %v757_v16 = vadd.f32 %v2118_v8, %v2108_v17 }
  0xe8   : > { %v748_v38 = vpop.f32.mrf.mxu1  ;;  %v975_v14 = vadd.f32 %v2125_v26, %v744_v62 }
  0xe9   : > { %v944_v28 = vpop.f32.mrf.mxu0  ;;  %v749_v24 = vadd.f32 %v748_v38, %v648_v61 }
  0xea   : > { %v2119_v30 = vpop.f32.mrf.mxu1  ;;  %v973_v51 = vadd.f32 %v944_v28, %v736_v48 }
  0xeb   : > { %v760_v36 = vadd.f32 %v2119_v30, %v2109_v55 }
  0xec   : > { %v751_v22 = vpop.f32.mrf.mxu1 }
  0xed   : > { %v2128_v25 = vpop.f32.mrf.mxu0  ;;  %v752_v5 = vadd.f32 %v751_v22, %v2653_v27 }
  0xee   : > { %v2134_v23 = vpop.f32.mrf.mxu1  ;;  %v978_v1 = vadd.f32 %v2128_v25, %v757_v16 }
  0xef   : > { %v957_v32 = vpop.f32.mrf.mxu0  ;;  %v1084_v49 = vadd.f32 %v2134_v23, %v974_v52 }
  0xf0   : > { %v1051_v7 = vpop.f32.mrf.mxu1  ;;  %v976_v26 = vadd.f32 %v957_v32, %v749_v24 }
  0xf1   : > { %v2129_v33 = vpop.f32.mrf.mxu0  ;;  %v1082_v15 = vadd.f32 %v1051_v7, %v972_v10 }
  0xf2   : > { %v2135_v34 = vpop.f32.mrf.mxu1  ;;  %v979_v8 = vadd.f32 %v2129_v33, %v760_v36 }
  0xf3   : > { %v960_v40 = vpop.f32.mrf.mxu0  ;;  %v1085_v50 = vadd.f32 %v2135_v34, %v975_v14 }
  0xf4   : > { %v1054_v60 = vpop.f32.mrf.mxu1  ;;  %v977_v30 = vadd.f32 %v960_v40, %v752_v5  ;;  %v2046_v40 = vld [vmem:[%s2701_s5] ss:$0 sm:$0xff] }
  0xf5   : > { %v2144_v35 = vpop.f32.mrf.mxu0  ;;  %v1083_v63 = vadd.f32 %v1054_v60, %v973_v51 }
  0xf6   : > { %v2138_v42 = vpop.f32.mrf.mxu1  ;;  %v1194_v58 = vadd.f32 %v2144_v35, %v1084_v49 }
  0xf7   : > { %v1161_v4 = vpop.f32.mrf.mxu0  ;;  %v1088_v7 = vadd.f32 %v2138_v42, %v978_v1 }
  0xf8   : > { %v1067_v20 = vpop.f32.mrf.mxu1  ;;  %v1192_v18 = vadd.f32 %v1161_v4, %v1082_v15 }
  0xf9   : > { %v2145_v21 = vpop.f32.mrf.mxu0  ;;  %v1086_v34 = vadd.f32 %v1067_v20, %v976_v26 }
  0xfa   : > { %v2139_v31 = vpop.f32.mrf.mxu1  ;;  %v1195_v23 = vadd.f32 %v2145_v21, %v1085_v50 }
  0xfb   : > { %v1164_v43 = vpop.f32.mrf.mxu0  ;;  %v1089_v4 = vadd.f32 %v2139_v31, %v979_v8 }
  0xfc   : > { %v1070_v37 = vpop.f32.mrf.mxu1  ;;  %v1193_v35 = vadd.f32 %v1164_v43, %v1083_v63 }
  0xfd   : > { %v2148_v41 = vpop.f32.mrf.mxu0  ;;  %v1087_v60 = vadd.f32 %v1070_v37, %v977_v30 }
  0xfe   : > { %v2154_v53 = vpop.f32.mrf.mxu1  ;;  %v1198_v22 = vadd.f32 %v2148_v41, %v1088_v7 }
  0xff   : > { %v1177_v45 = vpop.f32.mrf.mxu0  ;;  %v1408_v0 = vadd.f32 %v2154_v53, %v1194_v58 }
 0x100   : > { %v1375_v19 = vpop.f32.mrf.mxu1 }
 0x101   : > { %v2149_v44 = vpop.f32.mrf.mxu0  ;;  %v1406_v17 = vadd.f32 %v1375_v19, %v1192_v18  ;;  %v1196_v19 = vadd.f32 %v1177_v45, %v1086_v34  ;;  %v2047_v45 = vld [vmem:[%s2702_s6] ss:$0 sm:$0xff] }
 0x102   : > { %v2155_v54 = vpop.f32.mrf.mxu1  ;;  %v1199_v52 = vadd.f32 %v2149_v44, %v1089_v4 }
 0x103   : > { %v2655_v46 = vpop.f32.mrf.mxu0  ;;  %v1409_v55 = vadd.f32 %v2155_v54, %v1195_v23 }
 0x104   : > { %v1378_v29 = vpop.f32.mrf.mxu1  ;;  %v1197_v41 = vadd.f32 %v2655_v46, %v1087_v60 }
 0x105   : > { %v2164_v3 = vpop.f32.mrf.mxu0  ;;  %v1407_v56 = vadd.f32 %v1378_v29, %v1193_v35 }
 0x106   : > { %v2158_v9 = vpop.f32.mrf.mxu1  ;;  %v1504_v28 = vadd.f32 %v2164_v3, %v1408_v0 }
 0x107   : > { %v1471_v57 = vpop.f32.mrf.mxu0  ;;  %v1412_v62 = vadd.f32 %v2158_v9, %v1198_v22 }
 0x108   : > { %v1391_v13 = vpop.f32.mrf.mxu1  ;;  %v1502_v39 = vadd.f32 %v1471_v57, %v1406_v17 }
 0x109   : > { %v2165_v11 = vpop.f32.mrf.mxu0  ;;  %v1410_v43 = vadd.f32 %v1391_v13, %v1196_v19 }
 0x10a   : > { %v2159_v12 = vpop.f32.mrf.mxu1  ;;  %v1505_v33 = vadd.f32 %v2165_v11, %v1409_v55 }
 0x10b   : > { %v1474_v2 = vpop.f32.mrf.mxu0  ;;  %v1413_v29 = vadd.f32 %v2159_v12, %v1199_v52 }
 0x10c   : > { %v1394_v59 = vpop.f32.mrf.mxu1  ;;  %v1503_v37 = vadd.f32 %v1474_v2, %v1407_v56 }
 0x10d   : > { %v2168_v6 = vpop.f32.mrf.mxu0  ;;  %v1411_v57 = vadd.f32 %v1394_v59, %v1197_v41 }
 0x10e   : > { %v2174_v47 = vpop.f32.mrf.mxu1  ;;  %v1508_v48 = vadd.f32 %v2168_v6, %v1412_v62 }
 0x10f   : > { %v1487_v61 = vpop.f32.mrf.mxu0  ;;  %v1600_v27 = vadd.f32 %v2174_v47, %v1504_v28 }
 0x110   : > { %v1567_v38 = vpop.f32.mrf.mxu1  ;;  %v1506_v13 = vadd.f32 %v1487_v61, %v1410_v43 }
 0x111   : > { %v2169_v53 = vpop.f32.mrf.mxu0  ;;  %v1598_v42 = vadd.f32 %v1567_v38, %v1502_v39 }
 0x112   : > { %v2175_v25 = vpop.f32.mrf.mxu1  ;;  %v1509_v46 = vadd.f32 %v2169_v53, %v1413_v29 }
 0x113   : > { %v1490_v32 = vpop.f32.mrf.mxu0  ;;  %v1601_v3 = vadd.f32 %v2175_v25, %v1505_v33 }
 0x114   : > { %v1570_v21 = vpop.f32.mrf.mxu1  ;;  %v1507_v0 = vadd.f32 %v1490_v32, %v1411_v57 }
 0x115   : > { %v2184_v20 = vpop.f32.mrf.mxu0  ;;  %v1599_v15 = vadd.f32 %v1570_v21, %v1503_v37 }
 0x116   : > { %v2178_v31 = vpop.f32.mrf.mxu1  ;;  %v1709_v54 = vadd.f32 %v2184_v20, %v1600_v27 }
 0x117   : > { %v1676_v10 = vpop.f32.mrf.mxu0  ;;  %v1604_v12 = vadd.f32 %v2178_v31, %v1508_v48 }
 0x118   : > { %v1583_v44 = vpop.f32.mrf.mxu1  ;;  %v1724_v9 = vmul.f32 %v2046_v40, %v1709_v54  ;;  %v1707_v49 = vadd.f32 %v1676_v10, %v1598_v42 }
 0x119   : > { %v2185_v14 = vpop.f32.mrf.mxu0  ;;  %v1602_v18 = vadd.f32 %v1583_v44, %v1506_v13 }
 0x11a   : > { %v2179_v16 = vpop.f32.mrf.mxu1  ;;  %v1739_v11 = vadd.f32 %v2047_v45, %v1724_v9  ;;  %v1722_v24 = vmul.f32 %v2046_v40, %v1707_v49  ;;  %v1710_v58 = vadd.f32 %v2185_v14, %v1601_v3 }
 0x11b   : > { %v1679_v50 = vpop.f32.mrf.mxu0  ;;  %v1605_v47 = vadd.f32 %v2179_v16, %v1509_v46 }
 0x11c   : > { %v1755_v51 = vmul.f32 0.70710677, %v1739_v11  ;;  %v1737_v36 = vadd.f32 %v2047_v45, %v1722_v24  ;;  %v1725_v2 = vmul.f32 %v2046_v40, %v1710_v58  ;;  %v1708_v1 = vadd.f32 %v1679_v50, %v1599_v15  ;;  %v1586_v63 = vpop.f32.mrf.mxu1 }
 0x11d   : > { %v2188_v5 = vpop.f32.mrf.mxu0  ;;  %v1603_v61 = vadd.f32 %v1586_v63, %v1507_v0  ;;  %v1747_v52 = vmul.f32 0.5, %v1739_v11 }
 0x11e   : > { %2251 = verf.f32 %v1755_v51  ;;  %v1753_v59 = vmul.f32 0.70710677, %v1737_v36  ;;  %v1740_v6 = vadd.f32 %v2047_v45, %v1725_v2  ;;  %v1723_v26 = vmul.f32 %v2046_v40, %v1708_v1 }
 0x11f   : > { %v1713_v23 = vadd.f32 %v2188_v5, %v1604_v12  ;;  %v1692_v17 = vpop.f32.mrf.mxu0  ;;  %v1745_v43 = vmul.f32 0.5, %v1737_v36 }
 0x120   : > { %2253 = verf.f32 %v1753_v59  ;;  %v1756_v8 = vmul.f32 0.70710677, %v1740_v6  ;;  %v1711_v7 = vadd.f32 %v1692_v17, %v1602_v18  ;;  %v1738_v38 = vadd.f32 %v2047_v45, %v1723_v26 }
 0x121   : > { %v1728_v34 = vmul.f32 %v2046_v40, %v1713_v23  ;;  %v2189_v28 = vpop.f32.mrf.mxu0  ;;  %v1748_v37 = vmul.f32 0.5, %v1740_v6 }
 0x122   : > { %2255 = verf.f32 %v1756_v8  ;;  %v1726_v55 = vmul.f32 %v2046_v40, %v1711_v7  ;;  %v1714_v30 = vadd.f32 %v2189_v28, %v1605_v47  ;;  %v1754_v35 = vmul.f32 0.70710677, %v1738_v38 }
 0x123   : > { %v1743_v4 = vadd.f32 %v2047_v45, %v1728_v34  ;;  %v1695_v53 = vpop.f32.mrf.mxu0  ;;  %v1746_v9 = vmul.f32 0.5, %v1738_v38 }
 0x124   : > { %v1741_v25 = vadd.f32 %v2047_v45, %v1726_v55  ;;  %v1729_v39 = vmul.f32 %v2046_v40, %v1714_v30  ;;  %v1712_v27 = vadd.f32 %v1695_v53, %v1603_v61  ;;  %2257 = verf.f32 %v1754_v35 }
 0x125   : > { %v1759_v22 = vmul.f32 0.70710677, %v1743_v4  ;;  %v1751_v16 = vmul.f32 0.5, %v1743_v4 }
 0x126   : > { %v1757_v60 = vmul.f32 0.70710677, %v1741_v25  ;;  %v1744_v56 = vadd.f32 %v2047_v45, %v1729_v39  ;;  %v1727_v32 = vmul.f32 %v2046_v40, %v1712_v27  ;;  %v1749_v11 = vmul.f32 0.5, %v1741_v25 }
 0x127   : > { %2259 = verf.f32 %v1759_v22 }
 0x128   : > { %2261 = verf.f32 %v1757_v60  ;;  %v1760_v21 = vmul.f32 0.70710677, %v1744_v56  ;;  %v1742_v19 = vadd.f32 %v2047_v45, %v1727_v32  ;;  %v1752_v51 = vmul.f32 0.5, %v1744_v56 }
 0x12a   : > { %2263 = verf.f32 %v1760_v21  ;;  %v1758_v33 = vmul.f32 0.70710677, %v1742_v19  ;;  %v1750_v5 = vmul.f32 0.5, %v1742_v19 }
 0x12b   : > { %v2252_v42 = vpop.eup %2251 }
 0x12c   : > { %v1771_v62 = vadd.f32 1.0, %v2252_v42  ;;  %2265 = verf.f32 %v1758_v33 }
 0x12d   : > { %v2254_v20 = vpop.eup %2253 }
 0x12e   : > { %v1779_v31 = vmul.f32 %v1771_v62, %v1747_v52  ;;  %v1769_v54 = vadd.f32 1.0, %v2254_v20 }
 0x12f   : > { %v2256_v3 = vpop.eup %2255 }
 0x130   : > { %v1787_v40 = vpack.c.bf16 %v1779_v31, %v1779_v31  ;;  %v1777_v41 = vmul.f32 %v1769_v54, %v1745_v43  ;;  %v1772_v29 = vadd.f32 1.0, %v2256_v3 }
 0x131   : > { %v2258_v45 = vpop.eup %2257 }
 0x132   : > { %1796 = vst.msk [vmem:[%s2669_s29 + $0x8] sm:$0xf] %vm1793_vm5, %v1787_v40  ;;  %v1785_v10 = vpack.c.bf16 %v1777_v41, %v1777_v41  ;;  %v1780_v44 = vmul.f32 %v1772_v29, %v1748_v37  ;;  %v1770_v49 = vadd.f32 1.0, %v2258_v45 }
 0x134   : > { %v2260_v48 = vpop.eup %2259  ;;  %1794 = vst.msk [vmem:[%s2669_s29] sm:$0xf] %vm1793_vm5, %v1785_v10  ;;  %v1788_v57 = vpack.c.bf16 %v1780_v44, %v1780_v44  ;;  %v1778_v15 = vmul.f32 %v1770_v49, %v1746_v9 }
 0x135   : > { %v2262_v14 = vpop.eup %2261  ;;  %v1775_v13 = vadd.f32 1.0, %v2260_v48 }
 0x136   : > { %1797 = vst.msk [vmem:[%s2669_s29 + $0xc] sm:$0xf] %vm1793_vm5, %v1788_v57  ;;  %v1773_v24 = vadd.f32 1.0, %v2262_v14  ;;  %v1786_v46 = vpack.c.bf16 %v1778_v15, %v1778_v15 }
 0x137   : > { %v2264_v58 = vpop.eup %2263  ;;  %v1783_v50 = vmul.f32 %v1775_v13, %v1751_v16 }
 0x138   : > { %v1781_v12 = vmul.f32 %v1773_v24, %v1749_v11  ;;  %v1776_v36 = vadd.f32 1.0, %v2264_v58  ;;  %1795 = vst.msk [vmem:[%s2669_s29 + $0x4] sm:$0xf] %vm1793_vm5, %v1786_v46 }
 0x139   : > { %v2266_v2 = vpop.eup %2265  ;;  %v1791_v18 = vpack.c.bf16 %v1783_v50, %v1783_v50 }
 0x13a   : > { %v1789_v0 = vpack.c.bf16 %v1781_v12, %v1781_v12  ;;  %v1784_v1 = vmul.f32 %v1776_v36, %v1752_v51  ;;  %v1774_v63 = vadd.f32 1.0, %v2266_v2 }
 0x13b   : > { %1800 = vst.msk [vmem:[%s2669_s29 + $0x18] sm:$0xf] %vm1793_vm5, %v1791_v18 }
 0x13c   : > { %1798 = vst.msk [vmem:[%s2669_s29 + $0x10] sm:$0xf] %vm1793_vm5, %v1789_v0  ;;  %v1792_v59 = vpack.c.bf16 %v1784_v1, %v1784_v1  ;;  %v1782_v6 = vmul.f32 %v1774_v63, %v1750_v5 }
 0x13e   : > { %1801 = vst.msk [vmem:[%s2669_s29 + $0x1c] sm:$0xf] %vm1793_vm5, %v1792_v59  ;;  %v1790_v47 = vpack.c.bf16 %v1782_v6, %v1782_v6 }
 0x140   : > { %1799 = vst.msk [vmem:[%s2669_s29 + $0x14] sm:$0xf] %vm1793_vm5, %v1790_v47 }
 0x141 PF: > { %s17_s26 = sadd.s32 1, %s2289_s26   ;;  %s2706_s24 = smov %s2285_s25 }
 0x142   : > { %p14_p5 = scmp.ge.s32.totalorder %s17_s26, 4   ;;  %s2707_s25 = smov %s2709_s27 }
 0x144   :  { %16 = sbr.rel (!%p14_p5) target bundleno = 2 (0x2), region = 95 }

// kernel: kernel_predictor_forward.7
= control target key start
LH: loop header
LB: loop body
LE: loop exit
PB: predicated region body
PF: predicated region fallthrough
CT: control target
= control target key end

     0   :  { %s1762_s24 = smov 0   ;;  %s1764_s25 = smov 0   ;;  %s1994_s0 = inlined_call_operand.vmem [shape: bf16[2,9,9,8], index: 0, kind: input, shape index: {}, may-alias: {0,1}]   ;;  %s1995_s1 = inlined_call_operand.vmem [shape: bf16[2,9,9,8], index: 1, kind: input, shape index: {}, may-alias: {0,1}]   ;;  %s1996_s2 = inlined_call_operand.vmem [shape: bf16[2,9,9,8], index: 2, kind: input, shape index: {}, may-alias: {2,3}]   ;;  %s1997_s3 = inlined_call_operand.vmem [shape: bf16[2,9,9,8], index: 3, kind: input, shape index: {}, may-alias: {2,3}]   ;;  %s1998_s4 = inlined_call_operand.vmem [shape: bf16[9,8,16], index: 4, kind: input, shape index: {}]   ;;  %s1999_s5 = inlined_call_operand.vmem [shape: f32[1,16], index: 5, kind: input, shape index: {}]   ;;  %s2000_s6 = inlined_call_operand.vmem [shape: f32[1,16], index: 6, kind: input, shape index: {}]   ;;  %s2001_s7 = inlined_call_operand.vmem [shape: bf16[2,4,8,16], index: 7, kind: output, shape index: {}]  }
   0x1   :  { %s1766_s26 = smov 0  }
   0x2 LB: > { %s29_s27 = sadd.s32 1, %s1716_s25  ;;  %p1503_p0 = scmp.ge.s32.totalorder %s1720_s26, 1  ;;  %s1720_s26 = sphi %s1766_s26, %s17_s26   ;;  %s1716_s25 = sphi %s1764_s25, %s2005_s25   ;;  %s1712_s24 = sphi %s1762_s24, %s2004_s24  }
   0x3   : > { %p31_p1 = scmp.ge.s32.totalorder %s29_s27, 2  ;;  %p345_p2 = scmp.lt.s32.totalorder %s1720_s26, 3 }
   0x5   : > { %s2007_s27 = smov (%p31_p1, %s29_s27), 0  ;;  %p346_p3 = pnand %p1503_p0, %p345_p2 }
   0x6   : > { %p434_p4 = scmp.lt.s32.totalorder (!%p346_p3), %s1712_s24, 1 }
   0x7   : > { %349 = sbr.rel (%p346_p3) target bundleno = 289 (0x121), region = 48 }
   0xc   : > { %v1510_v0 = vld [vmem:[%s1998_s4 + $0x4] sm:$0xf]  ;;  %vm554_vm0 = vcmask 1043456   ;;  %v534_v1 = vld [vmem:[%s1998_s4] sm:$0xf]  ;;  %s2009_s24 = smov (!%p434_p4, %s1712_s24), 1 }
   0xd   : > { %1644 = vmatprep.subr.msk.bf16.mxu0 %vm554_vm0, %v1510_v0  ;;  %1645 = vmatprep.subr.msk.bf16.mxu1 %vm554_vm0, %v534_v1  ;;  %v556_v2 = vsel %vm554_vm0, %v1510_v0, 0  ;;  %v624_v3 = vsel %vm554_vm0, %v534_v1, 0  ;;  %v1519_v4 = vld [vmem:[%s1998_s4 + $0x8] sm:$0xf]  ;;  %v1524_v5 = vld [vmem:[%s1998_s4 + $0xc] sm:$0xf] }
   0xe   : > { %1591 = vmatpush3.bf16.msra.mxu0 %v556_v2  ;;  %1597 = vmatpush3.bf16.msra.mxu1 %v624_v3  ;;  %s1801_s13 = smul.u32 72, %s2009_s24  ;;  %vm547_vm1 = vcmask 64512   ;;  %v749_v14 = vsel %vm554_vm0, %v1519_v4, 0  ;;  %vm675_vm2 = vsmask.f32 3328  ;;  %v823_v23 = vsel %vm554_vm0, %v1524_v5, 0 }
   0xf   : > { %1646 = vmatprep.subr.msk.bf16.mxu0 %vm554_vm0, %v1519_v4  ;;  %1647 = vmatprep.subr.msk.bf16.mxu1 %vm554_vm0, %v1524_v5  ;;  %vm676_vm3 = vsmask.f32 7440  ;;  %v1529_v17 = vld [vmem:[%s1998_s4 + $0x10] sm:$0xf]  ;;  %v1534_v25 = vld [vmem:[%s1998_s4 + $0x14] sm:$0xf] }
  0x10   : > { %s1807_s16 = scalar_lea.vmem %s1994_s0, %s1801_s13  ;;  %s1813_s19 = scalar_lea.vmem %s1996_s2, %s1801_s13  ;;  %v1861_v35 = vsel %vm554_vm0, %v1529_v17, 0  ;;  %vm1869_vm4 = vmor %vm675_vm2, %vm676_vm3  ;;  %v1023_v46 = vsel %vm554_vm0, %v1534_v25, 0  ;;  %vm1341_vm5 = vcmask 125952  }
  0x11   : > { %v507_v6 = vld [vmem:[%s1807_s16] sm:$0xf]  ;;  %v1817_v7 = vld [vmem:[%s1807_s16 + $0x10] sm:$0xf]  ;;  %v508_v24 = vld [vmem:[%s1807_s16 + $0x4] sm:$0x1] }
  0x12   : > { %v523_v8 = vld [vmem:[%s1813_s19] sm:$0xf]  ;;  %v1821_v9 = vld [vmem:[%s1813_s19 + $0x10] sm:$0xf]  ;;  %v1515_v11 = vcombine.low %v507_v6, %v1817_v7  ;;  %v679_v18 = vshrl.u32 %v507_v6, 16  ;;  %v682_v19 = vshll.u32 %v507_v6, 16 }
  0x13   : > { %v1824_v10 = vld [vmem:[%s1813_s19 + $0x20] sm:$0xf]  ;;  %v1828_v12 = vld [vmem:[%s1813_s19 + $0x30] sm:$0xf]  ;;  %v1511_v13 = vcombine.low %v523_v8, %v1821_v9  ;;  %v693_v20 = vshrl.u32 %v1817_v7, 16  ;;  %v696_v22 = vshll.u32 %v1817_v7, 16 }
  0x14   : > { %v1512_v15 = vcombine.low %v1824_v10, %v1828_v12  ;;  %1598 = vmatprep.mubr.msk.bf16.mxu1 %vm547_vm1, %v1515_v11  ;;  %v1836_v16 = vld [vmem:[%s1807_s16 + $0x20] sm:$0xf]  ;;  %v1844_v21 = vld [vmem:[%s1807_s16 + $0x30] sm:$0xf]  ;;  %v681_v26 = vrot.slane %v679_v18, 4  ;;  %v684_v27 = vrot.slane %v682_v19, 5 }
  0x15   : > { %1592 = vmatprep.mubr.msk.bf16.mxu0 %vm547_vm1, %v1511_v13  ;;  %v695_v28 = vrot.slane %v693_v20, 4  ;;  %v1516_v29 = vcombine.low %v1836_v16, %v1844_v21  ;;  %v512_v30 = vld [vmem:[%s1807_s16 + $0x14] sm:$0x1]  ;;  %v698_v31 = vrot.slane %v696_v22, 5  ;;  %v707_v32 = vshrl.u32 %v1836_v16, 16  ;;  %s1559_s28 = sadd.s32 64, %s1801_s13 }
  0x16   : > { %1593 = vmatmul.mubr.msk.bf16.vlgmr.msra.gmra.mxu0 %vm547_vm1, %v1512_v15  ;;  %v710_v33 = vshll.u32 %v1836_v16, 16  ;;  %v509_v34 = vld [vmem:[%s1807_s16 + $0x8] sm:$0xf]  ;;  %v685_v36 = vor.u32 %v684_v27, %v681_v26  ;;  %v721_v37 = vshrl.u32 %v1844_v21, 16  ;;  %v724_v38 = vshll.u32 %v1844_v21, 16  ;;  %s1888_s8 = scalar_lea.vmem %s1995_s1, %s1559_s28  ;;  %s1562_s22 = sshll.u32 %s2009_s24, 4 }
  0x17   : > { %1603 = vmatpush3.bf16.msra.mxu0 %v749_v14  ;;  %1599 = vmatmul.mubr.msk.bf16.vlgmr.msra.gmra.mxu1 %vm547_vm1, %v1516_v29  ;;  %v688_v39 = vshll.u32 %v508_v24, 16  ;;  %v513_v40 = vld [vmem:[%s1807_s16 + $0x18] sm:$0xf]  ;;  %v699_v41 = vor.u32 %v698_v31, %v695_v28  ;;  %v709_v42 = vrot.slane %v707_v32, 4  ;;  %v516_v45 = vld [vmem:[%s1807_s16 + $0x24] sm:$0x1]  ;;  %s504_s29 = scalar_lea.vmem %s2001_s7, %s1562_s22 }
  0x18   : > { %1648 = vmatprep.subr.msk.bf16.mxu0 %vm554_vm0, %v1529_v17  ;;  %v712_v43 = vrot.slane %v710_v33, 5  ;;  %1609 = vmatpush3.bf16.msra.mxu1 %v823_v23  ;;  %v686_v47 = vrot.slane %v685_v36, 4  ;;  %v723_v48 = vrot.slane %v721_v37, 4  ;;  %v726_v49 = vrot.slane %v724_v38, 5  ;;  %v520_v51 = vld [vmem:[%s1807_s16 + $0x34] sm:$0x1] }
  0x19   : > { %v690_v50 = vrot.slane %v688_v39, 5  ;;  %1649 = vmatprep.subr.msk.bf16.mxu1 %vm554_vm0, %v1534_v25  ;;  %v700_v52 = vrot.slane %v699_v41, 4  ;;  %v702_v53 = vshll.u32 %v512_v30, 16  ;;  %v1525_v54 = vcombine.low %v509_v34, %v513_v40  ;;  %v517_v56 = vld [vmem:[%s1807_s16 + $0x28] sm:$0xf] }
  0x1a   : > { %v953_v55 = vshrl.u32 %v509_v34, 16  ;;  %v956_v58 = vshll.u32 %v509_v34, 16  ;;  %v967_v59 = vshrl.u32 %v513_v40, 16  ;;  %v970_v60 = vshll.u32 %v513_v40, 16  ;;  %v521_v61 = vld [vmem:[%s1807_s16 + $0x38] sm:$0xf] }
  0x1b   : > { %v691_v57 = vsel %vm1869_vm4, %v686_v47, %v690_v50  ;;  %v704_v62 = vrot.slane %v702_v53, 5  ;;  %1610 = vmatprep.mubr.msk.bf16.mxu1 %vm547_vm1, %v1525_v54  ;;  %v713_v0 = vor.u32 %v712_v43, %v709_v42  ;;  %v716_v1 = vshll.u32 %v516_v45, 16  ;;  %v1544_v14 = vld [vmem:[%s1998_s4 + $0x1c] sm:$0xf]  ;;  %v510_v20 = vld [vmem:[%s1807_s16 + $0xc] sm:$0x1] }
  0x1c   : > { %v955_v63 = vrot.slane %v953_v55, 4  ;;  %v958_v2 = vrot.slane %v956_v58, 5  ;;  %v969_v3 = vrot.slane %v967_v59, 4  ;;  %v972_v4 = vrot.slane %v970_v60, 5  ;;  %v514_v22 = vld [vmem:[%s1807_s16 + $0x1c] sm:$0x1] }
  0x1d   : > { %v727_v5 = vor.u32 %v726_v49, %v723_v48  ;;  %v1892_v6 = vsel %vm1869_vm4, %v700_v52, %v704_v62  ;;  %v714_v8 = vrot.slane %v713_v0, 4  ;;  %v718_v11 = vrot.slane %v716_v1, 5  ;;  %v1901_v23 = vld [vmem:[%s1888_s8] sm:$0xf]  ;;  %v1687_v36 = vld [vmem:[%s1813_s19 + $0x8] ss:$16 sps:$4 sm:$0xff]  }
  0x1e   : > { %v730_v13 = vshll.u32 %v520_v51, 16  ;;  %v1520_v15 = vcombine.low %v691_v57, %v1892_v6  ;;  %v1526_v18 = vcombine.low %v517_v56, %v521_v61  ;;  %v981_v19 = vshrl.u32 %v517_v56, 16  ;;  %v518_v38 = vld [vmem:[%s1807_s16 + $0x2c] sm:$0x1]  ;;  %v522_v43 = vld [vmem:[%s1807_s16 + $0x3c] sm:$0x1]  ;;  %s493_s16 = scalar_lea.vmem %s1997_s3, %s1559_s28 }
  0x1f   : > { %v728_v17 = vrot.slane %v727_v5, 4  ;;  %v1905_v24 = vsel %vm1869_vm4, %v714_v8, %v718_v11  ;;  %v984_v26 = vshll.u32 %v517_v56, 16  ;;  %v995_v27 = vshrl.u32 %v521_v61, 16  ;;  %v1539_v48 = vld [vmem:[%s1998_s4 + $0x18] sm:$0xf] }
  0x20   : > { %v732_v25 = vrot.slane %v730_v13, 5  ;;  %1604 = vmatprep.mubr.msk.bf16.mxu0 %vm547_vm1, %v1520_v15  ;;  %1611 = vmatmul.mubr.msk.bf16.vlgmr.msra.gmra.mxu1 %vm547_vm1, %v1526_v18  ;;  %v983_v28 = vrot.slane %v981_v19, 4  ;;  %v998_v29 = vshll.u32 %v521_v61, 16  ;;  %v959_v30 = vor.u32 %v958_v2, %v955_v63  ;;  %v1688_v62 = vld [vmem:[%s1813_s19 + $0x28] ss:$16 sps:$4 sm:$0xff]  }
  0x21   : > { %v962_v31 = vshll.u32 %v510_v20, 16  ;;  %v986_v33 = vrot.slane %v984_v26, 5  ;;  %v997_v34 = vrot.slane %v995_v27, 4  ;;  %1621 = vmatpush3.bf16.msra.mxu1 %v1023_v46  ;;  %v973_v37 = vor.u32 %v972_v4, %v969_v3  ;;  %v532_v5 = vld [vmem:[%s1888_s8 + $0x4] sm:$0x1] }
  0x22   : > { %v1911_v32 = vsel %vm1869_vm4, %v728_v17, %v732_v25  ;;  %v1000_v40 = vrot.slane %v998_v29, 5  ;;  %v960_v41 = vrot.slane %v959_v30, 4  ;;  %1651 = vmatprep.subr.msk.bf16.mxu1 %vm554_vm0, %v1544_v14  ;;  %v976_v47 = vshll.u32 %v514_v22, 16  ;;  %v1549_v13 = vld [vmem:[%s1998_s4 + $0x20] sm:$0xf] }
  0x23   : > { %v1521_v39 = vcombine.low %v1905_v24, %v1911_v32  ;;  %v964_v42 = vrot.slane %v962_v31, 5  ;;  %v974_v45 = vrot.slane %v973_v37, 4  ;;  %v987_v49 = vor.u32 %v986_v33, %v983_v28 }
  0x24   : > { %v990_v46 = vshll.u32 %v518_v38, 16  ;;  %v1215_v50 = vshrl.u32 %v1901_v23, 16  ;;  %v1218_v51 = vshll.u32 %v1901_v23, 16  ;;  %v1001_v52 = vor.u32 %v1000_v40, %v997_v34 }
  0x25   : > { %1605 = vmatmul.mubr.msk.bf16.vlgmr.msra.gmra.mxu0 %vm547_vm1, %v1521_v39  ;;  %v1004_v53 = vshll.u32 %v522_v43, 16  ;;  %v965_v54 = vsel %vm1869_vm4, %v960_v41, %v964_v42  ;;  %v978_v55 = vrot.slane %v976_v47, 5  ;;  %v988_v56 = vrot.slane %v987_v49, 4 }
  0x26   : > { %1615 = vmatpush3.bf16.msra.mxu0 %v1861_v35  ;;  %1616 = vmatprep.mubr.msk.bf16.mxu0 %vm547_vm1, %v1687_v36  ;;  %v992_v57 = vrot.slane %v990_v46, 5  ;;  %v1002_v58 = vrot.slane %v1001_v52, 4  ;;  %v1159_v0 = vsel %vm554_vm0, %v1544_v14, 0  ;;  %v1217_v1 = vrot.slane %v1215_v50, 4  ;;  %v533_v14 = vld [vmem:[%s493_s16] sm:$0xf] }
  0x27   : > { %1650 = vmatprep.subr.msk.bf16.mxu0 %vm554_vm0, %v1539_v48  ;;  %v1006_v59 = vrot.slane %v1004_v53, 5  ;;  %v979_v60 = vsel %vm1869_vm4, %v974_v45, %v978_v55  ;;  %v1220_v2 = vrot.slane %v1218_v51, 5  ;;  %v1540_v4 = vcombine.low %v1817_v7, %v1836_v16 }
  0x28   : > { %v993_v61 = vsel %vm1869_vm4, %v988_v56, %v992_v57  ;;  %v1535_v35 = vcombine.low %v965_v54, %v979_v60  ;;  %v1545_v8 = vcombine.low %v1821_v9, %v1824_v10  ;;  %v1091_v11 = vsel %vm554_vm0, %v1539_v48, 0 }
  0x29   : > { %v1007_v63 = vsel %vm1869_vm4, %v1002_v58, %v1006_v59  ;;  %v1221_v15 = vor.u32 %v1220_v2, %v1217_v1  ;;  %v1224_v7 = vshll.u32 %v532_v5, 16  ;;  %v1546_v9 = vcombine.low %v1828_v12, %v533_v14 }
  0x2a   : > { %v1536_v3 = vcombine.low %v993_v61, %v1007_v63  ;;  %1622 = vmatprep.mubr.msk.bf16.mxu1 %vm547_vm1, %v1535_v35  ;;  %v1541_v10 = vcombine.low %v1844_v21, %v1901_v23  ;;  %v1550_v18 = vcombine.low %v1892_v6, %v1905_v24  ;;  %v1240_v19 = vsel %vm554_vm0, %v1549_v13, 0 }
  0x2b   : > { %v1222_v16 = vrot.slane %v1221_v15, 4  ;;  %v1226_v17 = vrot.slane %v1224_v7, 5  ;;  %v1554_v7 = vld [vmem:[%s1999_s5] ss:$0 sm:$0xff] }
  0x2c   : > { %1623 = vmatmul.mubr.msk.bf16.vlgmr.msra.gmra.mxu1 %vm547_vm1, %v1536_v3 }
  0x2d   : > { %1617 = vmatmul.mubr.msk.bf16.vlgmr.msra.gmra.mxu0 %vm547_vm1, %v1688_v62  ;;  %1633 = vmatpush3.bf16.msra.mxu1 %v1159_v0  ;;  %v1227_v12 = vsel %vm1869_vm4, %v1222_v16, %v1226_v17 }
  0x2e   : > { %1627 = vmatpush3.bf16.msra.mxu0 %v1091_v11  ;;  %1628 = vmatprep.mubr.msk.bf16.mxu0 %vm547_vm1, %v1540_v4  ;;  %v1551_v20 = vcombine.low %v1911_v32, %v1227_v12 }
  0x2f   : > { %1634 = vmatprep.mubr.msk.bf16.mxu1 %vm547_vm1, %v1545_v8  ;;  %1652 = vmatprep.subr.msk.bf16.mxu0 %vm554_vm0, %v1549_v13 }
  0x34   : > { %1635 = vmatmul.mubr.msk.bf16.vlgmr.msra.gmra.mxu1 %vm547_vm1, %v1546_v9 }
  0x35   : > { %1629 = vmatmul.mubr.msk.bf16.vlgmr.msra.gmra.mxu0 %vm547_vm1, %v1541_v10 }
  0x36   : > { %1639 = vmatpush3.bf16.msra.mxu0 %v1240_v19  ;;  %1640 = vmatprep.mubr.msk.bf16.mxu0 %vm547_vm1, %v1550_v18  ;;  %v1555_v18 = vld [vmem:[%s2000_s6] ss:$0 sm:$0xff] }
  0x3d   : > { %1641 = vmatmul.mubr.msk.bf16.vlgmr.msra.gmra.mxu0 %vm547_vm1, %v1551_v20 }
  0xd6   : > { %v1594_v21 = vpop.f32.mrf.mxu0 }
  0xd7   : > { %v1600_v22 = vpop.f32.mrf.mxu1 }
  0xd8   : > { %v592_v23 = vpop.f32.mrf.mxu0  ;;  %v669_v36 = vadd.f32 %v1600_v22, %v1594_v21 }
  0xd9   : > { %v660_v6 = vpop.f32.mrf.mxu1 }
  0xda   : > { %v1595_v25 = vpop.f32.mrf.mxu0  ;;  %v661_v32 = vadd.f32 %v660_v6, %v592_v23 }
  0xdb   : > { %v1601_v24 = vpop.f32.mrf.mxu1 }
  0xdc   : > { %v595_v27 = vpop.f32.mrf.mxu0  ;;  %v672_v41 = vadd.f32 %v1601_v24, %v1595_v25 }
  0xdd   : > { %v663_v26 = vpop.f32.mrf.mxu1 }
  0xde   : > { %v664_v46 = vadd.f32 %v663_v26, %v595_v27 }
  0xe0   : > { %v1612_v28 = vpop.f32.mrf.mxu1 }
  0xe2   : > { %v859_v29 = vpop.f32.mrf.mxu1 }
  0xe4   : > { %v1613_v31 = vpop.f32.mrf.mxu1 }
  0xe5   : > { %v1606_v30 = vpop.f32.mrf.mxu0 }
  0xe6   : > { %v862_v34 = vpop.f32.mrf.mxu1  ;;  %v802_v38 = vadd.f32 %v1606_v30, %v669_v36 }
  0xe7   : > { %v785_v33 = vpop.f32.mrf.mxu0 }
  0xe8   : > { %v800_v42 = vadd.f32 %v785_v33, %v661_v32  ;;  %v876_v47 = vadd.f32 %v1612_v28, %v802_v38 }
  0xe9   : > { %v1607_v44 = vpop.f32.mrf.mxu0 }
  0xea   : > { %v803_v48 = vadd.f32 %v1607_v44, %v672_v41  ;;  %v874_v51 = vadd.f32 %v859_v29, %v800_v42 }
  0xeb   : > { %v788_v37 = vpop.f32.mrf.mxu0 }
  0xec   : > { %v1624_v39 = vpop.f32.mrf.mxu1  ;;  %v801_v54 = vadd.f32 %v788_v37, %v664_v46  ;;  %v877_v56 = vadd.f32 %v1613_v31, %v803_v48 }
  0xed   : > { %v1618_v40 = vpop.f32.mrf.mxu0 }
  0xee   : > { %v1059_v43 = vpop.f32.mrf.mxu1  ;;  %v950_v52 = vadd.f32 %v1618_v40, %v876_v47  ;;  %v875_v35 = vadd.f32 %v862_v34, %v801_v54 }
  0xef   : > { %v933_v45 = vpop.f32.mrf.mxu0 }
  0xf0   : > { %v1625_v49 = vpop.f32.mrf.mxu1  ;;  %v948_v57 = vadd.f32 %v933_v45, %v874_v51  ;;  %v1076_v59 = vadd.f32 %v1624_v39, %v950_v52 }
  0xf1   : > { %v1619_v50 = vpop.f32.mrf.mxu0 }
  0xf2   : > { %v1062_v53 = vpop.f32.mrf.mxu1  ;;  %v951_v60 = vadd.f32 %v1619_v50, %v877_v56  ;;  %v1074_v63 = vadd.f32 %v1059_v43, %v948_v57 }
  0xf3   : > { %v936_v55 = vpop.f32.mrf.mxu0 }
  0xf4   : > { %v1636_v61 = vpop.f32.mrf.mxu1  ;;  %v949_v1 = vadd.f32 %v936_v55, %v875_v35  ;;  %v1077_v3 = vadd.f32 %v1625_v49, %v951_v60 }
  0xf5   : > { %v1630_v58 = vpop.f32.mrf.mxu0 }
  0xf6   : > { %v1144_v0 = vadd.f32 %v1630_v58, %v1076_v59  ;;  %v1195_v5 = vpop.f32.mrf.mxu1  ;;  %v1075_v14 = vadd.f32 %v1062_v53, %v949_v1 }
  0xf7   : > { %v1127_v62 = vpop.f32.mrf.mxu0 }
  0xf8   : > { %v1142_v4 = vadd.f32 %v1127_v62, %v1074_v63  ;;  %v1212_v11 = vadd.f32 %v1636_v61, %v1144_v0  ;;  %v1637_v10 = vpop.f32.mrf.mxu1 }
  0xf9   : > { %v1631_v2 = vpop.f32.mrf.mxu0 }
  0xfa   : > { %v1145_v13 = vadd.f32 %v1631_v2, %v1077_v3  ;;  %v1210_v9 = vadd.f32 %v1195_v5, %v1142_v4  ;;  %v1198_v23 = vpop.f32.mrf.mxu1 }
  0xfb   : > { %v1130_v8 = vpop.f32.mrf.mxu0 }
  0xfc   : > { %v1143_v17 = vadd.f32 %v1130_v8, %v1075_v14  ;;  %v1213_v12 = vadd.f32 %v1637_v10, %v1145_v13 }
  0xfd   : > { %v1642_v15 = vpop.f32.mrf.mxu0 }
  0xfe   : > { %v1293_v16 = vadd.f32 %v1642_v15, %v1212_v11  ;;  %v1211_v26 = vadd.f32 %v1198_v23, %v1143_v17 }
  0xff   : > { %v1276_v19 = vpop.f32.mrf.mxu0 }
 0x100   : > { %v1304_v20 = vmul.f32 %v1554_v7, %v1293_v16  ;;  %v1291_v21 = vadd.f32 %v1276_v19, %v1210_v9 }
 0x101   : > { %v1643_v22 = vpop.f32.mrf.mxu0 }
 0x102   : > { %v1315_v6 = vadd.f32 %v1555_v18, %v1304_v20  ;;  %v1302_v24 = vmul.f32 %v1554_v7, %v1291_v21  ;;  %v1294_v25 = vadd.f32 %v1643_v22, %v1213_v12 }
 0x103   : > { %v1279_v27 = vpop.f32.mrf.mxu0 }
 0x104   : > { %v1323_v28 = vmul.f32 0.70710677, %v1315_v6  ;;  %v1313_v29 = vadd.f32 %v1555_v18, %v1302_v24  ;;  %v1305_v30 = vmul.f32 %v1554_v7, %v1294_v25  ;;  %v1292_v31 = vadd.f32 %v1279_v27, %v1211_v26 }
 0x105   : > { %v1319_v39 = vmul.f32 0.5, %v1315_v6 }
 0x106   : > { %1690 = verf.f32 %v1323_v28  ;;  %v1321_v33 = vmul.f32 0.70710677, %v1313_v29  ;;  %v1316_v34 = vadd.f32 %v1555_v18, %v1305_v30  ;;  %v1303_v44 = vmul.f32 %v1554_v7, %v1292_v31 }
 0x107   : > { %v1317_v43 = vmul.f32 0.5, %v1313_v29 }
 0x108   : > { %1692 = verf.f32 %v1321_v33  ;;  %v1324_v36 = vmul.f32 0.70710677, %v1316_v34  ;;  %v1314_v37 = vadd.f32 %v1555_v18, %v1303_v44  ;;  %v1320_v46 = vmul.f32 0.5, %v1316_v34 }
 0x10a   : > { %1694 = verf.f32 %v1324_v36  ;;  %v1322_v32 = vmul.f32 0.70710677, %v1314_v37  ;;  %v1318_v54 = vmul.f32 0.5, %v1314_v37 }
 0x10c   : > { %1696 = verf.f32 %v1322_v32 }
 0x113   : > { %v1691_v38 = vpop.eup %1690 }
 0x114   : > { %v1331_v40 = vadd.f32 1.0, %v1691_v38 }
 0x115   : > { %v1693_v41 = vpop.eup %1692 }
 0x116   : > { %v1335_v42 = vmul.f32 %v1331_v40, %v1319_v39  ;;  %v1329_v45 = vadd.f32 1.0, %v1693_v41 }
 0x117   : > { %v1695_v47 = vpop.eup %1694 }
 0x118   : > { %v1339_v48 = vpack.c.bf16 %v1335_v42, %v1335_v42  ;;  %v1333_v49 = vmul.f32 %v1329_v45, %v1317_v43  ;;  %v1332_v50 = vadd.f32 1.0, %v1695_v47 }
 0x119   : > { %v1697_v51 = vpop.eup %1696 }
 0x11a   : > { %1344 = vst.msk [vmem:[%s504_s29 + $0x8] sm:$0xf] %vm1341_vm5, %v1339_v48  ;;  %v1337_v52 = vpack.c.bf16 %v1333_v49, %v1333_v49  ;;  %v1336_v53 = vmul.f32 %v1332_v50, %v1320_v46  ;;  %v1330_v55 = vadd.f32 1.0, %v1697_v51 }
 0x11c   : > { %1342 = vst.msk [vmem:[%s504_s29] sm:$0xf] %vm1341_vm5, %v1337_v52  ;;  %v1340_v56 = vpack.c.bf16 %v1336_v53, %v1336_v53  ;;  %v1334_v57 = vmul.f32 %v1330_v55, %v1318_v54 }
 0x11e   : > { %1345 = vst.msk [vmem:[%s504_s29 + $0xc] sm:$0xf] %vm1341_vm5, %v1340_v56  ;;  %v1338_v58 = vpack.c.bf16 %v1334_v57, %v1334_v57 }
 0x120   : > { %1343 = vst.msk [vmem:[%s504_s29 + $0x4] sm:$0xf] %vm1341_vm5, %v1338_v58 }
 0x121 PF: > { %s17_s26 = sadd.s32 1, %s1720_s26   ;;  %s2004_s24 = smov %s1716_s25 }
 0x122   : > { %p14_p5 = scmp.ge.s32.totalorder %s17_s26, 4   ;;  %s2005_s25 = smov %s2007_s27 }
 0x124   :  { %16 = sbr.rel (!%p14_p5) target bundleno = 2 (0x2), region = 95 }

// kernel: kernel_predictor_forward.5
= control target key start
LH: loop header
LB: loop body
LE: loop exit
PB: predicated region body
PF: predicated region fallthrough
CT: control target
= control target key end

     0   :  { %s3418_s24 = smov 0   ;;  %s3420_s25 = smov 0   ;;  %s4318_s0 = inlined_call_operand.vmem [shape: bf16[2,33,17,3], index: 0, kind: input, shape index: {}, may-alias: {0,1}]   ;;  %s4319_s1 = inlined_call_operand.vmem [shape: bf16[2,33,17,3], index: 1, kind: input, shape index: {}, may-alias: {0,1}]   ;;  %s4320_s2 = inlined_call_operand.vmem [shape: bf16[2,33,17,3], index: 2, kind: input, shape index: {}, may-alias: {2,3}]   ;;  %s4321_s3 = inlined_call_operand.vmem [shape: bf16[2,33,17,3], index: 3, kind: input, shape index: {}, may-alias: {2,3}]   ;;  %s4322_s4 = inlined_call_operand.vmem [shape: bf16[9,3,4], index: 4, kind: input, shape index: {}]   ;;  %s4323_s5 = inlined_call_operand.vmem [shape: f32[1,4], index: 5, kind: input, shape index: {}]   ;;  %s4324_s6 = inlined_call_operand.vmem [shape: f32[1,4], index: 6, kind: input, shape index: {}]   ;;  %s4325_s7 = inlined_call_operand.vmem [shape: bf16[2,16,16,4], index: 7, kind: output, shape index: {}]  }
   0x1   :  { %s3422_s26 = smov 0   ;;  %s3424_s27 = smov 0  }
   0x2   :  { %s3426_s28 = smov 0  }
   0x3 LB: > { %s26_s29 = sadd.s32 1, %s3367_s26  ;;  %s29_s30 = sadd.s32 1, %s3371_s27  ;;  %s3375_s28 = sphi %s3426_s28, %s17_s28   ;;  %s3371_s27 = sphi %s3424_s27, %s4374_s27   ;;  %s3367_s26 = sphi %s3422_s26, %s4373_s26   ;;  %s3363_s25 = sphi %s3420_s25, %s4372_s25   ;;  %s3359_s24 = sphi %s3418_s24, %s4371_s24  }
   0x4   : > { %p27_p0 = scmp.ge.s32.totalorder %s26_s29, 2  ;;  %p2790_p1 = scmp.ge.s32.totalorder %s3375_s28, 1 }
   0x5   : > { %p345_p2 = scmp.lt.s32.totalorder %s3375_s28, 5 }
   0x6   : > { %s4376_s29 = smov (%p27_p0, %s26_s29), 0  ;;  %s4378_s30 = smov (!%p27_p0, %s29_s30), %s3371_s27 }
   0x7   : > { %p346_p3 = pnand %p2790_p1, %p345_p2  ;;  %p31_p4 = scmp.ge.s32.totalorder %s4378_s30, 2 }
   0x9   : > { %s4380_s30 = smov (%p31_p4, %s4378_s30), 0  ;;  %349 = sbr.rel (%p346_p3) target bundleno = 397 (0x18d), region = 48 }
   0xe   : > { %v2803_v0 = vld [vmem:[%s4322_s4 + $0x2] sm:$0x3]  ;;  %vm662_vm0 = vcmask 1040384   ;;  %vm663_vm1 = vcmask 1041408   ;;  %s3454_s10 = sshll.u32 %s3359_s24, 4  ;;  %v3377_v1 = vmov 65535  }
   0xf   : > { %v664_v2 = vsel %vm662_vm0, 4294967295, %v3377_v1  ;;  %p435_p5 = scmp.lt.s32.totalorder %s3363_s25, 1  ;;  %p437_p6 = scmp.lt.s32.totalorder %s3454_s10, 32  ;;  %v594_v3 = vld [vmem:[%s4322_s4] sm:$0x3]  ;;  %vm637_vm2 = vcmask 23552  }
  0x10   : > { %v3460_v4 = vsel %vm663_vm1, %v664_v2, 0  ;;  %v2836_v5 = vld [vmem:[%s4322_s4 + $0x4] sm:$0x3]  ;;  %v2853_v9 = vld [vmem:[%s4322_s4 + $0x6] sm:$0x3]  ;;  %s2799_s23 = sshll.u32 %s3359_s24, 3 }
  0x11   : > { %v667_v6 = vand.u32 %v2803_v0, %v3460_v4  ;;  %s4382_s25 = smov (!%p435_p5, %s3363_s25), 1  ;;  %v831_v7 = vand.u32 %v3460_v4, %v594_v3  ;;  %v1176_v8 = vand.u32 %v2836_v5, %v3460_v4  ;;  %v2870_v10 = vld [vmem:[%s4322_s4 + $0x8] sm:$0x3]  ;;  %vm930_vm3 = vsmask.f32 3328  ;;  %p4158_p8 = scmp.lt.s32.totalorder %s2799_s23, 15 }
  0x12   : > { %s438_s15 = scalar_select %p437_p6, %s3454_s10, 32  ;;  %v3499_v15 = vand.u32 %v2853_v9, %v3460_v4  ;;  %v2887_v16 = vld [vmem:[%s4322_s4 + $0xa] sm:$0x3]  ;;  %v2904_v17 = vld [vmem:[%s4322_s4 + $0xc] sm:$0x3]  ;;  %v3513_v19 = vand.u32 %v2870_v10, %v3460_v4  ;;  %vm2603_vm6 = vcmask 27648  }
  0x13   : > { %3225 = vmatprep.subr.bf16.mxu1 %v667_v6  ;;  %3063 = vmatprep.subr.bf16.mxu0 %v667_v6  ;;  %s3228_s16 = smul.u32 99, %s4382_s25  ;;  %vm931_vm4 = vsmask.f32 7440  ;;  %v3538_v25 = vand.u32 %v2887_v16, %v3460_v4  ;;  %v3541_v26 = vand.u32 %v2904_v17, %v3460_v4  ;;  %s4386_s23 = smov (!%p4158_p8, %s2799_s23), 15 }
  0x14   : > { %3226 = vmatpush3.bf16.msra.mxu1 %v667_v6  ;;  %3064 = vmatpush3.bf16.msra.mxu0 %v667_v6  ;;  %s3227_s17 = smul.u32 3, %s438_s15  ;;  %vm3560_vm5 = vmor %vm930_vm3, %vm931_vm4  ;;  %s2800_s24 = sshll.u32 %s4386_s23, 1 }
  0x15   : > { %3081 = vmatprep.subr.bf16.mxu1 %v831_v7  ;;  %3099 = vmatprep.subr.bf16.mxu0 %v1176_v8 }
  0x16   : > { %s441_s18 = sadd.s32 %s3228_s16, %s3227_s17 }
  0x17   : > { %s2792_s19 = sshll.u32 %s441_s18, 2 }
  0x18   : > { %s3477_s22 = scalar_lea.vmem %s4320_s2, %s2792_s19  ;;  %s3518_s20 = scalar_lea.vmem %s4318_s0, %s2792_s19 }
  0x19   : > { %v3271_v11 = vld [vmem:[%s3477_s22] sm:$0xff]   ;;  %v3491_v13 = vld [vmem:[%s3477_s22 + $0x18] sm:$0xff]   ;;  %v3510_v18 = vld [vmem:[%s3477_s22 + $0x30] sm:$0xff]   ;;  %s2963_s19 = sadd.s32 16, %s3454_s10 }
  0x1a   : > { %v3487_v12 = vld [vmem:[%s3477_s22 + $0x60] sm:$0xff]   ;;  %3065 = vmatprep.mubr.msk.bf16.mxu0 %vm637_vm2, %v3271_v11  ;;  %v3496_v14 = vld [vmem:[%s3477_s22 + $0x78] sm:$0xff]   ;;  %v3523_v20 = vld [vmem:[%s3477_s22 + $0x90] sm:$0xff]   ;;  %p3644_p7 = scmp.lt.s32.totalorder %s2963_s19, 32 }
  0x1b   : > { %3073 = vmatprep.mubr.msk.bf16.mxu1 %vm637_vm2, %v3487_v12  ;;  %3066 = vmatmul.mubr.msk.bf16.vlgmr.msra.gmra.mxu0 %vm637_vm2, %v3491_v13  ;;  %v3530_v21 = vld [vmem:[%s3477_s22 + $0x48] sm:$0xff]   ;;  %v509_v22 = vld [vmem:[%s3518_s20] sm:$0xf]  ;;  %v510_v23 = vld [vmem:[%s3518_s20 + $0x4] sm:$0xf] }
  0x1c   : > { %3074 = vmatmul.mubr.msk.bf16.vlgmr.msra.gmra.mxu1 %vm637_vm2, %v3496_v14  ;;  %3100 = vmatpush3.bf16.msra.mxu0 %v1176_v8  ;;  %v511_v24 = vld [vmem:[%s3518_s20 + $0x8] sm:$0x1]  ;;  %v2820_v28 = vcombine.low %v509_v22, %v510_v23  ;;  %v934_v29 = vshrl.u32 %v509_v22, 16  ;;  %v937_v30 = vshll.u32 %v509_v22, 16  ;;  %v943_v31 = vshll.u32 %v510_v23, 16  ;;  %s4384_s19 = smov (!%p3644_p7, %s2963_s19), 32 }
  0x1d   : > { %3082 = vmatpush3.bf16.msra.mxu1 %v831_v7  ;;  %3069 = vmatprep.mubr.msk.bf16.mxu0 %vm637_vm2, %v3510_v18  ;;  %v3544_v27 = vld [vmem:[%s3477_s22 + $0xa8] sm:$0xff]   ;;  %v515_v32 = vld [vmem:[%s3518_s20 + $0x18] sm:$0xf]  ;;  %v947_v33 = vshrl.u32 %v510_v23, 16  ;;  %v953_v34 = vshll.u32 %v511_v24, 16  ;;  %s3229_s10 = smul.u32 3, %s4384_s19 }
  0x1e   : > { %3077 = vmatprep.mubr.msk.bf16.mxu1 %vm637_vm2, %v3523_v20  ;;  %3117 = vmatprep.subr.bf16.mxu1 %v3499_v15  ;;  %v516_v35 = vld [vmem:[%s3518_s20 + $0x1c] sm:$0xf]  ;;  %v958_v36 = vshrl.u32 %v515_v32, 16  ;;  %v961_v37 = vshll.u32 %v515_v32, 16  ;;  %v936_v38 = vrot.slane %v934_v29, 4  ;;  %v939_v39 = vrot.slane %v937_v30, 5 }
  0x1f   : > { %3135 = vmatprep.subr.bf16.mxu0 %v3513_v19  ;;  %v945_v40 = vrot.slane %v943_v31, 5  ;;  %v3548_v41 = vcombine.low %v515_v32, %v516_v35  ;;  %v517_v42 = vld [vmem:[%s3518_s20 + $0x20] sm:$0x1]  ;;  %v949_v43 = vrot.slane %v947_v33, 4  ;;  %v955_v44 = vrot.slane %v953_v34, 5  ;;  %s3714_s9 = sadd.s32 %s3229_s10, %s3228_s16 }
  0x20   : > { %v960_v45 = vrot.slane %v958_v36, 4  ;;  %v963_v46 = vrot.slane %v961_v37, 5  ;;  %v521_v47 = vld [vmem:[%s3518_s20 + $0x30] sm:$0xf]  ;;  %v940_v48 = vor.u32 %v939_v39, %v936_v38  ;;  %v967_v49 = vshll.u32 %v516_v35, 16  ;;  %s2794_s16 = sshll.u32 %s3714_s9, 2 }
  0x21   : > { %v971_v50 = vshrl.u32 %v516_v35, 16  ;;  %v977_v51 = vshll.u32 %v517_v42, 16  ;;  %v522_v52 = vld [vmem:[%s3518_s20 + $0x34] sm:$0xf]  ;;  %v950_v54 = vor.u32 %v949_v43, %v945_v40  ;;  %v982_v57 = vshrl.u32 %v521_v47, 16  ;;  %s3749_s15 = scalar_lea.vmem %s4321_s3, %s2794_s16  ;;  %s460_s18 = scalar_lea.vmem %s4319_s1, %s2794_s16 }
  0x22   : > { %v964_v55 = vor.u32 %v963_v46, %v960_v45  ;;  %v3564_v56 = vcombine.low %v521_v47, %v522_v52  ;;  %v941_v58 = vrot.slane %v940_v48, 4  ;;  %v969_v59 = vrot.slane %v967_v49, 5  ;;  %v523_v62 = vld [vmem:[%s3518_s20 + $0x38] sm:$0x1]  ;;  %v527_v8 = vld [vmem:[%s3518_s20 + $0x48] sm:$0xf] }
  0x23   : > { %3070 = vmatmul.mubr.msk.bf16.gmra.mxu0 %vm637_vm2, %v3530_v21  ;;  %v973_v60 = vrot.slane %v971_v50, 4  ;;  %v979_v61 = vrot.slane %v977_v51, 5  ;;  %v951_v63 = vrot.slane %v950_v54, 4  ;;  %v984_v1 = vrot.slane %v982_v57, 4  ;;  %v528_v17 = vld [vmem:[%s3518_s20 + $0x4c] sm:$0xf] }
  0x24   : > { %3078 = vmatmul.mubr.msk.bf16.gmra.mxu1 %vm637_vm2, %v3544_v27  ;;  %v965_v0 = vrot.slane %v964_v55, 4  ;;  %v985_v2 = vshll.u32 %v521_v47, 16  ;;  %v946_v3 = vsel %vm3560_vm5, %v941_v58, %v945_v40  ;;  %v991_v6 = vshll.u32 %v522_v52, 16  ;;  %v529_v33 = vld [vmem:[%s3518_s20 + $0x50] sm:$0x1]  ;;  %s2801_s9 = sshll.u32 %s4382_s25, 5 }
  0x25   : > { %3083 = vmatprep.mubr.msk.bf16.mxu1 %vm637_vm2, %v2820_v28  ;;  %v974_v5 = vor.u32 %v973_v60, %v969_v59  ;;  %v995_v7 = vshrl.u32 %v522_v52, 16  ;;  %v956_v9 = vsel %vm3560_vm5, %v951_v63, %v955_v44  ;;  %v1001_v16 = vshll.u32 %v523_v62, 16  ;;  %v533_v38 = vld [vmem:[%s3518_s20 + $0x60] sm:$0xf]  ;;  %v534_v48 = vld [vmem:[%s3518_s20 + $0x64] sm:$0xf]  ;;  %s4213_s25 = sadd.s32 %s2801_s9, %s2800_s24 }
  0x26   : > { %v970_v10 = vsel %vm3560_vm5, %v965_v0, %v969_v59  ;;  %v987_v11 = vrot.slane %v985_v2, 5  ;;  %v2837_v22 = vcombine.low %v946_v3, %v956_v9  ;;  %v993_v24 = vrot.slane %v991_v6, 5  ;;  %v535_v52 = vld [vmem:[%s3518_s20 + $0x68] sm:$0x1]  ;;  %v539_v59 = vld [vmem:[%s3518_s20 + $0x78] sm:$0xf] }
  0x27   : > { %v975_v23 = vrot.slane %v974_v5, 4  ;;  %v997_v28 = vrot.slane %v995_v7, 4  ;;  %v1003_v30 = vrot.slane %v1001_v16, 5  ;;  %v3575_v31 = vcombine.low %v527_v8, %v528_v17  ;;  %v540_v0 = vld [vmem:[%s3518_s20 + $0x7c] sm:$0xf]  ;;  %s2802_s11 = sshll.u32 %s4213_s25, 2 }
  0x28   : > { %v988_v29 = vor.u32 %v987_v11, %v984_v1  ;;  %v1006_v32 = vshrl.u32 %v527_v8, 16  ;;  %3101 = vmatprep.mubr.msk.bf16.mxu0 %vm637_vm2, %v2837_v22  ;;  %v1009_v36 = vshll.u32 %v527_v8, 16  ;;  %v1015_v37 = vshll.u32 %v528_v17, 16  ;;  %v541_v5 = vld [vmem:[%s3518_s20 + $0x80] sm:$0x1]  ;;  %s4236_s13 = scalar_lea.vmem %s4325_s7, %s2802_s11 }
  0x29   : > { %v980_v34 = vsel %vm3560_vm5, %v975_v23, %v979_v61  ;;  %v998_v35 = vor.u32 %v997_v28, %v993_v24  ;;  %v1019_v43 = vshrl.u32 %v528_v17, 16  ;;  %v1025_v47 = vshll.u32 %v529_v33, 16  ;;  %v545_v22 = vld [vmem:[%s3518_s20 + $0x90] sm:$0xf] }
  0x2a   : > { %v3584_v39 = vcombine.low %v970_v10, %v980_v34  ;;  %v989_v40 = vrot.slane %v988_v29, 4  ;;  %v1008_v42 = vrot.slane %v1006_v32, 4  ;;  %v1011_v45 = vrot.slane %v1009_v36, 5 }
  0x2b   : > { %v999_v44 = vrot.slane %v998_v35, 4  ;;  %v1017_v46 = vrot.slane %v1015_v37, 5  ;;  %v1021_v49 = vrot.slane %v1019_v43, 4  ;;  %v3595_v50 = vcombine.low %v533_v38, %v534_v48 }
  0x2c   : > { %3084 = vmatmul.mubr.msk.bf16.vlgmr.msra.gmra.mxu1 %vm637_vm2, %v3548_v41  ;;  %3102 = vmatmul.mubr.msk.bf16.vlgmr.msra.gmra.mxu0 %vm637_vm2, %v3584_v39  ;;  %v1030_v51 = vshrl.u32 %v533_v38, 16  ;;  %v1012_v55 = vor.u32 %v1011_v45, %v1008_v42  ;;  %v1027_v57 = vrot.slane %v1025_v47, 5  ;;  %v1033_v58 = vshll.u32 %v533_v38, 16  ;;  %v547_v42 = vld [vmem:[%s3518_s20 + $0x98] sm:$0x1] }
  0x2d   : > { %3118 = vmatpush3.bf16.msra.mxu1 %v3499_v15  ;;  %3087 = vmatprep.mubr.msk.bf16.mxu1 %vm637_vm2, %v3564_v56  ;;  %v994_v15 = vsel %vm3560_vm5, %v989_v40, %v993_v24  ;;  %v1004_v54 = vsel %vm3560_vm5, %v999_v44, %v1003_v30  ;;  %v1022_v61 = vor.u32 %v1021_v49, %v1017_v46  ;;  %v1039_v63 = vshll.u32 %v534_v48, 16  ;;  %v546_v30 = vld [vmem:[%s3518_s20 + $0x94] sm:$0xf]  ;;  %v551_v47 = vld [vmem:[%s3518_s20 + $0xa8] sm:$0xf] }
  0x2e   : > { %3153 = vmatprep.subr.bf16.mxu1 %v3538_v25  ;;  %3136 = vmatpush3.bf16.msra.mxu0 %v3513_v19  ;;  %v3602_v60 = vcombine.low %v994_v15, %v1004_v54  ;;  %v1032_v62 = vrot.slane %v1030_v51, 4  ;;  %v1013_v1 = vrot.slane %v1012_v55, 4  ;;  %v1035_v2 = vrot.slane %v1033_v58, 5  ;;  %v552_v58 = vld [vmem:[%s3518_s20 + $0xac] sm:$0xf] }
  0x2f   : > { %3171 = vmatprep.subr.bf16.mxu0 %v3541_v26  ;;  %v1043_v19 = vshrl.u32 %v534_v48, 16  ;;  %v1049_v3 = vshll.u32 %v535_v52, 16  ;;  %v1023_v6 = vrot.slane %v1022_v61, 4  ;;  %v1041_v7 = vrot.slane %v1039_v63, 5 }
  0x30   : > { %3105 = vmatprep.mubr.msk.bf16.mxu0 %vm637_vm2, %v3602_v60  ;;  %v3609_v8 = vcombine.low %v539_v59, %v540_v0  ;;  %v1054_v9 = vshrl.u32 %v539_v59, 16  ;;  %v1018_v10 = vsel %vm3560_vm5, %v1013_v1, %v1017_v46  ;;  %v1036_v16 = vor.u32 %v1035_v2, %v1032_v62 }
  0x31   : > { %v1045_v11 = vrot.slane %v1043_v19, 4  ;;  %v1051_v17 = vrot.slane %v1049_v3, 5  ;;  %v1028_v23 = vsel %vm3560_vm5, %v1023_v6, %v1027_v57  ;;  %v1057_v28 = vshll.u32 %v539_v59, 16 }
  0x32   : > { %v1056_v24 = vrot.slane %v1054_v9, 4  ;;  %v1063_v29 = vshll.u32 %v540_v0, 16  ;;  %v3621_v32 = vcombine.low %v1018_v10, %v1028_v23  ;;  %v1037_v33 = vrot.slane %v1036_v16, 4  ;;  %v3655_v10 = vld [vmem:[%s3518_s20 + $0xc] sm:$0xf] }
  0x33   : > { %v1046_v34 = vor.u32 %v1045_v11, %v1041_v7  ;;  %v1067_v35 = vshrl.u32 %v540_v0, 16  ;;  %v1059_v36 = vrot.slane %v1057_v28, 5  ;;  %v1073_v38 = vshll.u32 %v541_v5, 16  ;;  %v553_v0 = vld [vmem:[%s3518_s20 + $0xb0] sm:$0x1] }
  0x34   : > { %3088 = vmatmul.mubr.msk.bf16.gmra.mxu1 %vm637_vm2, %v3575_v31  ;;  %v1065_v37 = vrot.slane %v1063_v29, 5  ;;  %v3623_v40 = vcombine.low %v545_v22, %v546_v30  ;;  %3106 = vmatmul.mubr.msk.bf16.gmra.mxu0 %vm637_vm2, %v3621_v32  ;;  %v1042_v43 = vsel %vm3560_vm5, %v1037_v33, %v1041_v7  ;;  %v1078_v46 = vshrl.u32 %v545_v22, 16  ;;  %v3660_v23 = vld [vmem:[%s3518_s20 + $0x10] sm:$0xf] }
  0x35   : > { %3091 = vmatprep.mubr.msk.bf16.mxu1 %vm637_vm2, %v3595_v50  ;;  %v1047_v44 = vrot.slane %v1046_v34, 4  ;;  %v1069_v45 = vrot.slane %v1067_v35, 4  ;;  %v1060_v48 = vor.u32 %v1059_v36, %v1056_v24  ;;  %v1075_v15 = vrot.slane %v1073_v38, 5 }
  0x36   : > { %v1081_v49 = vshll.u32 %v545_v22, 16  ;;  %v1087_v51 = vshll.u32 %v546_v30, 16  ;;  %v1080_v55 = vrot.slane %v1078_v46, 4  ;;  %v1091_v57 = vshrl.u32 %v546_v30, 16 }
  0x37   : > { %v1052_v52 = vsel %vm3560_vm5, %v1047_v44, %v1051_v17  ;;  %v1070_v54 = vor.u32 %v1069_v45, %v1065_v37  ;;  %v1061_v61 = vrot.slane %v1060_v48, 4  ;;  %v1097_v19 = vshll.u32 %v547_v42, 16 }
  0x38   : > { %v3635_v59 = vcombine.low %v1042_v43, %v1052_v52  ;;  %v1083_v62 = vrot.slane %v1081_v49, 5  ;;  %v1089_v63 = vrot.slane %v1087_v51, 5  ;;  %v1093_v2 = vrot.slane %v1091_v57, 4  ;;  %v3687_v49 = vld [vmem:[%s3518_s20 + $0x28] sm:$0xf] }
  0x39   : > { %v1071_v1 = vrot.slane %v1070_v54, 4  ;;  %v3640_v3 = vcombine.low %v551_v47, %v552_v58  ;;  %v1066_v5 = vsel %vm3560_vm5, %v1061_v61, %v1065_v37  ;;  %v1102_v7 = vshrl.u32 %v551_v47, 16  ;;  %v3692_v54 = vld [vmem:[%s3518_s20 + $0x3c] sm:$0xf]  ;;  %v2914_v57 = vld [vmem:[%s4322_s4 + $0xe] sm:$0x3] }
  0x3a   : > { %3109 = vmatprep.mubr.msk.bf16.mxu0 %vm637_vm2, %v3635_v59  ;;  %v1084_v6 = vor.u32 %v1083_v62, %v1080_v55  ;;  %v1105_v9 = vshll.u32 %v551_v47, 16  ;;  %v1094_v16 = vor.u32 %v1093_v2, %v1089_v63  ;;  %v1099_v17 = vrot.slane %v1097_v19, 5  ;;  %v3695_v55 = vld [vmem:[%s3518_s20 + $0x40] sm:$0xf]  ;;  %v3288_v61 = vld [vmem:[%s3477_s22 + $0xc] sm:$0xff]   ;;  %v3290_v2 = vld [vmem:[%s3477_s22 + $0x24] sm:$0xff]  }
  0x3b   : > { %v1076_v11 = vsel %vm3560_vm5, %v1071_v1, %v1075_v15  ;;  %v1111_v22 = vshll.u32 %v552_v58, 16  ;;  %v1104_v29 = vrot.slane %v1102_v7, 4  ;;  %v1115_v35 = vshrl.u32 %v552_v58, 16  ;;  %v3684_v15 = vld [vmem:[%s3518_s20 + $0x24] sm:$0xf] }
  0x3c   : > { %3092 = vmatmul.mubr.msk.bf16.gmra.mxu1 %vm637_vm2, %v3609_v8  ;;  %v3662_v24 = vcombine.low %v1066_v5, %v1076_v11  ;;  %v1085_v28 = vrot.slane %v1084_v6, 4  ;;  %v1107_v30 = vrot.slane %v1105_v9, 5  ;;  %v1095_v33 = vrot.slane %v1094_v16, 4  ;;  %v2924_v19 = vld [vmem:[%s4322_s4 + $0x10] sm:$0x3] }
  0x3d   : > { %3095 = vmatprep.mubr.msk.bf16.mxu1 %vm637_vm2, %v3623_v40  ;;  %v1113_v34 = vrot.slane %v1111_v22, 5  ;;  %v1121_v36 = vshll.u32 %v553_v0, 16  ;;  %v2854_v42 = vcombine.low %v3655_v10, %v3660_v23  ;;  %v1117_v44 = vrot.slane %v1115_v35, 4  ;;  %v3728_v5 = vld [vmem:[%s3518_s20 + $0x54] sm:$0xf]  ;;  %v3292_v22 = vld [vmem:[%s3477_s22 + $0x3c] sm:$0xff]  }
  0x3e   : > { %3110 = vmatmul.mubr.msk.bf16.gmra.mxu0 %vm637_vm2, %v3662_v24  ;;  %v1090_v37 = vsel %vm3560_vm5, %v1085_v28, %v1089_v63  ;;  %v1108_v38 = vor.u32 %v1107_v30, %v1104_v29  ;;  %v1100_v43 = vsel %vm3560_vm5, %v1095_v33, %v1099_v17  ;;  %v2855_v62 = vcombine.low %v3684_v15, %v3687_v49  ;;  %v3731_v6 = vld [vmem:[%s3518_s20 + $0x58] sm:$0xf]  ;;  %v3734_v7 = vld [vmem:[%s3518_s20 + $0x6c] sm:$0xf]  ;;  %v3742_v17 = vld [vmem:[%s3518_s20 + $0x70] sm:$0xf] }
  0x3f   : > { %v3676_v45 = vcombine.low %v1090_v37, %v1100_v43  ;;  %v1118_v47 = vor.u32 %v1117_v44, %v1113_v34  ;;  %v1123_v48 = vrot.slane %v1121_v36, 5  ;;  %v2856_v0 = vcombine.low %v3692_v54, %v3695_v55 }
  0x40   : > { %v1109_v46 = vrot.slane %v1108_v38, 4  ;;  %v3710_v1 = vand.u32 %v2914_v57, %v3460_v4  ;;  %v1656_v9 = vshrl.u32 %v3655_v10, 16  ;;  %v1659_v11 = vshll.u32 %v3655_v10, 16 }
  0x41   : > { %3113 = vmatprep.mubr.msk.bf16.mxu0 %vm637_vm2, %v3676_v45  ;;  %v1119_v52 = vrot.slane %v1118_v47, 4  ;;  %v1669_v16 = vshrl.u32 %v3660_v23, 16  ;;  %v2857_v28 = vcombine.low %v3728_v5, %v3731_v6  ;;  %v3755_v10 = vand.u32 %v2924_v19, %v3460_v4  ;;  %v514_v4 = vld [vmem:[%s3518_s20 + $0x14] sm:$0x1]  ;;  %v3780_v47 = vld [vmem:[%s3518_s20 + $0x88] sm:$0xf] }
  0x42   : > { %v1114_v51 = vsel %vm3560_vm5, %v1109_v46, %v1113_v34  ;;  %v1658_v29 = vrot.slane %v1656_v9, 4  ;;  %v1661_v30 = vrot.slane %v1659_v11, 5  ;;  %v1680_v35 = vshrl.u32 %v3684_v15, 16  ;;  %v3294_v46 = vld [vmem:[%s3477_s22 + $0x54] sm:$0xff]  }
  0x43   : > { %v1124_v58 = vsel %vm3560_vm5, %v1119_v52, %v1123_v48  ;;  %v1671_v34 = vrot.slane %v1669_v16, 4  ;;  %v1683_v36 = vshll.u32 %v3684_v15, 16  ;;  %v1689_v37 = vshll.u32 %v3687_v49, 16  ;;  %v3784_v15 = vld [vmem:[%s3518_s20 + $0x9c] sm:$0xf] }
  0x44   : > { %3096 = vmatmul.mubr.msk.bf16.gmra.mxu1 %vm637_vm2, %v3640_v3  ;;  %v3705_v63 = vcombine.low %v1114_v51, %v1124_v58  ;;  %v1693_v38 = vshrl.u32 %v3687_v49, 16  ;;  %v1704_v43 = vshrl.u32 %v3692_v54, 16  ;;  %v1707_v44 = vshll.u32 %v3692_v54, 16  ;;  %v3787_v49 = vld [vmem:[%s3518_s20 + $0xa0] sm:$0xf] }
  0x45   : > { %3119 = vmatprep.mubr.msk.bf16.mxu1 %vm637_vm2, %v2854_v42  ;;  %v3771_v42 = vld [vmem:[%s3518_s20 + $0x84] sm:$0xf]  ;;  %v1717_v48 = vshrl.u32 %v3695_v55, 16  ;;  %v1662_v51 = vor.u32 %v1661_v30, %v1658_v29  ;;  %v1675_v57 = vshll.u32 %v514_v4, 16  ;;  %v1682_v58 = vrot.slane %v1680_v35, 4 }
  0x46   : > { %4330 = vst [vmem:[#allocation2_spill] sm:$0xff] %v3705_v63  ;;  %3114 = vmatmul.mubr.msk.bf16.gmra.mxu0 %vm637_vm2, %v3705_v63  ;;  %v1728_v54 = vshrl.u32 %v3728_v5, 16  ;;  %v1731_v19 = vshll.u32 %v3728_v5, 16  ;;  %v1706_v9 = vrot.slane %v1704_v43, 4  ;;  %v1709_v11 = vrot.slane %v1707_v44, 5 }
  0x47   : > { %3137 = vmatprep.mubr.msk.bf16.mxu0 %vm637_vm2, %v3288_v61  ;;  %v1685_v61 = vrot.slane %v1683_v36, 5  ;;  %v2860_v16 = vcombine.low %v3784_v15, %v3787_v49  ;;  %v1677_v29 = vrot.slane %v1675_v57, 5  ;;  %v520_v5 = vld [vmem:[%s3518_s20 + $0x2c] sm:$0x1]  ;;  %v1741_v35 = vshrl.u32 %v3731_v6, 16  ;;  %v3298_v57 = vld [vmem:[%s3477_s22 + $0x84] sm:$0xff]  }
  0x48   : > { %v3803_v30 = vrot.slane %v1728_v54, 4  ;;  %v1752_v36 = vshrl.u32 %v3734_v7, 16  ;;  %v526_v4 = vld [vmem:[%s3518_s20 + $0x44] sm:$0x1]  ;;  %v1761_v43 = vshll.u32 %v3742_v17, 16  ;;  %v1803_v63 = vshll.u32 %v3784_v15, 16 }
  0x49   : > { %v1686_v44 = vor.u32 %v1685_v61, %v1682_v58  ;;  %v1723_v61 = vshll.u32 %v526_v4, 16  ;;  %v532_v4 = vld [vmem:[%s3518_s20 + $0x5c] sm:$0x1] }
  0x4c   : > { %3120 = vmatmul.mubr.msk.bf16.vlgmr.msra.gmra.mxu1 %vm637_vm2, %v2855_v62  ;;  %v3296_v62 = vld [vmem:[%s3477_s22 + $0x6c] sm:$0xff]  }
  0x4d   : > { %3154 = vmatpush3.bf16.msra.mxu1 %v3538_v25  ;;  %3123 = vmatprep.mubr.msk.bf16.mxu1 %vm637_vm2, %v2856_v0  ;;  %v1665_v25 = vshll.u32 %v3660_v23, 16  ;;  %v2858_v23 = vcombine.low %v3734_v7, %v3742_v17  ;;  %v3792_v0 = vrot.slane %v1689_v37, 5  ;;  %v3810_v37 = vrot.slane %v1731_v19, 5 }
  0x4e   : > { %3189 = vmatprep.subr.bf16.mxu1 %v3710_v1  ;;  %3138 = vmatmul.mubr.msk.bf16.vlgmr.msra.gmra.mxu0 %vm637_vm2, %v3290_v2  ;;  %v1695_v2 = vrot.slane %v1693_v38, 4  ;;  %v1755_v38 = vshll.u32 %v3734_v7, 16  ;;  %v1754_v19 = vrot.slane %v1752_v36, 4  ;;  %v1725_v36 = vrot.slane %v1723_v61, 5 }
  0x4f   : > { %v3759_v33 = vrot.slane %v1665_v25, 5  ;;  %3172 = vmatpush3.bf16.msra.mxu0 %v3541_v26  ;;  %3141 = vmatprep.mubr.msk.bf16.mxu0 %vm637_vm2, %v3292_v22  ;;  %v1713_v26 = vshll.u32 %v3695_v55, 16  ;;  %v2859_v55 = vcombine.low %v3771_v42, %v3780_v47  ;;  %v1719_v22 = vrot.slane %v1717_v48, 4 }
  0x50   : > { %3207 = vmatprep.subr.bf16.mxu0 %v3755_v10  ;;  %v1696_v48 = vor.u32 %v1695_v2, %v3792_v0  ;;  %v1776_v2 = vshrl.u32 %v3771_v42, 16 }
  0x51   : > { %v1672_v52 = vor.u32 %v1671_v34, %v3759_v33  ;;  %v3797_v25 = vrot.slane %v1713_v26, 5  ;;  %v1737_v34 = vshll.u32 %v3731_v6, 16  ;;  %v1765_v26 = vshrl.u32 %v3742_v17, 16  ;;  %v3818_v6 = vld [vmem:[%s3518_s20 + $0xb4] sm:$0xf] }
  0x53   : > { %v1720_v17 = vor.u32 %v1719_v22, %v3797_v25  ;;  %v3831_v54 = vrot.slane %v1737_v34, 5 }
  0x54   : > { %3124 = vmatmul.mubr.msk.bf16.gmra.mxu1 %vm637_vm2, %v2857_v28  ;;  %v1663_v28 = vrot.slane %v1662_v51, 4  ;;  %v1699_v51 = vshll.u32 %v520_v5, 16  ;;  %v1767_v5 = vrot.slane %v1765_v26, 4  ;;  %v1809_v26 = vshll.u32 %v3787_v49, 16 }
  0x55   : > { %3127 = vmatprep.mubr.msk.bf16.mxu1 %vm637_vm2, %v2858_v23  ;;  %v1673_v23 = vrot.slane %v1672_v52, 4  ;;  %v1710_v52 = vor.u32 %v1709_v11, %v1706_v9  ;;  %v1757_v9 = vrot.slane %v1755_v38, 5  ;;  %v3835_v11 = vrot.slane %v1761_v43, 5 }
  0x56   : > { %3142 = vmatmul.mubr.msk.bf16.gmra.mxu0 %vm637_vm2, %v3294_v46  ;;  %v3821_v46 = vld [vmem:[%s3518_s20 + $0xb8] sm:$0xf]  ;;  %v1668_v7 = vsel %vm3560_vm5, %v1663_v28, %v3759_v33  ;;  %v1779_v28 = vshll.u32 %v3771_v42, 16  ;;  %v1785_v38 = vshll.u32 %v3780_v47, 16  ;;  %v1789_v43 = vshrl.u32 %v3780_v47, 16 }
  0x57   : > { %3145 = vmatprep.mubr.msk.bf16.mxu0 %vm637_vm2, %v3296_v62  ;;  %v1678_v58 = vsel %vm3560_vm5, %v1673_v23, %v1677_v29  ;;  %v1743_v62 = vrot.slane %v1741_v35, 4  ;;  %v2861_v33 = vcombine.low %v3818_v6, %v3821_v46  ;;  %v1697_v23 = vrot.slane %v1696_v48, 4  ;;  %v538_v42 = vld [vmem:[%s3518_s20 + $0x74] sm:$0x1] }
  0x58   : > { %v2888_v22 = vcombine.low %v1668_v7, %v1678_v58  ;;  %v1701_v29 = vrot.slane %v1699_v51, 5  ;;  %v1711_v34 = vrot.slane %v1710_v52, 4  ;;  %v1721_v35 = vrot.slane %v1720_v17, 4  ;;  %v3302_v58 = vld [vmem:[%s3477_s22 + $0xb4] sm:$0xff]  }
  0x59   : > { %v1813_v48 = vshrl.u32 %v3787_v49, 16  ;;  %v1734_v47 = vor.u32 %v3810_v37, %v3803_v30  ;;  %v1744_v52 = vor.u32 %v1743_v62, %v3831_v54  ;;  %v1758_v7 = vor.u32 %v1757_v9, %v1754_v19 }
  0x5a   : > { %v1716_v49 = vsel %vm3560_vm5, %v1711_v34, %v3797_v25  ;;  %v1768_v17 = vor.u32 %v1767_v5, %v3835_v11  ;;  %v1771_v30 = vshll.u32 %v538_v42, 16  ;;  %v1778_v37 = vrot.slane %v1776_v2, 4  ;;  %v544_v2 = vld [vmem:[%s3518_s20 + $0x8c] sm:$0x1] }
  0x5b   : > { %v1781_v61 = vrot.slane %v1779_v28, 5  ;;  %v1805_v62 = vrot.slane %v1803_v63, 5  ;;  %v1735_v9 = vrot.slane %v1734_v47, 4  ;;  %v1759_v25 = vrot.slane %v1758_v7, 4  ;;  %v550_v63 = vld [vmem:[%s3518_s20 + $0xa4] sm:$0x1] }
  0x5c   : > { %3128 = vmatmul.mubr.msk.bf16.gmra.mxu1 %vm637_vm2, %v2859_v55  ;;  %v3300_v55 = vld [vmem:[%s3477_s22 + $0x9c] sm:$0xff]   ;;  %v1811_v34 = vrot.slane %v1809_v26, 5  ;;  %v1769_v5 = vrot.slane %v1768_v17, 4  ;;  %v1824_v28 = vshrl.u32 %v3818_v6, 16  ;;  %v1819_v47 = vshll.u32 %v550_v63, 16 }
  0x5d   : > { %3131 = vmatprep.mubr.msk.bf16.mxu1 %vm637_vm2, %v2860_v16  ;;  %v1687_v16 = vrot.slane %v1686_v44, 4  ;;  %v1800_v44 = vshrl.u32 %v3784_v15, 16  ;;  %v1702_v15 = vsel %vm3560_vm5, %v1697_v23, %v1701_v29  ;;  %v1745_v23 = vrot.slane %v1744_v52, 4 }
  0x5e   : > { %3146 = vmatmul.mubr.msk.bf16.gmra.mxu0 %vm637_vm2, %v3298_v57  ;;  %v1747_v57 = vshll.u32 %v532_v4, 16  ;;  %v1815_v4 = vrot.slane %v1813_v48, 4  ;;  %v1782_v42 = vor.u32 %v1781_v61, %v1778_v37  ;;  %v1821_v37 = vrot.slane %v1819_v47, 5  ;;  %v556_v61 = vld [vmem:[%s3518_s20 + $0xbc] sm:$0x1] }
  0x5f   : > { %3149 = vmatprep.mubr.msk.bf16.mxu0 %vm637_vm2, %v3300_v55  ;;  %v1692_v51 = vsel %vm3560_vm5, %v1687_v16, %v3792_v0  ;;  %v1726_v0 = vsel %vm3560_vm5, %v1721_v35, %v1725_v36  ;;  %v1787_v55 = vrot.slane %v1785_v38, 5  ;;  %v1802_v16 = vrot.slane %v1800_v44, 4 }
  0x60   : > { %v2889_v19 = vcombine.low %v1692_v51, %v1702_v15  ;;  %v1749_v29 = vrot.slane %v1747_v57, 5  ;;  %v1773_v35 = vrot.slane %v1771_v30, 5  ;;  %v1827_v36 = vshll.u32 %v3818_v6, 16 }
  0x61   : > { %v1833_v38 = vshll.u32 %v3821_v46, 16  ;;  %v1740_v44 = vsel %vm3560_vm5, %v1735_v9, %v3831_v54  ;;  %v1806_v51 = vor.u32 %v1805_v62, %v1802_v16  ;;  %v1816_v54 = vor.u32 %v1815_v4, %v1811_v34 }
  0x62   : > { %v1750_v6 = vsel %vm3560_vm5, %v1745_v23, %v1749_v29  ;;  %v1774_v48 = vsel %vm3560_vm5, %v1769_v5, %v1773_v35  ;;  %v1826_v15 = vrot.slane %v1824_v28, 4  ;;  %v1783_v7 = vrot.slane %v1782_v42, 4  ;;  %v591_v28 = vld [vmem:[%s460_s18 + $0x8] sm:$0x1] }
  0x63   : > { %v1835_v52 = vrot.slane %v1833_v38, 5  ;;  %v2891_v57 = vcombine.low %v1740_v44, %v1750_v6  ;;  %v1817_v30 = vrot.slane %v1816_v54, 4  ;;  %v3304_v38 = vld [vmem:[%s3749_s15] sm:$0xff]  }
  0x64   : > { %3132 = vmatmul.mubr.msk.bf16.gmra.mxu1 %vm637_vm2, %v2861_v33  ;;  %v1791_v33 = vrot.slane %v1789_v43, 4  ;;  %v1837_v43 = vshrl.u32 %v3821_v46, 16  ;;  %v1795_v46 = vshll.u32 %v544_v2, 16 }
  0x65   : > { %3155 = vmatprep.mubr.msk.bf16.mxu1 %vm637_vm2, %v2888_v22  ;;  %v2890_v22 = vcombine.low %v1716_v49, %v1726_v0 }
  0x66   : > { %3150 = vmatmul.mubr.msk.bf16.gmra.mxu0 %vm637_vm2, %v3302_v58  ;;  %v1792_v26 = vor.u32 %v1791_v33, %v1787_v55  ;;  %v1839_v58 = vrot.slane %v1837_v43, 4  ;;  %v1797_v17 = vrot.slane %v1795_v46, 5  ;;  %v1788_v33 = vsel %vm3560_vm5, %v1783_v7, %v1787_v55 }
  0x67   : > { %3173 = vmatprep.mubr.msk.bf16.mxu0 %vm637_vm2, %v3548_v41  ;;  %v1764_v41 = vsel %vm3560_vm5, %v1759_v25, %v3835_v11  ;;  %v1807_v11 = vrot.slane %v1806_v51, 4 }
  0x68   : > { %v2892_v49 = vcombine.low %v1764_v41, %v1774_v48  ;;  %v1793_v0 = vrot.slane %v1792_v26, 4  ;;  %v1840_v62 = vor.u32 %v1839_v58, %v1835_v52 }
  0x6a   : > { %v1798_v16 = vsel %vm3560_vm5, %v1793_v0, %v1797_v17  ;;  %v1841_v29 = vrot.slane %v1840_v62, 4 }
  0x6b   : > { %v2893_v9 = vcombine.low %v1788_v33, %v1798_v16 }
  0x6c   : > { %3156 = vmatmul.mubr.msk.bf16.vlgmr.msra.gmra.mxu1 %vm637_vm2, %v2889_v19  ;;  %v1843_v19 = vshll.u32 %v556_v61, 16 }
  0x6d   : > { %3190 = vmatpush3.bf16.msra.mxu1 %v3710_v1  ;;  %3159 = vmatprep.mubr.msk.bf16.mxu1 %vm637_vm2, %v2890_v22  ;;  %v1829_v1 = vrot.slane %v1827_v36, 5  ;;  %v2285_v36 = vshll.u32 %v591_v28, 16 }
  0x6e   : > { %3174 = vmatmul.mubr.msk.bf16.vlgmr.msra.gmra.mxu0 %vm637_vm2, %v3564_v56  ;;  %v1845_v55 = vrot.slane %v1843_v19, 5 }
  0x6f   : > { %3208 = vmatpush3.bf16.msra.mxu0 %v3755_v10  ;;  %3177 = vmatprep.mubr.msk.bf16.mxu0 %vm637_vm2, %v3575_v31  ;;  %v1830_v56 = vor.u32 %v1829_v1, %v1826_v15  ;;  %v1812_v10 = vsel %vm3560_vm5, %v1807_v11, %v1811_v34  ;;  %v1822_v31 = vsel %vm3560_vm5, %v1817_v30, %v1821_v37  ;;  %v2287_v63 = vrot.slane %v2285_v36, 5 }
  0x70   : > { %v2894_v22 = vcombine.low %v1812_v10, %v1822_v31  ;;  %v1846_v34 = vsel %vm3560_vm5, %v1841_v29, %v1845_v55 }
  0x71   : > { %v1831_v23 = vrot.slane %v1830_v56, 4 }
  0x73   : > { %v1836_v25 = vsel %vm3560_vm5, %v1831_v23, %v1835_v52 }
  0x74   : > { %3160 = vmatmul.mubr.msk.bf16.gmra.mxu1 %vm637_vm2, %v2891_v57  ;;  %v2895_v4 = vcombine.low %v1836_v25, %v1846_v34 }
  0x75   : > { %3163 = vmatprep.mubr.msk.bf16.mxu1 %vm637_vm2, %v2892_v49 }
  0x76   : > { %3178 = vmatmul.mubr.msk.bf16.gmra.mxu0 %vm637_vm2, %v3595_v50  ;;  %v589_v50 = vld [vmem:[%s460_s18] sm:$0xf] }
  0x77   : > { %3181 = vmatprep.mubr.msk.bf16.mxu0 %vm637_vm2, %v3609_v8  ;;  %v590_v8 = vld [vmem:[%s460_s18 + $0x4] sm:$0xf] }
  0x78   : > { %v2905_v5 = vcombine.low %v589_v50, %v590_v8  ;;  %v2275_v35 = vshll.u32 %v590_v8, 16  ;;  %v2279_v2 = vshrl.u32 %v590_v8, 16 }
  0x7c   : > { %3164 = vmatmul.mubr.msk.bf16.gmra.mxu1 %vm637_vm2, %v2893_v9 }
  0x7d   : > { %3167 = vmatprep.mubr.msk.bf16.mxu1 %vm637_vm2, %v2894_v22 }
  0x7e   : > { %3182 = vmatmul.mubr.msk.bf16.gmra.mxu0 %vm637_vm2, %v3623_v40  ;;  %v2266_v40 = vshrl.u32 %v589_v50, 16 }
  0x7f   : > { %3185 = vmatprep.mubr.msk.bf16.mxu0 %vm637_vm2, %v3640_v3  ;;  %v2269_v3 = vshll.u32 %v589_v50, 16 }
  0x84   : > { %3168 = vmatmul.mubr.msk.bf16.gmra.mxu1 %vm637_vm2, %v2895_v4 }
  0x85   : > { %3191 = vmatprep.mubr.msk.bf16.mxu1 %vm637_vm2, %v3491_v13  ;;  %v2268_v13 = vrot.slane %v2266_v40, 4 }
  0x86   : > { %3186 = vmatmul.mubr.msk.bf16.gmra.mxu0 %vm637_vm2, %v2905_v5 }
  0x87   : > { %3209 = vmatprep.mubr.msk.bf16.mxu0 %vm637_vm2, %v3584_v39  ;;  %v2281_v39 = vrot.slane %v2279_v2, 4 }
  0x8c   : > { %3192 = vmatmul.mubr.msk.bf16.vlgmr.msra.gmra.mxu1 %vm637_vm2, %v3510_v18  ;;  %v2271_v18 = vrot.slane %v2269_v3, 5 }
  0x8d   : > { %3195 = vmatprep.mubr.msk.bf16.mxu1 %vm637_vm2, %v3530_v21  ;;  %v2277_v21 = vrot.slane %v2275_v35, 5 }
  0x8e   : > { %3210 = vmatmul.mubr.msk.bf16.vlgmr.msra.gmra.mxu0 %vm637_vm2, %v3602_v60  ;;  %v2272_v60 = vor.u32 %v2271_v18, %v2268_v13 }
  0x8f   : > { %3213 = vmatprep.mubr.msk.bf16.mxu0 %vm637_vm2, %v3621_v32  ;;  %v2282_v32 = vor.u32 %v2281_v39, %v2277_v21 }
  0x94   : > { %3196 = vmatmul.mubr.msk.bf16.gmra.mxu1 %vm637_vm2, %v3487_v12  ;;  %v2273_v12 = vrot.slane %v2272_v60, 4 }
  0x95   : > { %3199 = vmatprep.mubr.msk.bf16.mxu1 %vm637_vm2, %v3496_v14  ;;  %v2283_v14 = vrot.slane %v2282_v32, 4 }
  0x96   : > { %3214 = vmatmul.mubr.msk.bf16.gmra.mxu0 %vm637_vm2, %v3635_v59  ;;  %v4331_v59 = vld [vmem:[#allocation2_spill] sm:$0xff] }
  0x97   : > { %3217 = vmatprep.mubr.msk.bf16.mxu0 %vm637_vm2, %v3662_v24  ;;  %v2278_v24 = vsel %vm3560_vm5, %v2273_v12, %v2277_v21  ;;  %v2288_v43 = vsel %vm3560_vm5, %v2283_v14, %v2287_v63 }
  0x9c   : > { %3200 = vmatmul.mubr.msk.bf16.gmra.mxu1 %vm637_vm2, %v3523_v20  ;;  %v2925_v20 = vcombine.low %v2278_v24, %v2288_v43 }
  0x9d   : > { %3203 = vmatprep.mubr.msk.bf16.mxu1 %vm637_vm2, %v3544_v27 }
  0x9e   : > { %3218 = vmatmul.mubr.msk.bf16.gmra.mxu0 %vm637_vm2, %v3676_v45 }
  0x9f   : > { %3221 = vmatprep.mubr.msk.bf16.mxu0 %vm637_vm2, %v4331_v59 }
  0xa4   : > { %3204 = vmatmul.mubr.msk.bf16.gmra.mxu1 %vm637_vm2, %v3304_v38 }
  0xa6   : > { %3222 = vmatmul.mubr.msk.bf16.gmra.mxu0 %vm637_vm2, %v2925_v20 }
  0xdb   : > { %v3067_v27 = vpop.f32.mrf.mxu0 }
  0xdc   : > { %v3075_v44 = vpop.f32.mrf.mxu1 }
  0xdd   : > { %v703_v42 = vpop.f32.mrf.mxu0 }
  0xde   : > { %v735_v6 = vpop.f32.mrf.mxu1 }
  0xdf   : > { %v3068_v41 = vpop.f32.mrf.mxu0 }
  0xe0   : > { %v3076_v45 = vpop.f32.mrf.mxu1 }
  0xe1   : > { %v706_v26 = vpop.f32.mrf.mxu0 }
  0xe2   : > { %v738_v46 = vpop.f32.mrf.mxu1 }
  0xe3   : > { %v3071_v48 = vpop.f32.mrf.mxu0 }
  0xe4   : > { %v3079_v51 = vpop.f32.mrf.mxu1 }
  0xe5   : > { %v719_v54 = vpop.f32.mrf.mxu0 }
  0xe6   : > { %v751_v47 = vpop.f32.mrf.mxu1 }
  0xe7   : > { %v3072_v15 = vpop.f32.mrf.mxu0 }
  0xe8   : > { %v3080_v53 = vpop.f32.mrf.mxu1 }
  0xe9   : > { %v722_v52 = vpop.f32.mrf.mxu0 }
  0xea   : > { %v754_v1 = vpop.f32.mrf.mxu1 }
  0xec   : > { %v3085_v57 = vpop.f32.mrf.mxu1  ;;  %v3103_v49 = vpop.f32.mrf.mxu0 }
  0xed   : > { %v876_v7 = vadd.f32 %v3085_v57, %v3067_v27 }
  0xee   : > { %v867_v58 = vpop.f32.mrf.mxu1  ;;  %v1212_v30 = vpop.f32.mrf.mxu0 }
  0xef   : > { %v868_v0 = vadd.f32 %v867_v58, %v703_v42  ;;  %v3961_v17 = vadd.f32 %v3103_v49, %v876_v7 }
  0xf0   : > { %v3086_v11 = vpop.f32.mrf.mxu1  ;;  %v3104_v16 = vpop.f32.mrf.mxu0 }
  0xf1   : > { %v879_v37 = vadd.f32 %v3086_v11, %v3068_v41  ;;  %v3963_v61 = vadd.f32 %v1212_v30, %v868_v0 }
  0xf2   : > { %v870_v33 = vpop.f32.mrf.mxu1  ;;  %v1215_v10 = vpop.f32.mrf.mxu0 }
  0xf3   : > { %v871_v56 = vadd.f32 %v870_v33, %v706_v26  ;;  %v3965_v62 = vadd.f32 %v3104_v16, %v879_v37 }
  0xf4   : > { %v3089_v19 = vpop.f32.mrf.mxu1  ;;  %v3107_v29 = vpop.f32.mrf.mxu0 }
  0xf5   : > { %v892_v31 = vadd.f32 %v3089_v19, %v3071_v48  ;;  %v3967_v9 = vadd.f32 %v1215_v10, %v871_v56 }
  0xf6   : > { %v883_v22 = vpop.f32.mrf.mxu1  ;;  %v1228_v4 = vpop.f32.mrf.mxu0 }
  0xf7   : > { %v884_v23 = vadd.f32 %v883_v22, %v719_v54  ;;  %v3969_v25 = vadd.f32 %v3107_v29, %v892_v31 }
  0xf8   : > { %v3090_v55 = vpop.f32.mrf.mxu1  ;;  %v3108_v40 = vpop.f32.mrf.mxu0 }
  0xf9   : > { %v895_v34 = vadd.f32 %v3090_v55, %v3072_v15  ;;  %v3971_v8 = vadd.f32 %v1228_v4, %v884_v23 }
  0xfa   : > { %v886_v50 = vpop.f32.mrf.mxu1  ;;  %v1231_v13 = vpop.f32.mrf.mxu0 }
  0xfb   : > { %v887_v5 = vadd.f32 %v886_v50, %v722_v52  ;;  %v3973_v35 = vadd.f32 %v3108_v40, %v895_v34 }
  0xfc   : > { %v3093_v3 = vpop.f32.mrf.mxu1 }
  0xfd   : > { %v908_v2 = vadd.f32 %v3093_v3, %v3075_v44  ;;  %v3975_v21 = vadd.f32 %v1231_v13, %v887_v5 }
  0xfe   : > { %v899_v18 = vpop.f32.mrf.mxu1  ;;  %v3111_v60 = vpop.f32.mrf.mxu0 }
  0xff   : > { %v900_v39 = vadd.f32 %v899_v18, %v735_v6  ;;  %v3977_v36 = vadd.f32 %v3111_v60, %v908_v2 }
 0x100   : > { %v3094_v28 = vpop.f32.mrf.mxu1  ;;  %v1244_v14 = vpop.f32.mrf.mxu0 }
 0x101   : > { %v911_v32 = vadd.f32 %v3094_v28, %v3076_v45  ;;  %v3979_v38 = vadd.f32 %v1244_v14, %v900_v39 }
 0x102   : > { %v902_v12 = vpop.f32.mrf.mxu1  ;;  %v3112_v24 = vpop.f32.mrf.mxu0 }
 0x103   : > { %v903_v63 = vadd.f32 %v902_v12, %v738_v46  ;;  %v3981_v20 = vadd.f32 %v3112_v24, %v911_v32 }
 0x104   : > { %v3097_v59 = vpop.f32.mrf.mxu1  ;;  %v1247_v44 = vpop.f32.mrf.mxu0 }
 0x105   : > { %v924_v43 = vadd.f32 %v3097_v59, %v3079_v51  ;;  %v3983_v41 = vadd.f32 %v1247_v44, %v903_v63 }
 0x106   : > { %v915_v27 = vpop.f32.mrf.mxu1  ;;  %v3115_v48 = vpop.f32.mrf.mxu0 }
 0x107   : > { %v916_v42 = vadd.f32 %v915_v27, %v751_v47  ;;  %v3985_v15 = vadd.f32 %v3115_v48, %v924_v43 }
 0x108   : > { %v3098_v6 = vpop.f32.mrf.mxu1  ;;  %v1260_v52 = vpop.f32.mrf.mxu0 }
 0x109   : > { %v927_v26 = vadd.f32 %v3098_v6, %v3080_v53  ;;  %v3987_v57 = vadd.f32 %v1260_v52, %v916_v42 }
 0x10a   : > { %v918_v45 = vpop.f32.mrf.mxu1  ;;  %v3116_v51 = vpop.f32.mrf.mxu0 }
 0x10b   : > { %v919_v54 = vadd.f32 %v918_v45, %v754_v1  ;;  %v3989_v58 = vadd.f32 %v3116_v51, %v927_v26 }
 0x10c   : > { %v3121_v46 = vpop.f32.mrf.mxu1  ;;  %v1263_v0 = vpop.f32.mrf.mxu0 }
 0x10d   : > { %v3991_v47 = vadd.f32 %v1263_v0, %v919_v54 }
 0x10e   : > { %v1394_v7 = vpop.f32.mrf.mxu1  ;;  %v3139_v30 = vpop.f32.mrf.mxu0 }
 0x110   : > { %v3122_v49 = vpop.f32.mrf.mxu1  ;;  %v1576_v53 = vpop.f32.mrf.mxu0 }
 0x112   : > { %v1397_v11 = vpop.f32.mrf.mxu1  ;;  %v3140_v33 = vpop.f32.mrf.mxu0 }
 0x114   : > { %v3125_v37 = vpop.f32.mrf.mxu1  ;;  %v3993_v16 = vpop.f32.mrf.mxu0 }
 0x116   : > { %v1410_v1 = vpop.f32.mrf.mxu1  ;;  %v3995_v19 = vpop.f32.mrf.mxu0 }
 0x118   : > { %v3126_v56 = vpop.f32.mrf.mxu1  ;;  %v3997_v31 = vpop.f32.mrf.mxu0 }
 0x11a   : > { %v1413_v10 = vpop.f32.mrf.mxu1  ;;  %v4001_v23 = vpop.f32.mrf.mxu0 }
 0x11c   : > { %v3999_v22 = vpop.f32.mrf.mxu1  ;;  %v4005_v55 = vpop.f32.mrf.mxu0 }
 0x11e   : > { %v4003_v29 = vpop.f32.mrf.mxu1  ;;  %v4009_v4 = vpop.f32.mrf.mxu0 }
 0x120   : > { %v4007_v34 = vpop.f32.mrf.mxu1  ;;  %v4013_v5 = vpop.f32.mrf.mxu0 }
 0x122   : > { %v4011_v50 = vpop.f32.mrf.mxu1  ;;  %v4017_v3 = vpop.f32.mrf.mxu0 }
 0x124   : > { %v4015_v40 = vpop.f32.mrf.mxu1  ;;  %v4021_v13 = vpop.f32.mrf.mxu0 }
 0x126   : > { %v4019_v2 = vpop.f32.mrf.mxu1  ;;  %v4025_v39 = vpop.f32.mrf.mxu0 }
 0x128   : > { %v4023_v18 = vpop.f32.mrf.mxu1  ;;  %v4029_v60 = vpop.f32.mrf.mxu0 }
 0x129   : > { %4333 = vst [vmem:[#allocation3_spill] sm:$0xff] %v4029_v60 }
 0x12a   : > { %v4027_v28 = vpop.f32.mrf.mxu1  ;;  %v4031_v12 = vpop.f32.mrf.mxu0 }
 0x12b   : > { %4332 = vst [vmem:[#allocation2_spill] sm:$0xff] %v4027_v28  ;;  %4334 = vst [vmem:[#allocation4_spill] sm:$0xff] %v4031_v12 }
 0x12c   : > { %v3157_v32 = vpop.f32.mrf.mxu1  ;;  %v4033_v63 = vpop.f32.mrf.mxu0 }
 0x12d   : > { %4335 = vst [vmem:[#allocation5_spill] sm:$0xff] %v4033_v63 }
 0x12e   : > { %v1934_v14 = vpop.f32.mrf.mxu1  ;;  %v3175_v24 = vpop.f32.mrf.mxu0 }
 0x130   : > { %v3158_v59 = vpop.f32.mrf.mxu1  ;;  %v2060_v27 = vpop.f32.mrf.mxu0 }
 0x132   : > { %v1937_v43 = vpop.f32.mrf.mxu1  ;;  %v3176_v42 = vpop.f32.mrf.mxu0 }
 0x134   : > { %v4035_v44 = vpop.f32.mrf.mxu1  ;;  %v4039_v26 = vpop.f32.mrf.mxu0 }
 0x135   : > { %4336 = vst [vmem:[#allocation6_spill] sm:$0xff] %v4039_v26 }
 0x136   : > { %v4037_v6 = vpop.f32.mrf.mxu1  ;;  %v4043_v48 = vpop.f32.mrf.mxu0 }
 0x137   : > { %4338 = vst [vmem:[#allocation8_spill] sm:$0xff] %v4043_v48  ;;  %v1459_v48 = vadd.f32 %v3121_v46, %v3961_v17  ;;  %v1458_v17 = vadd.f32 %v1397_v11, %v3967_v9 }
 0x138   : > { %v4041_v45 = vpop.f32.mrf.mxu1  ;;  %v4047_v52 = vpop.f32.mrf.mxu0 }
 0x139   : > { %4337 = vst [vmem:[#allocation7_spill] sm:$0xff] %v4041_v45  ;;  %4340 = vst [vmem:[#allocation10_spill] sm:$0xff] %v4047_v52  ;;  %v1457_v52 = vadd.f32 %v1394_v7, %v3963_v61  ;;  %v1640_v9 = vadd.f32 %v3993_v16, %v1458_v17  ;;  %v1466_v16 = vadd.f32 %v4011_v50, %v3983_v41 }
 0x13a   : > { %v4045_v54 = vpop.f32.mrf.mxu1  ;;  %v4051_v0 = vpop.f32.mrf.mxu0 }
 0x13b   : > { %4339 = vst [vmem:[#allocation9_spill] sm:$0xff] %v4045_v54  ;;  %4342 = vst [vmem:[#allocation12_spill] sm:$0xff] %v4051_v0 }
 0x13c   : > { %v4049_v51 = vpop.f32.mrf.mxu1  ;;  %v4055_v12 = vpop.f32.mrf.mxu0 }
 0x13d   : > { %4341 = vst [vmem:[#allocation11_spill] sm:$0xff] %v4049_v51  ;;  %4344 = vst [vmem:[#allocation14_spill] sm:$0xff] %v4055_v12  ;;  %v1460_v12 = vadd.f32 %v3122_v49, %v3965_v62  ;;  %v1464_v62 = vadd.f32 %v3126_v56, %v3973_v35  ;;  %v1462_v49 = vadd.f32 %v1413_v10, %v3975_v21 }
 0x13e   : > { %v4053_v63 = vpop.f32.mrf.mxu1  ;;  %v4059_v28 = vpop.f32.mrf.mxu0  ;;  %v1468_v35 = vadd.f32 %v4007_v34, %v3981_v20  ;;  %v1469_v34 = vadd.f32 %v4019_v2, %v3987_v57  ;;  %v1648_v2 = vadd.f32 %v4021_v13, %v1466_v16 }
 0x13f   : > { %4343 = vst [vmem:[#allocation13_spill] sm:$0xff] %v4053_v63  ;;  %4346 = vst [vmem:[#allocation16_spill] sm:$0xff] %v4059_v28  ;;  %v1641_v63 = vadd.f32 %v3139_v30, %v1459_v48  ;;  %v1642_v7 = vadd.f32 %v3140_v33, %v1460_v12 }
 0x140   : > { %v4057_v60 = vpop.f32.mrf.mxu1  ;;  %v4064_v45 = vpop.f32.mrf.mxu0 }
 0x141   : > { %4345 = vst [vmem:[#allocation15_spill] sm:$0xff] %v4057_v60  ;;  %4348 = vst [vmem:[#allocation18_spill] sm:$0xff] %v4064_v45  ;;  %v1999_v46 = vadd.f32 %v3157_v32, %v1641_v63  ;;  %v1463_v45 = vadd.f32 %v3125_v37, %v3969_v25  ;;  %v2000_v32 = vadd.f32 %v3158_v59, %v1642_v7  ;;  %v4352_v59 = vld [vmem:[#allocation6_spill] sm:$0xff] }
 0x142   : > { %v4061_v26 = vpop.f32.mrf.mxu1  ;;  %v4069_v51 = vpop.f32.mrf.mxu0  ;;  %v1467_v37 = vadd.f32 %v3999_v22, %v3977_v36  ;;  %v1644_v36 = vadd.f32 %v4005_v55, %v1462_v49  ;;  %v1998_v22 = vadd.f32 %v1937_v43, %v1640_v9  ;;  %v1650_v55 = vadd.f32 %v4017_v3, %v1468_v35  ;;  %v4353_v43 = vld [vmem:[#allocation7_spill] sm:$0xff]  ;;  %v4360_v35 = vld [vmem:[#allocation5_spill] sm:$0xff] }
 0x143   : > { %4347 = vst [vmem:[#allocation17_spill] sm:$0xff] %v4061_v26  ;;  %v1639_v26 = vadd.f32 %v1576_v53, %v1457_v52  ;;  %v2125_v11 = vadd.f32 %v3175_v24, %v1999_v46  ;;  %v1645_v25 = vadd.f32 %v3995_v19, %v1463_v45  ;;  %v1646_v19 = vadd.f32 %v4001_v23, %v1464_v62  ;;  %v4355_v45 = vld [vmem:[#allocation4_spill] sm:$0xff]  ;;  %v4357_v46 = vld [vmem:[#allocation9_spill] sm:$0xff] }
 0x144   : > { %v4066_v54 = vpop.f32.mrf.mxu1  ;;  %v4074_v60 = vpop.f32.mrf.mxu0  ;;  %v2126_v41 = vadd.f32 %v3176_v42, %v2000_v32  ;;  %v1649_v12 = vadd.f32 %v4009_v4, %v1467_v37  ;;  %v2124_v24 = vadd.f32 %v4352_v59, %v1998_v22  ;;  %v2002_v7 = vadd.f32 %v4357_v46, %v1644_v36 }
 0x145   : > { %4349 = vst [vmem:[#allocation19_spill] sm:$0xff] %v4066_v54  ;;  %v1997_v30 = vadd.f32 %v1934_v14, %v1639_v26  ;;  %v4119_v14 = vld [vmem:[%s4323_s5] ss:$0 sm:$0xff]  ;;  %v4354_v26 = vld [vmem:[#allocation3_spill] sm:$0xff] }
 0x146   : > { %v4071_v0 = vpop.f32.mrf.mxu1  ;;  %v4080_v54 = vpop.f32.mrf.mxu0 }
 0x147   : > { %4350 = vst [vmem:[#allocation20_spill] sm:$0xff] %v4071_v0  ;;  %v1461_v0 = vadd.f32 %v1410_v1, %v3971_v8  ;;  %v1465_v8 = vadd.f32 %v4003_v29, %v3979_v38  ;;  %v2123_v56 = vadd.f32 %v2060_v27, %v1997_v30  ;;  %v1471_v38 = vadd.f32 %v4015_v40, %v3985_v15  ;;  %v4358_v30 = vld [vmem:[#allocation11_spill] sm:$0xff] }
 0x148   : > { %v4076_v28 = vpop.f32.mrf.mxu1  ;;  %v4087_v48 = vpop.f32.mrf.mxu0  ;;  %v2003_v15 = vadd.f32 %v4035_v44, %v1645_v25  ;;  %v2004_v27 = vadd.f32 %v4353_v43, %v1646_v19  ;;  %v4131_v44 = vld [vmem:[%s4324_s6] ss:$0 sm:$0xff]  ;;  %v2007_v62 = vadd.f32 %v4358_v30, %v1649_v12  ;;  %v4364_v12 = vld [vmem:[#allocation16_spill] sm:$0xff] }
 0x149   : > { %v1643_v1 = vadd.f32 %v3997_v31, %v1461_v0  ;;  %v1472_v31 = vadd.f32 %v4023_v18, %v3989_v58  ;;  %v1647_v23 = vadd.f32 %v4013_v5, %v1465_v8  ;;  %v1653_v4 = vadd.f32 %v4025_v39, %v1471_v38  ;;  %v4351_v5 = vld [vmem:[#allocation2_spill] sm:$0xff] }
 0x14a   : > { %v4082_v61 = vpop.f32.mrf.mxu1  ;;  %v4097_v33 = vpop.f32.mrf.mxu0  ;;  %v1470_v3 = vadd.f32 %v4351_v5, %v3991_v47  ;;  %v4356_v47 = vld [vmem:[#allocation8_spill] sm:$0xff]  ;;  %v4367_v59 = vld [vmem:[#allocation18_spill] sm:$0xff]  ;;  %v4368_v43 = vld [vmem:[#allocation17_spill] sm:$0xff] }
 0x14b   : > { %v2001_v58 = vadd.f32 %v4037_v6, %v1643_v1  ;;  %v1651_v6 = vadd.f32 %v4354_v26, %v1469_v34  ;;  %v1654_v52 = vadd.f32 %v4355_v45, %v1472_v31  ;;  %v2129_v17 = vadd.f32 %v4356_v47, %v2003_v15  ;;  %v4361_v1 = vld [vmem:[#allocation12_spill] sm:$0xff] }
 0x14c   : > { %v3193_v53 = vpop.f32.mrf.mxu1  ;;  %v4106_v29 = vpop.f32.mrf.mxu0  ;;  %v2130_v16 = vadd.f32 %v4361_v1, %v2004_v27  ;;  %v2133_v15 = vadd.f32 %v4364_v12, %v2007_v62  ;;  %v2006_v27 = vadd.f32 %v4368_v43, %v1648_v2 }
 0x14d   : > { %v2251_v10 = vadd.f32 %v3193_v53, %v2125_v11  ;;  %v4359_v11 = vld [vmem:[#allocation10_spill] sm:$0xff] }
 0x14e   : > { %v2186_v21 = vpop.f32.mrf.mxu1  ;;  %v3211_v40 = vpop.f32.mrf.mxu0  ;;  %v2127_v32 = vadd.f32 %v4359_v11, %v2001_v58 }
 0x14f   : > { %v2249_v50 = vadd.f32 %v2186_v21, %v2123_v56  ;;  %v2399_v18 = vadd.f32 %v3211_v40, %v2251_v10  ;;  %v1652_v21 = vadd.f32 %v4360_v35, %v1470_v3  ;;  %v4362_v56 = vld [vmem:[#allocation13_spill] sm:$0xff]  ;;  %v4365_v40 = vld [vmem:[#allocation15_spill] sm:$0xff]  ;;  %v2012_v35 = vadd.f32 %v4076_v28, %v1654_v52 }
 0x150   : > { %v3194_v20 = vpop.f32.mrf.mxu1  ;;  %v2334_v42 = vpop.f32.mrf.mxu0  ;;  %v2005_v10 = vadd.f32 %v4362_v56, %v1647_v23 }
 0x151   : > { %v2252_v63 = vadd.f32 %v3194_v20, %v2126_v41  ;;  %v2422_v39 = vmul.f32 %v4119_v14, %v2399_v18  ;;  %v2397_v0 = vadd.f32 %v2334_v42, %v2249_v50  ;;  %v4363_v41 = vld [vmem:[#allocation14_spill] sm:$0xff] }
 0x152   : > { %v2189_v57 = vpop.f32.mrf.mxu1  ;;  %v3212_v49 = vpop.f32.mrf.mxu0  ;;  %v2128_v50 = vadd.f32 %v4363_v41, %v2002_v7 }
 0x153   : > { %v2250_v53 = vadd.f32 %v2189_v57, %v2124_v24  ;;  %v4141_v25 = vadd.f32 %v4131_v44, %v2422_v39  ;;  %v2420_v37 = vmul.f32 %v4119_v14, %v2397_v0  ;;  %v2400_v8 = vadd.f32 %v3212_v49, %v2252_v63  ;;  %v4370_v49 = vld [vmem:[#allocation20_spill] sm:$0xff] }
 0x154   : > { %v3197_v13 = vpop.f32.mrf.mxu1  ;;  %v2337_v19 = vpop.f32.mrf.mxu0  ;;  %v2008_v57 = vadd.f32 %v4365_v40, %v1650_v55  ;;  %v2131_v24 = vadd.f32 %v4367_v59, %v2005_v10 }
 0x155   : > { %v2255_v36 = vadd.f32 %v3197_v13, %v2129_v17  ;;  %v2477_v22 = vmul.f32 0.70710677, %v4141_v25  ;;  %v4150_v20 = vadd.f32 %v4131_v44, %v2420_v37  ;;  %v2423_v34 = vmul.f32 %v4119_v14, %v2400_v8  ;;  %v4369_v17 = vld [vmem:[#allocation19_spill] sm:$0xff] }
 0x156   : > { %v2202_v9 = vpop.f32.mrf.mxu1  ;;  %v2398_v58 = vadd.f32 %v2337_v19, %v2250_v53  ;;  %v3215_v23 = vpop.f32.mrf.mxu0  ;;  %v2134_v47 = vadd.f32 %v4069_v51, %v2008_v57  ;;  %v2011_v46 = vadd.f32 %v4369_v17, %v1653_v4  ;;  %v2009_v53 = vadd.f32 %v4370_v49, %v1651_v6 }
 0x157   : > { %v2253_v31 = vadd.f32 %v2202_v9, %v2127_v32  ;;  %3305 = verf.f32 %v2477_v22  ;;  %v2475_v63 = vmul.f32 0.70710677, %v4150_v20  ;;  %v4164_v5 = vadd.f32 %v4131_v44, %v2423_v34 }
 0x158   : > { %v3198_v38 = vpop.f32.mrf.mxu1  ;;  %v2421_v55 = vmul.f32 %v4119_v14, %v2398_v58  ;;  %v2403_v42 = vadd.f32 %v3215_v23, %v2255_v36  ;;  %v2350_v13 = vpop.f32.mrf.mxu0  ;;  %v2132_v51 = vadd.f32 %v4074_v60, %v2006_v27  ;;  %v2010_v60 = vadd.f32 %v4082_v61, %v1652_v21 }
 0x159   : > { %v2256_v3 = vadd.f32 %v3198_v38, %v2130_v16  ;;  %3307 = verf.f32 %v2475_v63  ;;  %v2478_v45 = vmul.f32 0.70710677, %v4164_v5  ;;  %v2401_v39 = vadd.f32 %v2350_v13, %v2253_v31 }
 0x15a   : > { %v2205_v18 = vpop.f32.mrf.mxu1  ;;  %v4173_v7 = vadd.f32 %v4131_v44, %v2421_v55  ;;  %v2426_v2 = vmul.f32 %v4119_v14, %v2403_v42  ;;  %v3216_v30 = vpop.f32.mrf.mxu0  ;;  %v2137_v31 = vadd.f32 %v4080_v54, %v2011_v46  ;;  %v2135_v61 = vadd.f32 %v4087_v48, %v2009_v53 }
 0x15b   : > { %v2254_v0 = vadd.f32 %v2205_v18, %v2128_v50  ;;  %3309 = verf.f32 %v2478_v45  ;;  %v2424_v9 = vmul.f32 %v4119_v14, %v2401_v39  ;;  %v2404_v11 = vadd.f32 %v3216_v30, %v2256_v3 }
 0x15c   : > { %v3201_v26 = vpop.f32.mrf.mxu1  ;;  %v2476_v4 = vmul.f32 0.70710677, %v4173_v7  ;;  %v4187_v32 = vadd.f32 %v4131_v44, %v2426_v2  ;;  %v2353_v37 = vpop.f32.mrf.mxu0  ;;  %v2138_v57 = vadd.f32 %v4097_v33, %v2012_v35  ;;  %v4211_v58 = vadd.f32 %v4106_v29, %v2010_v60 }
 0x15d   : > { %v2259_v8 = vadd.f32 %v3201_v26, %v2133_v15  ;;  %v4191_v1 = vadd.f32 %v4131_v44, %v2424_v9  ;;  %v2427_v16 = vmul.f32 %v4119_v14, %v2404_v11  ;;  %v2402_v56 = vadd.f32 %v2353_v37, %v2254_v0 }
 0x15e   : > { %v2218_v62 = vpop.f32.mrf.mxu1  ;;  %3311 = verf.f32 %v2476_v4  ;;  %v2481_v10 = vmul.f32 0.70710677, %v4187_v32  ;;  %v3219_v19 = vpop.f32.mrf.mxu0  ;;  %v2461_v63 = vmul.f32 0.5, %v4141_v25  ;;  %v2459_v33 = vmul.f32 0.5, %v4150_v20 }
 0x15f   : > { %v2257_v36 = vadd.f32 %v2218_v62, %v2131_v24  ;;  %v2479_v22 = vmul.f32 0.70710677, %v4191_v1  ;;  %v4200_v28 = vadd.f32 %v4131_v44, %v2427_v16  ;;  %v2425_v52 = vmul.f32 %v4119_v14, %v2402_v56 }
 0x160   : > { %v3202_v6 = vpop.f32.mrf.mxu1  ;;  %3313 = verf.f32 %v2481_v10  ;;  %v2407_v21 = vadd.f32 %v3219_v19, %v2259_v8  ;;  %v2366_v41 = vpop.f32.mrf.mxu0  ;;  %v2462_v53 = vmul.f32 0.5, %v4164_v5 }
 0x161   : > { %v2260_v34 = vadd.f32 %v3202_v6, %v2134_v47  ;;  %3315 = verf.f32 %v2479_v22  ;;  %v2482_v12 = vmul.f32 0.70710677, %v4200_v28  ;;  %v4207_v15 = vadd.f32 %v4131_v44, %v2425_v52 }
 0x162   : > { %v2221_v38 = vpop.f32.mrf.mxu1  ;;  %v2430_v54 = vmul.f32 %v4119_v14, %v2407_v21  ;;  %v2405_v48 = vadd.f32 %v2366_v41, %v2257_v36  ;;  %v3220_v23 = vpop.f32.mrf.mxu0  ;;  %v2460_v6 = vmul.f32 0.5, %v4173_v7  ;;  %v2465_v52 = vmul.f32 0.5, %v4187_v32 }
 0x163   : > { %v2258_v40 = vadd.f32 %v2221_v38, %v2132_v51  ;;  %3317 = verf.f32 %v2482_v12  ;;  %v2480_v3 = vmul.f32 0.70710677, %v4207_v15  ;;  %v2408_v59 = vadd.f32 %v3220_v23, %v2260_v34 }
 0x164   : > { %v3205_v50 = vpop.f32.mrf.mxu1  ;;  %v3306_v24 = vpop.eup %3305  ;;  %v4220_v29 = vadd.f32 %v4131_v44, %v2430_v54  ;;  %v2428_v43 = vmul.f32 %v4119_v14, %v2405_v48  ;;  %v2463_v54 = vmul.f32 0.5, %v4191_v1 }
 0x165   : > { %v2369_v27 = vpop.f32.mrf.mxu0  ;;  %v2263_v55 = vadd.f32 %v3205_v50, %v2137_v31  ;;  %v2509_v13 = vadd.f32 1.0, %v3306_v24  ;;  %3319 = verf.f32 %v2480_v3  ;;  %v2431_v25 = vmul.f32 %v4119_v14, %v2408_v59 }
 0x166   : > { %v2234_v18 = vpop.f32.mrf.mxu1  ;;  %v2406_v26 = vadd.f32 %v2369_v27, %v2258_v40  ;;  %v3308_v45 = vpop.eup %3307  ;;  %v2485_v39 = vmul.f32 0.70710677, %v4220_v29  ;;  %v4227_v0 = vadd.f32 %v4131_v44, %v2428_v43  ;;  %v2466_v27 = vmul.f32 0.5, %v4200_v28 }
 0x167   : > { %v3223_v20 = vpop.f32.mrf.mxu0  ;;  %v2261_v47 = vadd.f32 %v2234_v18, %v2135_v61  ;;  %v2525_v46 = vmul.f32 %v2509_v13, %v2461_v63  ;;  %v2507_v2 = vadd.f32 1.0, %v3308_v45  ;;  %v4230_v30 = vadd.f32 %v4131_v44, %v2431_v25 }
 0x168   : > { %v3206_v42 = vpop.f32.mrf.mxu1  ;;  %v2429_v62 = vmul.f32 %v4119_v14, %v2406_v26  ;;  %v3310_v49 = vpop.eup %3309  ;;  %3321 = verf.f32 %v2485_v39  ;;  %v2483_v9 = vmul.f32 0.70710677, %v4227_v0  ;;  %v2411_v11 = vadd.f32 %v3223_v20, %v2263_v55 }
 0x169   : > { %v2264_v17 = vadd.f32 %v3206_v42, %v2138_v57  ;;  %v2382_v51 = vpop.f32.mrf.mxu0  ;;  %v2968_v4 = vpack.c.bf16 %v2525_v46, %v2525_v46  ;;  %v2523_v37 = vmul.f32 %v2507_v2, %v2459_v33  ;;  %v2510_v8 = vadd.f32 1.0, %v3310_v49 }
 0x16a   : > { %3323 = verf.f32 %v2483_v9  ;;  %v2486_v35 = vmul.f32 0.70710677, %v4230_v30  ;;  %v4243_v16 = vadd.f32 %v4131_v44, %v2429_v62  ;;  %v2434_v56 = vmul.f32 %v4119_v14, %v2411_v11  ;;  %v2237_v22 = vpop.f32.mrf.mxu1 }
 0x16b   : > { %v3224_v5 = vpop.f32.mrf.mxu0  ;;  %v3312_v60 = vpop.eup %3311  ;;  %2606 = vst.msk [vmem:[%s4236_s13 + $0x8] sm:$0xf] %vm2603_vm6, %v2968_v4  ;;  %v2966_v10 = vpack.c.bf16 %v2523_v37, %v2523_v37  ;;  %v2526_v19 = vmul.f32 %v2510_v8, %v2462_v53  ;;  %v2409_v36 = vadd.f32 %v2382_v51, %v2261_v47  ;;  %v2262_v32 = vadd.f32 %v2237_v22, %v4211_v58 }
 0x16c   : > { %v2412_v38 = vadd.f32 %v3224_v5, %v2264_v17  ;;  %v2508_v7 = vadd.f32 1.0, %v3312_v60  ;;  %3325 = verf.f32 %v2486_v35  ;;  %v2484_v34 = vmul.f32 0.70710677, %v4243_v16 }
 0x16d   : > { %v3314_v31 = vpop.eup %3313  ;;  %2604 = vst.msk [vmem:[%s4236_s13] sm:$0xf] %vm2603_vm6, %v2966_v10  ;;  %v2969_v61 = vpack.c.bf16 %v2526_v19, %v2526_v19  ;;  %v4253_v21 = vadd.f32 %v4131_v44, %v2434_v56  ;;  %v2432_v41 = vmul.f32 %v4119_v14, %v2409_v36  ;;  %v2385_v63 = vpop.f32.mrf.mxu0  ;;  %v2464_v13 = vmul.f32 0.5, %v4207_v15 }
 0x16e   : > { %v2435_v50 = vmul.f32 %v4119_v14, %v2412_v38  ;;  %v3316_v12 = vpop.eup %3315  ;;  %v2524_v40 = vmul.f32 %v2508_v7, %v2460_v6  ;;  %v2513_v57 = vadd.f32 1.0, %v3314_v31  ;;  %3327 = verf.f32 %v2484_v34 }
 0x16f   : > { %2607 = vst.msk [vmem:[%s4236_s13 + $0xc] sm:$0xf] %vm2603_vm6, %v2969_v61  ;;  %v2511_v48 = vadd.f32 1.0, %v3316_v12  ;;  %v2489_v23 = vmul.f32 0.70710677, %v4253_v21  ;;  %v4263_v18 = vadd.f32 %v4131_v44, %v2432_v41  ;;  %v2410_v43 = vadd.f32 %v2385_v63, %v2262_v32 }
 0x170   : > { %v3318_v3 = vpop.eup %3317  ;;  %v2967_v59 = vpack.c.bf16 %v2524_v40, %v2524_v40  ;;  %v2529_v24 = vmul.f32 %v2513_v57, %v2465_v52  ;;  %v2458_v33 = vadd.f32 %v4131_v44, %v2435_v50  ;;  %v2469_v2 = vmul.f32 0.5, %v4220_v29 }
 0x171   : > { %v2527_v58 = vmul.f32 %v2511_v48, %v2463_v54  ;;  %v2514_v55 = vadd.f32 1.0, %v3318_v3  ;;  %3329 = verf.f32 %v2489_v23  ;;  %v2487_v25 = vmul.f32 0.70710677, %v4263_v18 }
 0x172   : > { %v3320_v1 = vpop.eup %3319  ;;  %2605 = vst.msk [vmem:[%s4236_s13 + $0x4] sm:$0xf] %vm2603_vm6, %v2967_v59  ;;  %v2972_v42 = vpack.c.bf16 %v2529_v24, %v2529_v24  ;;  %v2490_v26 = vmul.f32 0.70710677, %v2458_v33  ;;  %v2433_v47 = vmul.f32 %v4119_v14, %v2410_v43  ;;  %v2467_v11 = vmul.f32 0.5, %v4227_v0 }
 0x173   : > { %v2970_v45 = vpack.c.bf16 %v2527_v58, %v2527_v58  ;;  %v2530_v39 = vmul.f32 %v2514_v55, %v2466_v27  ;;  %v2512_v20 = vadd.f32 1.0, %v3320_v1  ;;  %3331 = verf.f32 %v2487_v25 }
 0x174   : > { %2610 = vst.msk [vmem:[%s4236_s13 + $0x18] sm:$0xf] %vm2603_vm6, %v2972_v42  ;;  %3333 = verf.f32 %v2490_v26  ;;  %v2456_v15 = vadd.f32 %v4131_v44, %v2433_v47  ;;  %v2470_v29 = vmul.f32 0.5, %v4230_v30  ;;  %v2468_v0 = vmul.f32 0.5, %v4243_v16 }
 0x175   : > { %v3322_v28 = vpop.eup %3321  ;;  %2608 = vst.msk [vmem:[%s4236_s13 + $0x10] sm:$0xf] %vm2603_vm6, %v2970_v45  ;;  %v2973_v17 = vpack.c.bf16 %v2530_v39, %v2530_v39  ;;  %v2528_v46 = vmul.f32 %v2512_v20, %v2464_v13  ;;  %v2473_v36 = vmul.f32 0.5, %v4253_v21  ;;  %v2471_v16 = vmul.f32 0.5, %v4263_v18 }
 0x176   : > { %v2517_v62 = vadd.f32 1.0, %v3322_v28  ;;  %v2488_v53 = vmul.f32 0.70710677, %v2456_v15  ;;  %v2474_v61 = vmul.f32 0.5, %v2458_v33  ;;  %v2472_v32 = vmul.f32 0.5, %v2456_v15 }
 0x177   : > { %v3324_v49 = vpop.eup %3323  ;;  %2611 = vst.msk [vmem:[%s4236_s13 + $0x1c] sm:$0xf] %vm2603_vm6, %v2973_v17  ;;  %v2971_v14 = vpack.c.bf16 %v2528_v46, %v2528_v46 }
 0x178   : > { %v2533_v9 = vmul.f32 %v2517_v62, %v2469_v2  ;;  %v2515_v51 = vadd.f32 1.0, %v3324_v49  ;;  %3335 = verf.f32 %v2488_v53 }
 0x179   : > { %v3326_v4 = vpop.eup %3325  ;;  %2609 = vst.msk [vmem:[%s4236_s13 + $0x14] sm:$0xf] %vm2603_vm6, %v2971_v14 }
 0x17a   : > { %v2976_v37 = vpack.c.bf16 %v2533_v9, %v2533_v9  ;;  %v2531_v44 = vmul.f32 %v2515_v51, %v2467_v11  ;;  %v2518_v8 = vadd.f32 1.0, %v3326_v4 }
 0x17b   : > { %v3328_v6 = vpop.eup %3327 }
 0x17c   : > { %2614 = vst.msk [vmem:[%s4236_s13 + $0x28] sm:$0xf] %vm2603_vm6, %v2976_v37  ;;  %v2974_v35 = vpack.c.bf16 %v2531_v44, %v2531_v44  ;;  %v2534_v56 = vmul.f32 %v2518_v8, %v2470_v29  ;;  %v2516_v5 = vadd.f32 1.0, %v3328_v6 }
 0x17e   : > { %v3330_v60 = vpop.eup %3329  ;;  %2612 = vst.msk [vmem:[%s4236_s13 + $0x20] sm:$0xf] %vm2603_vm6, %v2974_v35  ;;  %v2977_v10 = vpack.c.bf16 %v2534_v56, %v2534_v56  ;;  %v2532_v19 = vmul.f32 %v2516_v5, %v2468_v0 }
 0x17f   : > { %v2521_v38 = vadd.f32 1.0, %v3330_v60 }
 0x180   : > { %2615 = vst.msk [vmem:[%s4236_s13 + $0x2c] sm:$0xf] %vm2603_vm6, %v2977_v10  ;;  %v2975_v30 = vpack.c.bf16 %v2532_v19, %v2532_v19  ;;  %v3332_v22 = vpop.eup %3331 }
 0x181   : > { %v2537_v7 = vmul.f32 %v2521_v38, %v2473_v36  ;;  %v3334_v52 = vpop.eup %3333  ;;  %v2519_v34 = vadd.f32 1.0, %v3332_v22 }
 0x182   : > { %2613 = vst.msk [vmem:[%s4236_s13 + $0x24] sm:$0xf] %vm2603_vm6, %v2975_v30  ;;  %v2522_v41 = vadd.f32 1.0, %v3334_v52 }
 0x183   : > { %v2980_v31 = vpack.c.bf16 %v2537_v7, %v2537_v7  ;;  %v2535_v50 = vmul.f32 %v2519_v34, %v2471_v16 }
 0x184   : > { %v2538_v21 = vmul.f32 %v2522_v41, %v2474_v61 }
 0x185   : > { %2618 = vst.msk [vmem:[%s4236_s13 + $0x38] sm:$0xf] %vm2603_vm6, %v2980_v31  ;;  %v3336_v12 = vpop.eup %3335  ;;  %v2978_v40 = vpack.c.bf16 %v2535_v50, %v2535_v50 }
 0x186   : > { %v2981_v57 = vpack.c.bf16 %v2538_v21, %v2538_v21  ;;  %v2520_v54 = vadd.f32 1.0, %v3336_v12 }
 0x187   : > { %2616 = vst.msk [vmem:[%s4236_s13 + $0x30] sm:$0xf] %vm2603_vm6, %v2978_v40 }
 0x188   : > { %2619 = vst.msk [vmem:[%s4236_s13 + $0x3c] sm:$0xf] %vm2603_vm6, %v2981_v57  ;;  %v2536_v48 = vmul.f32 %v2520_v54, %v2472_v32 }
 0x18a   : > { %v2979_v23 = vpack.c.bf16 %v2536_v48, %v2536_v48 }
 0x18c   : > { %2617 = vst.msk [vmem:[%s4236_s13 + $0x34] sm:$0xf] %vm2603_vm6, %v2979_v23 }
 0x18d PF: > { %s17_s28 = sadd.s32 1, %s3375_s28   ;;  %s4371_s24 = smov %s3367_s26 }
 0x18e   : > { %p14_p9 = scmp.ge.s32.totalorder %s17_s28, 6   ;;  %s4372_s25 = smov %s3371_s27 }
 0x18f   : > { %s4373_s26 = smov %s4376_s29  ;;  %s4374_s27 = smov %s4380_s30 }
 0x190   :  { %16 = sbr.rel (!%p14_p9) target bundleno = 3 (0x3), region = 95 }

// kernel: kernel_predictor_forward.8
= control target key start
LH: loop header
LB: loop body
LE: loop exit
PB: predicated region body
PF: predicated region fallthrough
CT: control target
= control target key end

     0   :  { %s1539_s24 = smov 0   ;;  %s1541_s25 = smov 0   ;;  %s1708_s0 = inlined_call_operand.vmem [shape: bf16[2,5,9,16], index: 0, kind: input, shape index: {}, may-alias: {0,1}]   ;;  %s1709_s1 = inlined_call_operand.vmem [shape: bf16[2,5,9,16], index: 1, kind: input, shape index: {}, may-alias: {0,1}]   ;;  %s1710_s2 = inlined_call_operand.vmem [shape: bf16[2,5,9,16], index: 2, kind: input, shape index: {}, may-alias: {2,3}]   ;;  %s1711_s3 = inlined_call_operand.vmem [shape: bf16[2,5,9,16], index: 3, kind: input, shape index: {}, may-alias: {2,3}]   ;;  %s1712_s4 = inlined_call_operand.vmem [shape: bf16[9,16,32], index: 4, kind: input, shape index: {}]   ;;  %s1713_s5 = inlined_call_operand.vmem [shape: f32[1,32], index: 5, kind: input, shape index: {}]   ;;  %s1714_s6 = inlined_call_operand.vmem [shape: f32[1,32], index: 6, kind: input, shape index: {}]   ;;  %s1715_s7 = inlined_call_operand.vmem [shape: bf16[2,2,8,32], index: 7, kind: output, shape index: {}]  }
   0x1   :  { %s1543_s26 = smov 0  }
   0x2 LB: > { %s29_s27 = sadd.s32 1, %s1491_s25  ;;  %p1300_p0 = scmp.ge.s32.totalorder %s1495_s26, 1  ;;  %s1495_s26 = sphi %s1543_s26, %s17_s26   ;;  %s1491_s25 = sphi %s1541_s25, %s1719_s25   ;;  %s1487_s24 = sphi %s1539_s24, %s1718_s24  }
   0x3   : > { %p31_p1 = scmp.ge.s32.totalorder %s29_s27, 2  ;;  %p345_p2 = scmp.lt.s32.totalorder %s1495_s26, 3 }
   0x5   : > { %s1721_s27 = smov (%p31_p1, %s29_s27), 0  ;;  %p346_p3 = pnand %p1300_p0, %p345_p2 }
   0x6   : > { %p434_p4 = scmp.lt.s32.totalorder (!%p346_p3), %s1487_s24, 1 }
   0x7   : > { %349 = sbr.rel (%p346_p3) target bundleno = 259 (0x103), region = 48 }
   0xc   : > { %v1460_v0 = vld [vmem:[%s1712_s4 + $0x8] sm:$0xff]   ;;  %v1497_v1 = vmov 0.0   ;;  %v1461_v2 = vld [vmem:[%s1712_s4] sm:$0xff]   ;;  %vm1498_vm0 = vmmov 0   ;;  %s1723_s24 = smov (!%p434_p4, %s1487_s24), 1  ;;  %vm538_vm1 = vcmask 130048  }
   0xd   : > { %1377 = vmatprep.subr.bf16.mxu0 %v1497_v1  ;;  %1383 = vmatprep.subr.bf16.mxu1 %v1497_v1  ;;  %s1574_s9 = smul.u32 40, %s1723_s24  ;;  %v1465_v5 = vld [vmem:[%s1712_s4 + $0x18] sm:$0xff]   ;;  %v1464_v9 = vld [vmem:[%s1712_s4 + $0x10] sm:$0xff]   ;;  %vm638_vm2 = vsmask.f32 3328  ;;  %v1468_v35 = vld [vmem:[%s1712_s4 + $0x28] sm:$0xff]  }
   0xe   : > { %1378 = vmatpush3.bf16.msra.mxu0 %v1460_v0  ;;  %1379 = vmatprep.mubr.msk.bf16.mxu0 %vm1498_vm0, %v1497_v1  ;;  %vm639_vm3 = vsmask.f32 7440  ;;  %v1467_v49 = vld [vmem:[%s1712_s4 + $0x20] sm:$0xff]   ;;  %v1471_v61 = vld [vmem:[%s1712_s4 + $0x38] sm:$0xff]   ;;  %s1358_s22 = sshll.u32 %s1723_s24, 3  ;;  %vm1140_vm5 = vcmask 257024  }
   0xf   : > { %1384 = vmatpush3.bf16.msra.mxu1 %v1461_v2  ;;  %1385 = vmatprep.mubr.msk.bf16.mxu1 %vm1498_vm0, %v1497_v1  ;;  %s1580_s12 = scalar_lea.vmem %s1708_s0, %s1574_s9  ;;  %s1586_s15 = scalar_lea.vmem %s1710_s2, %s1574_s9  ;;  %vm1621_vm4 = vmor %vm638_vm2, %vm639_vm3 }
  0x10   : > { %1389 = vmatprep.subr.bf16.mxu0 %v1497_v1  ;;  %1395 = vmatprep.subr.bf16.mxu1 %v1497_v1  ;;  %v507_v3 = vld [vmem:[%s1580_s12] sm:$0xf]  ;;  %v1590_v4 = vld [vmem:[%s1580_s12 + $0x10] sm:$0xf]  ;;  %v508_v11 = vld [vmem:[%s1580_s12 + $0x4] sm:$0x1] }
  0x11   : > { %v515_v6 = vld [vmem:[%s1586_s15] sm:$0xf]  ;;  %v1597_v7 = vld [vmem:[%s1586_s15 + $0x10] sm:$0xf]  ;;  %v1312_v8 = vcombine.low %v507_v3, %v1590_v4  ;;  %v642_v12 = vshrl.u32 %v507_v3, 16  ;;  %v645_v13 = vshll.u32 %v507_v3, 16 }
  0x12   : > { %v1309_v10 = vcombine.low %v515_v6, %v1597_v7  ;;  %v512_v14 = vld [vmem:[%s1580_s12 + $0x14] sm:$0x1]  ;;  %v656_v15 = vshrl.u32 %v1590_v4, 16  ;;  %v659_v16 = vshll.u32 %v1590_v4, 16  ;;  %v509_v17 = vld [vmem:[%s1580_s12 + $0x8] sm:$0xf] }
  0x13   : > { %1386 = vmatmul.mubr.msk.bf16.vlgmr.msra.gmra.mxu1 %vm538_vm1, %v1312_v8  ;;  %v644_v18 = vrot.slane %v642_v12, 4  ;;  %v647_v19 = vrot.slane %v645_v13, 5  ;;  %v651_v20 = vshll.u32 %v508_v11, 16  ;;  %v513_v21 = vld [vmem:[%s1580_s12 + $0x18] sm:$0xf]  ;;  %v665_v24 = vshll.u32 %v512_v14, 16 }
  0x14   : > { %1380 = vmatmul.mubr.msk.bf16.vlgmr.msra.gmra.mxu0 %vm538_vm1, %v1309_v10  ;;  %1396 = vmatpush3.bf16.msra.mxu1 %v1465_v5  ;;  %v658_v22 = vrot.slane %v656_v15, 4  ;;  %v661_v23 = vrot.slane %v659_v16, 5  ;;  %v1322_v25 = vcombine.low %v509_v17, %v513_v21  ;;  %s1355_s20 = sadd.s32 32, %s1574_s9  ;;  %v848_v28 = vshrl.u32 %v509_v17, 16  ;;  %v510_v39 = vld [vmem:[%s1580_s12 + $0xc] sm:$0x1] }
  0x15   : > { %1390 = vmatpush3.bf16.msra.mxu0 %v1464_v9  ;;  %1391 = vmatprep.mubr.msk.bf16.mxu0 %vm1498_vm0, %v1497_v1  ;;  %v648_v26 = vor.u32 %v647_v19, %v644_v18  ;;  %v653_v27 = vrot.slane %v651_v20, 5  ;;  %v851_v29 = vshll.u32 %v509_v17, 16  ;;  %v667_v32 = vrot.slane %v665_v24, 5  ;;  %s1634_s29 = scalar_lea.vmem %s1709_s1, %s1355_s20  ;;  %v514_v43 = vld [vmem:[%s1580_s12 + $0x1c] sm:$0x1]  ;;  %s493_s14 = scalar_lea.vmem %s1711_s3, %s1355_s20  ;;  %v1470_v5 = vld [vmem:[%s1712_s4 + $0x30] sm:$0xff]  }
  0x16   : > { %1397 = vmatprep.mubr.msk.bf16.mxu1 %vm1498_vm0, %v1497_v1  ;;  %1401 = vmatprep.subr.bf16.mxu0 %v1497_v1  ;;  %v662_v31 = vor.u32 %v661_v23, %v658_v22  ;;  %v862_v33 = vshrl.u32 %v513_v21, 16  ;;  %v865_v34 = vshll.u32 %v513_v21, 16  ;;  %v850_v37 = vrot.slane %v848_v28, 4  ;;  %v519_v52 = vld [vmem:[%s1634_s29] sm:$0xf] }
  0x17   : > { %1407 = vmatprep.subr.bf16.mxu1 %v1497_v1  ;;  %v649_v36 = vrot.slane %v648_v26, 4  ;;  %v853_v38 = vrot.slane %v851_v29, 5  ;;  %v857_v44 = vshll.u32 %v510_v39, 16  ;;  %v871_v47 = vshll.u32 %v514_v43, 16  ;;  %v1469_v63 = vld [vmem:[%s1586_s15 + $0x8] ss:$16 sps:$4 sm:$0xff]  }
  0x18   : > { %v663_v40 = vrot.slane %v662_v31, 4  ;;  %v864_v41 = vrot.slane %v862_v33, 4  ;;  %v867_v42 = vrot.slane %v865_v34, 5  ;;  %v1050_v58 = vshrl.u32 %v519_v52, 16  ;;  %v521_v0 = vld [vmem:[%s493_s14] sm:$0xf] }
  0x19   : > { %v654_v45 = vsel %vm1621_vm4, %v649_v36, %v653_v27  ;;  %v854_v46 = vor.u32 %v853_v38, %v850_v37  ;;  %v859_v50 = vrot.slane %v857_v44, 5  ;;  %v873_v55 = vrot.slane %v871_v47, 5  ;;  %v520_v6 = vld [vmem:[%s1634_s29 + $0x4] sm:$0x1]  ;;  %s504_s29 = scalar_lea.vmem %s1715_s7, %s1358_s22 }
  0x1a   : > { %v668_v48 = vsel %vm1621_vm4, %v663_v40, %v667_v32  ;;  %v868_v51 = vor.u32 %v867_v42, %v864_v41  ;;  %v1053_v59 = vshll.u32 %v519_v52, 16  ;;  %v1052_v2 = vrot.slane %v1050_v58, 4  ;;  %v1472_v13 = vld [vmem:[%s1712_s4 + $0x40] sm:$0xff]  }
  0x1b   : > { %1398 = vmatmul.mubr.msk.bf16.vlgmr.msra.gmra.mxu1 %vm538_vm1, %v1322_v25  ;;  %v1317_v53 = vcombine.low %v654_v45, %v668_v48  ;;  %v855_v54 = vrot.slane %v854_v46, 4  ;;  %v1342_v8 = vcombine.low %v1597_v7, %v521_v0  ;;  %v1059_v9 = vshll.u32 %v520_v6, 16 }
  0x1c   : > { %1408 = vmatpush3.bf16.msra.mxu1 %v1468_v35  ;;  %1409 = vmatprep.mubr.msk.bf16.mxu1 %vm1498_vm0, %v1497_v1  ;;  %v869_v56 = vrot.slane %v868_v51, 4  ;;  %v1055_v3 = vrot.slane %v1053_v59, 5  ;;  %v1337_v11 = vcombine.low %v1590_v4, %v519_v52 }
  0x1d   : > { %1419 = vmatprep.subr.bf16.mxu1 %v1497_v1  ;;  %1392 = vmatmul.mubr.msk.bf16.vlgmr.msra.gmra.mxu0 %vm538_vm1, %v1317_v53  ;;  %v860_v57 = vsel %vm1621_vm4, %v855_v54, %v859_v50  ;;  %v1061_v12 = vrot.slane %v1059_v9, 5 }
  0x1e   : > { %1402 = vmatpush3.bf16.msra.mxu0 %v1467_v49  ;;  %1403 = vmatprep.mubr.msk.bf16.mxu0 %vm1498_vm0, %v1497_v1  ;;  %v874_v60 = vsel %vm1621_vm4, %v869_v56, %v873_v55  ;;  %v1056_v10 = vor.u32 %v1055_v3, %v1052_v2 }
  0x1f   : > { %1413 = vmatprep.subr.bf16.mxu0 %v1497_v1  ;;  %v1332_v62 = vcombine.low %v860_v57, %v874_v60  ;;  %v1350_v60 = vld [vmem:[%s1713_s5] ss:$0 sm:$0xff] }
  0x20   : > { %v1057_v7 = vrot.slane %v1056_v10, 4 }
  0x22   : > { %v1062_v14 = vsel %vm1621_vm4, %v1057_v7, %v1061_v12 }
  0x23   : > { %1410 = vmatmul.mubr.msk.bf16.vlgmr.msra.gmra.mxu1 %vm538_vm1, %v1332_v62  ;;  %v1347_v15 = vcombine.low %v668_v48, %v1062_v14  ;;  %v1351_v62 = vld [vmem:[%s1714_s6] ss:$0 sm:$0xff] }
  0x24   : > { %1420 = vmatpush3.bf16.msra.mxu1 %v1471_v61  ;;  %1421 = vmatprep.mubr.msk.bf16.mxu1 %vm1498_vm0, %v1497_v1 }
  0x25   : > { %1404 = vmatmul.mubr.msk.bf16.vlgmr.msra.gmra.mxu0 %vm538_vm1, %v1469_v63 }
  0x26   : > { %1414 = vmatpush3.bf16.msra.mxu0 %v1470_v5  ;;  %1415 = vmatprep.mubr.msk.bf16.mxu0 %vm1498_vm0, %v1497_v1 }
  0x27   : > { %1425 = vmatprep.subr.bf16.mxu0 %v1497_v1 }
  0x2b   : > { %1422 = vmatmul.mubr.msk.bf16.vlgmr.msra.gmra.mxu1 %vm538_vm1, %v1342_v8 }
  0x2d   : > { %1416 = vmatmul.mubr.msk.bf16.vlgmr.msra.gmra.mxu0 %vm538_vm1, %v1337_v11 }
  0x2e   : > { %1426 = vmatpush3.bf16.msra.mxu0 %v1472_v13  ;;  %1427 = vmatprep.mubr.msk.bf16.mxu0 %vm1498_vm0, %v1497_v1 }
  0x35   : > { %1428 = vmatmul.mubr.msk.bf16.vlgmr.msra.gmra.mxu0 %vm538_vm1, %v1347_v15 }
  0xd3   : > { %v631_v4 = vpop.f32.mrf.mxu1 }
  0xd4   : > { %v576_v16 = vpop.f32.mrf.mxu0 }
  0xd5   : > { %v1387_v17 = vpop.f32.mrf.mxu1  ;;  %v632_v30 = vadd.f32 %v631_v4, %v576_v16 }
  0xd6   : > { %v1381_v18 = vpop.f32.mrf.mxu0 }
  0xd7   : > { %v634_v19 = vpop.f32.mrf.mxu1 }
  0xd8   : > { %v579_v20 = vpop.f32.mrf.mxu0 }
  0xd9   : > { %v1388_v21 = vpop.f32.mrf.mxu1  ;;  %v635_v36 = vadd.f32 %v634_v19, %v579_v20 }
  0xda   : > { %v1382_v22 = vpop.f32.mrf.mxu0 }
  0xdb   : > { %v778_v23 = vpop.f32.mrf.mxu1 }
  0xdd   : > { %v1399_v24 = vpop.f32.mrf.mxu1  ;;  %v718_v25 = vpop.f32.mrf.mxu0 }
  0xde   : > { %v725_v33 = vadd.f32 %v718_v25, %v632_v30 }
  0xdf   : > { %v781_v26 = vpop.f32.mrf.mxu1  ;;  %v1393_v27 = vpop.f32.mrf.mxu0 }
  0xe0   : > { %v785_v39 = vadd.f32 %v778_v23, %v725_v33 }
  0xe1   : > { %v1400_v1 = vpop.f32.mrf.mxu1  ;;  %v721_v28 = vpop.f32.mrf.mxu0 }
  0xe2   : > { %v726_v40 = vadd.f32 %v721_v28, %v635_v36 }
  0xe3   : > { %v924_v29 = vpop.f32.mrf.mxu1  ;;  %v1394_v31 = vpop.f32.mrf.mxu0 }
  0xe4   : > { %v786_v46 = vadd.f32 %v781_v26, %v726_v40 }
  0xe5   : > { %v1411_v32 = vpop.f32.mrf.mxu1  ;;  %v838_v34 = vpop.f32.mrf.mxu0 }
  0xe6   : > { %v845_v43 = vadd.f32 %v838_v34, %v785_v39 }
  0xe7   : > { %v927_v35 = vpop.f32.mrf.mxu1  ;;  %v1405_v37 = vpop.f32.mrf.mxu0 }
  0xe8   : > { %v931_v49 = vadd.f32 %v924_v29, %v845_v43 }
  0xe9   : > { %v1412_v38 = vpop.f32.mrf.mxu1  ;;  %v841_v41 = vpop.f32.mrf.mxu0 }
  0xea   : > { %v846_v50 = vadd.f32 %v841_v41, %v786_v46 }
  0xeb   : > { %v1040_v42 = vpop.f32.mrf.mxu1  ;;  %v1406_v44 = vpop.f32.mrf.mxu0 }
  0xec   : > { %v932_v55 = vadd.f32 %v927_v35, %v846_v50 }
  0xed   : > { %v1423_v45 = vpop.f32.mrf.mxu1  ;;  %v982_v47 = vpop.f32.mrf.mxu0 }
  0xee   : > { %v989_v53 = vadd.f32 %v982_v47, %v931_v49 }
  0xef   : > { %v1043_v48 = vpop.f32.mrf.mxu1  ;;  %v1417_v51 = vpop.f32.mrf.mxu0 }
  0xf0   : > { %v1047_v57 = vadd.f32 %v1040_v42, %v989_v53 }
  0xf1   : > { %v1424_v52 = vpop.f32.mrf.mxu1  ;;  %v985_v54 = vpop.f32.mrf.mxu0 }
  0xf2   : > { %v990_v58 = vadd.f32 %v985_v54, %v932_v55 }
  0xf3   : > { %v1418_v56 = vpop.f32.mrf.mxu0 }
  0xf4   : > { %v1048_v0 = vadd.f32 %v1043_v48, %v990_v58 }
  0xf5   : > { %v1111_v59 = vpop.f32.mrf.mxu0 }
  0xf6   : > { %v1118_v61 = vadd.f32 %v1111_v59, %v1047_v57 }
  0xf7   : > { %v1429_v63 = vpop.f32.mrf.mxu0 }
  0xf8   : > { %v1127_v2 = vmul.f32 %v1350_v60, %v1118_v61 }
  0xf9   : > { %v1114_v3 = vpop.f32.mrf.mxu0 }
  0xfa   : > { %v1136_v5 = vadd.f32 %v1351_v62, %v1127_v2  ;;  %v1119_v6 = vadd.f32 %v1114_v3, %v1048_v0 }
  0xfb   : > { %v1430_v8 = vpop.f32.mrf.mxu0 }
  0xfc   : > { %v1138_v9 = vpack.c.bf16 %v1136_v5, %v1136_v5  ;;  %v1128_v10 = vmul.f32 %v1350_v60, %v1119_v6 }
  0xfe   : > { %1141 = vst.msk [vmem:[%s504_s29] sm:$0xf] %vm1140_vm5, %v1138_v9  ;;  %v1137_v11 = vadd.f32 %v1351_v62, %v1128_v10 }
 0x100   : > { %v1139_v12 = vpack.c.bf16 %v1137_v11, %v1137_v11 }
 0x102   : > { %1142 = vst.msk [vmem:[%s504_s29 + $0x4] sm:$0xf] %vm1140_vm5, %v1139_v12 }
 0x103 PF: > { %s17_s26 = sadd.s32 1, %s1495_s26   ;;  %s1718_s24 = smov %s1491_s25 }
 0x104   : > { %p14_p5 = scmp.ge.s32.totalorder %s17_s26, 4   ;;  %s1719_s25 = smov %s1721_s27 }
 0x106   :  { %16 = sbr.rel (!%p14_p5) target bundleno = 2 (0x2), region = 95 }

// kernel: kernel_predictor_forward.9
= control target key start
LH: loop header
LB: loop body
LE: loop exit
PB: predicated region body
PF: predicated region fallthrough
CT: control target
= control target key end

     0   :  { %s856_s29 = smov 0   ;;  %s924_s0 = inlined_call_operand.vmem [shape: f32[2,4,32], index: 0, kind: input, shape index: {}]   ;;  %s925_s1 = inlined_call_operand.vmem [shape: f32[4,32], index: 1, kind: input, shape index: {}]   ;;  %s926_s2 = inlined_call_operand.vmem [shape: f32[32,64], index: 2, kind: input, shape index: {}]   ;;  %s927_s3 = inlined_call_operand.vmem [shape: f32[1,64], index: 3, kind: input, shape index: {}]   ;;  %s928_s4 = inlined_call_operand.vmem [shape: f32[32,32], index: 4, kind: input, shape index: {}]   ;;  %s929_s5 = inlined_call_operand.vmem [shape: f32[1,32], index: 5, kind: input, shape index: {}]   ;;  %s930_s6 = inlined_call_operand.vmem [shape: f32[1,32], index: 6, kind: input, shape index: {}]   ;;  %s931_s7 = inlined_call_operand.<no memory space> [shape: f32[1,1], index: 7, kind: input, shape index: {}]   ;;  %s932_s8 = inlined_call_operand.vmem [shape: f32[2,4,1], index: 8, kind: output, shape index: {}]  }
   0x1   :  { %v13_v0 = vstv %s931_s7 }
   0x2   :  { %14 = vst [vmem:[#allocation2] sm:$0x1] %v13_v0 }
   0x3 LB: > { %s717_s30 = sadd.s32 4294967295, %s803_s29   ;;  %p721_p0 = scmp.ge.s32.totalorder %s803_s29, 1  ;;  %s803_s29 = sphi %s856_s29, %s20_s29  }
   0x4   : > { %p263_p1 = scmp.lt.s32.totalorder %s803_s29, 3 }
   0x6   : > { %p264_p2 = pnand %p721_p0, %p263_p1 }
   0x7   : > { %p295_p3 = scmp.lt.s32.totalorder (!%p264_p2), %s717_s30, 1  ;;  %s807_s22 = smov (!%p264_p2), 96  }
   0x8   : > { %267 = sbr.rel (%p264_p2) target bundleno = 1259 (0x4eb), region = 52 }
   0xd   : > { %v307_v1 = vld [vmem:[%s926_s2 + $0x18] sm:$0xff]  ;;  %v805_v2 = vmov 0.0   ;;  %v306_v3 = vld [vmem:[%s926_s2 + $0x10] sm:$0xff]  ;;  %vm806_vm0 = vmmov 0   ;;  %s934_s30 = smov (!%p295_p3, %s717_s30), 1  ;;  %v305_v4 = vld [vmem:[%s926_s2 + $0x8] sm:$0xff] }
   0xe   : > { %750 = vmatprep.subr.mxu0 %v805_v2  ;;  %758 = vmatprep.mubr.msk.f32.mxu0 %vm806_vm0, %v805_v2  ;;  %s722_s14 = sshll.u32 %s934_s30, 2  ;;  %v304_v5 = vld [vmem:[%s926_s2] sm:$0xff]  ;;  %vm315_vm1 = vcmask 261120   ;;  %vm485_vm2 = vcmask 1043456   ;;  %vm467_vm3 = vcmask 27648   ;;  %v561_v22 = vld [vmem:[%s928_s4 + $0x18] sm:$0xff] }
   0xf   : > { %751 = vmatpush3.msra.mxu0 %v307_v1  ;;  %761 = vmatprep.subr.mxu1 %v805_v2  ;;  %s298_s19 = scalar_lea.vmem %s924_s0, %s722_s14  ;;  %v724_v7 = vld [vmem:[%s927_s3] ss:$0 sm:$0xff]  ;;  %v560_v23 = vld [vmem:[%s928_s4 + $0x10] sm:$0xff]  ;;  %v559_v24 = vld [vmem:[%s928_s4 + $0x8] sm:$0xff]  ;;  %vm481_vm4 = vcmask 31744   ;;  %vm650_vm5 = vcmask 257024  }
  0x10   : > { %752 = vmatprep.subr.mxu0 %v805_v2  ;;  %763 = vmatprep.mubr.msk.f32.mxu1 %vm806_vm0, %v805_v2  ;;  %v303_v6 = vld [vmem:[%s298_s19] sm:$0xf]  ;;  %s302_s19 = scalar_lea.vmem %s932_s8, %s722_s14  ;;  %vm662_vm6 = vcmask 3072  }
  0x11   : > { %753 = vmatpush3.msra.mxu0 %v306_v3  ;;  %v389_v11 = vld [vmem:[%s925_s1] sm:$0xf] }
  0x12   : > { %754 = vmatprep.subr.mxu0 %v805_v2  ;;  %v558_v28 = vld [vmem:[%s928_s4] sm:$0xff] }
  0x13   : > { %755 = vmatpush3.msra.mxu0 %v305_v4  ;;  %v730_v31 = vld [vmem:[%s929_s5] ss:$0 sm:$0xff] }
  0x14   : > { %756 = vmatprep.subr.mxu0 %v805_v2  ;;  %v732_v33 = vld [vmem:[%s930_s6] ss:$0 sm:$0xff] }
  0x15   : > { %757 = vmatpush3.msra.mxu0 %v304_v5  ;;  %v733_v38 = vld [vmem:[#allocation2] ss:$0 sm:$0xff] }
  0x16   : > { %759 = vmatmul.mubr.msk.f32.vlgmr.msra.gmra.mxu0 %vm315_vm1, %v303_v6  ;;  %771 = vmatprep.subr.mxu0 %v805_v2 }
  0x17   : > { %779 = vmatprep.mubr.msk.f32.mxu0 %vm806_vm0, %v805_v2  ;;  %772 = vmatpush3.msra.mxu0 %v561_v22 }
  0x18   : > { %773 = vmatprep.subr.mxu0 %v805_v2 }
  0x19   : > { %774 = vmatpush3.msra.mxu0 %v560_v23 }
  0x1a   : > { %775 = vmatprep.subr.mxu0 %v805_v2 }
  0x1b   : > { %776 = vmatpush3.msra.mxu0 %v559_v24 }
  0x1c   : > { %777 = vmatprep.subr.mxu0 %v805_v2 }
  0x1d   : > { %778 = vmatpush3.msra.mxu0 %v558_v28 }
  0xd6   : > { %v385_v8 = vpop.f32.mrf.mxu0 }
  0xd7   : > { %v386_v9 = vadd.f32 %v724_v7, %v385_v8 }
  0xd8   : > { %v760_v10 = vpop.f32.mrf.mxu0 }
  0xd9   : > { %479 = vrot.lane.b32.xlu1 %v386_v9, %s807_s22  ;;  %762 = vmatpush3.xpose.msk.msra.mxu1 %vm315_vm1, %v386_v9 }
  0xda   : > { %766 = vmatprep.subr.mxu1 %v805_v2 }
  0xdc   : > { %764 = vmatmul.mubr.msk.f32.vlgmr.msra.gmra.mxu1 %vm315_vm1, %v389_v11 }
  0xdd   : > { %768 = vmatprep.mubr.msk.f32.mxu1 %vm806_vm0, %v805_v2 }
 0x14b   : > { %v480_v12 = vpop.permute.xlu1 %479 }
 0x14c   : > { %767 = vmatpush3.msk.msra.mxu1 %vm485_vm2, %v480_v12 }
 0x19c   : > { %v462_v13 = vpop.f32.mrf.mxu1 }
 0x19d   : > { %v466_v14 = vmul.f32 0.17677669, %v462_v13 }
 0x19e   : > { %v765_v15 = vpop.f32.mrf.mxu1 }
 0x19f   : > { %v468_v16 = vsel %vm467_vm3, %v466_v14, -inf }
 0x1a0   : > { %469 = vmax.xlane.f32.xlu0 %v468_v16 }
 0x229   : > { %v470_v17 = vpop.xlane.xlu0 %469 }
 0x22a   : > { %v471_v18 = vsub.f32 %v466_v14, %v470_v17 }
 0x22c   : > { %v472_v19 = vmul.f32 1.442695, %v471_v18 }
 0x22e   : > { %793 = vpow2.f32 %v472_v19 }
 0x23b   : > { %v794_v20 = vpop.eup %793 }
 0x23c   : > { %v474_v21 = vsel %vm467_vm3, %v794_v20, 0.0 }
 0x23d   : > { %475 = vadd.xlane.f32.xlu0 %v474_v21 }
 0x2c6   : > { %v476_v25 = vpop.xlane.xlu0 %475 }
 0x2c7   : > { %795 = vrcp.f32 %v476_v25 }
 0x2d4   : > { %v796_v26 = vpop.eup %795 }
 0x2d5   : > { %v478_v27 = vmul.f32 %v796_v26, %v794_v20 }
 0x2d7   : > { %769 = vmatmul.mubr.msk.f32.vlgmr.msra.gmra.mxu1 %vm481_vm4, %v478_v27 }
 0x397   : > { %v554_v29 = vpop.f32.mrf.mxu1 }
 0x398   : > { %780 = vmatmul.mubr.msk.f32.vlgmr.msra.gmra.mxu0 %vm315_vm1, %v554_v29 }
 0x399   : > { %v770_v30 = vpop.f32.mrf.mxu1 }
 0x458   : > { %v638_v32 = vpop.f32.mrf.mxu0 }
 0x459   : > { %v639_v34 = vadd.f32 %v730_v31, %v638_v32 }
 0x45a   : > { %v781_v35 = vpop.f32.mrf.mxu0 }
 0x45b   : > { %v649_v36 = vmul.f32 %v732_v33, %v639_v34 }
 0x45d   : > { %v651_v37 = vsel %vm650_vm5, %v649_v36, 0.0 }
 0x45e   : > { %652 = vadd.xlane.f32.xlu1 %v651_v37 }
 0x4e7   : > { %v653_v39 = vpop.xlane.xlu1 %652 }
 0x4e8   : > { %v661_v40 = vadd.f32 %v733_v38, %v653_v39 }
 0x4ea   : > { %663 = vst.msk [vmem:[%s302_s19] sm:$0xf] %vm662_vm6, %v661_v40 }
 0x4eb PF: > { %s20_s29 = sadd.s32 1, %s803_s29  }
 0x4ec   : > { %p17_p4 = scmp.ge.s32.totalorder %s20_s29, 4  }
 0x4ee   :  { %19 = sbr.rel (!%p17_p4) target bundleno = 3 (0x3), region = 82 }

</bundles_post_ra>
